<compile_context>
chip_gen: v5e
topology: v5e:2x2
jax: 0.10.0
libtpu: 0.0.40
codegen_flags: <defaults>
</compile_context>

<pallas_src>
import functools
import numpy as np
import jax
import jax.numpy as jnp
from jax import lax
from jax.experimental import pallas as pl
from jax.experimental.pallas import tpu as pltpu

EPS = 1e-5
NEG_SLOPE = 0.01


# ---------------------------------------------------------------------------
# Constant spatial scatter matrix for a 3x3 / stride-1 / zero-padded conv.
# S[k*HW + q, p] = 1  iff  output pixel p's tap k (dy=k//3-1, dx=k%3-1) reads
# source pixel q = (y+dy)*W + (x+dx) and that source lies inside the image.
# ---------------------------------------------------------------------------
def _build_scatter_matrix(h, w):
    hw = h * w
    s = np.zeros((9 * hw, hw), np.float32)
    for k in range(9):
        dy, dx = k // 3 - 1, k % 3 - 1
        for p in range(hw):
            y, x = divmod(p, w)
            yy, xx = y + dy, x + dx
            if 0 <= yy < h and 0 <= xx < w:
                s[k * hw + (yy * w + xx), p] = 1.0
    return s


# ---------------------------------------------------------------------------
# Fused kernel: one grid step = one sample, everything stays in VMEM/vregs.
# ---------------------------------------------------------------------------
def _fused_kernel(x_ref, w1_ref, w2_ref, w3_ref, wse_ref, s_ref, vecs_ref, out_ref):
    f32 = jnp.float32
    mm_dtype = w1_ref.dtype                  # matmul input dtype (bf16 or f32)
    cout = w3_ref.shape[0]
    hw = x_ref.shape[-1]

    x = x_ref[0]                             # (Cin, HW), lane-dense

    # packed per-channel vectors: (10, Cout, 1)
    b1, g1, be1 = vecs_ref[0], vecs_ref[1], vecs_ref[2]
    b2, g2, be2 = vecs_ref[3], vecs_ref[4], vecs_ref[5]
    b3, g3, be3 = vecs_ref[6], vecs_ref[7], vecs_ref[8]
    bse = vecs_ref[9]

    def conv3x3(inp, w_all_ref):
        # channel mixing: (9*Cout, C) @ (C, HW) -> (9*Cout, HW), f32 accumulate
        p_all = jnp.dot(w_all_ref[...], inp.astype(mm_dtype),
                        preferred_element_type=f32)
        # reorganize to (Cout, 9*HW): tile-aligned sublane slices + aligned lane concat
        p_cat = jnp.concatenate(
            [p_all[k * cout:(k + 1) * cout, :] for k in range(9)], axis=-1)
        # spatial shift / zero-pad / sum over the 9 taps, done on the MXU
        return jnp.dot(p_cat.astype(s_ref.dtype), s_ref[...],
                       preferred_element_type=f32)

    def inorm(v, gamma, beta):
        # single-pass instance norm over the spatial (lane) axis
        s1 = jnp.sum(v, axis=-1, keepdims=True)
        s2 = jnp.sum(v * v, axis=-1, keepdims=True)
        mean = s1 * (1.0 / hw)
        var = s2 * (1.0 / hw) - mean * mean
        return (v - mean) * (lax.rsqrt(var + EPS) * gamma) + beta

    def lrelu(v):
        return jnp.where(v >= 0, v, NEG_SLOPE * v)

    # conv1 -> norm1 -> lrelu
    h1 = lrelu(inorm(conv3x3(x, w1_ref) + b1, g1, be1))
    # conv2 -> norm2
    out2 = inorm(conv3x3(h1, w2_ref) + b2, g2, be2)
    # residual branch: 1x1 conv3 -> norm3 (uses the original input)
    res = inorm(jnp.dot(w3_ref[...], x, preferred_element_type=f32) + b3, g3, be3)
    # SSE: 1x1 conv -> sigmoid -> channel-wise gate on post-norm2 output
    gate = jax.nn.sigmoid(
        jnp.dot(wse_ref[...], out2.astype(mm_dtype),
                preferred_element_type=f32) + bse)

    out_ref[0] = lrelu(out2 * gate + res).astype(out_ref.dtype)


# ---------------------------------------------------------------------------
# Wrapper
# ---------------------------------------------------------------------------
@functools.partial(jax.jit, static_argnames=("use_bf16_matmul",))
def unet_res_block_forward(x_nchw, params, use_bf16_matmul=True):
    """x_nchw: (N, Cin, H, W) float32 -> (N, Cout, H, W) float32."""
    n, cin, h, w = x_nchw.shape
    cout = params["w1"].shape[-1]
    hw = h * w
    mm_dtype = jnp.bfloat16 if use_bf16_matmul else jnp.float32

    # NCHW is already channel-major: flattening (H, W) gives lane-dense (N, C, HW).
    x_flat = x_nchw.reshape(n, cin, hw).astype(mm_dtype)

    def conv_w(wk, c_in):
        # (3,3,Cin,Cout) -> (9*Cout, Cin) with row index k*Cout + o, column i
        return (wk.reshape(9, c_in, cout)
                  .transpose(0, 2, 1)
                  .reshape(9 * cout, c_in)
                  .astype(mm_dtype))

    w1_all = conv_w(params["w1"], cin)                    # (9*Cout, Cin)
    w2_all = conv_w(params["w2"], cout)                   # (9*Cout, Cout)
    w3_t = params["w3"].T.astype(mm_dtype)                # (Cout, Cin)
    wse_t = params["wse"].T.astype(mm_dtype)              # (Cout, Cout)
    s_mat = jnp.asarray(_build_scatter_matrix(h, w), dtype=mm_dtype)  # (9*HW, HW)

    # pack the 10 per-channel vectors into one (10, Cout, 1) array (single DMA)
    vecs = jnp.stack([params["b1"], params["g1"], params["be1"],
                      params["b2"], params["g2"], params["be2"],
                      params["b3"], params["g3"], params["be3"],
                      params["bse"]], axis=0).astype(jnp.float32)[..., None]

    out = pl.pallas_call(
        _fused_kernel,
        out_shape=jax.ShapeDtypeStruct((n, cout, hw), jnp.float32),
        grid=(n,),
        in_specs=[
            pl.BlockSpec((1, cin, hw), lambda i: (i, 0, 0)),      # x (per sample)
            pl.BlockSpec((9 * cout, cin), lambda i: (0, 0)),      # w1_all
            pl.BlockSpec((9 * cout, cout), lambda i: (0, 0)),     # w2_all
            pl.BlockSpec((cout, cin), lambda i: (0, 0)),          # w3
            pl.BlockSpec((cout, cout), lambda i: (0, 0)),         # wse
            pl.BlockSpec((9 * hw, hw), lambda i: (0, 0)),         # scatter matrix
            pl.BlockSpec((10, cout, 1), lambda i: (0, 0, 0)),     # packed vectors
        ],
        out_specs=pl.BlockSpec((1, cout, hw), lambda i: (i, 0, 0)),
        compiler_params=pltpu.CompilerParams(
            dimension_semantics=("parallel",)),
    )(x_flat, w1_all, w2_all, w3_t, wse_t, s_mat, vecs)

    return out.reshape(n, cout, h, w)


# ---------------------------------------------------------------------------
# Pure-JAX reference (lax.conv) for verification
# ---------------------------------------------------------------------------
def _ref_forward(x, p):
    def conv3x3(x, w, b):  # w: (3,3,Cin,Cout)
        wt = jnp.transpose(w, (3, 2, 0, 1))  # OIHW
        y = lax.conv_general_dilated(x, wt, (1, 1), "SAME",
                                     dimension_numbers=("NCHW", "OIHW", "NCHW"))
        return y + b[None, :, None, None]

    def conv1x1(x, w, b):  # w: (Cin,Cout)
        wt = jnp.transpose(w, (1, 0))[:, :, None, None]
        y = lax.conv_general_dilated(x, wt, (1, 1), "SAME",
                                     dimension_numbers=("NCHW", "OIHW", "NCHW"))
        return y + b[None, :, None, None]

    def inorm(x, g, b):
        m = x.mean(axis=(2, 3), keepdims=True)
        v = ((x - m) ** 2).mean(axis=(2, 3), keepdims=True)
        return (x - m) * lax.rsqrt(v + EPS) * g[None, :, None, None] + b[None, :, None, None]

    def lrelu(x):
        return jnp.where(x >= 0, x, NEG_SLOPE * x)

    out = lrelu(inorm(conv3x3(x, p["w1"], p["b1"]), p["g1"], p["be1"]))
    out = inorm(conv3x3(out, p["w2"], p["b2"]), p["g2"], p["be2"])
    res = inorm(conv1x1(x, p["w3"], p["b3"]), p["g3"], p["be3"])
    out = out * jax.nn.sigmoid(conv1x1(out, p["wse"], p["bse"]))
    return lrelu(out + res)


def _init_params(key, cin, cout):
    ks = jax.random.split(key, 12)
    f = jnp.float32
    return {
        "w1": 0.2 * jax.random.normal(ks[0], (3, 3, cin, cout), f),
        "b1": 0.1 * jax.random.normal(ks[1], (cout,), f),
        "w2": 0.2 * jax.random.normal(ks[2], (3, 3, cout, cout), f),
        "b2": 0.1 * jax.random.normal(ks[3], (cout,), f),
        "w3": 0.2 * jax.random.normal(ks[4], (cin, cout), f),
        "b3": 0.1 * jax.random.normal(ks[5], (cout,), f),
        "g1": 1.0 + 0.1 * jax.random.normal(ks[6], (cout,), f),
        "be1": 0.1 * jax.random.normal(ks[7], (cout,), f),
        "g2": 1.0 + 0.1 * jax.random.normal(ks[8], (cout,), f),
        "be2": 0.1 * jax.random.normal(ks[9], (cout,), f),
        "g3": jnp.ones((cout,), f),
        "be3": jnp.zeros((cout,), f),
        "wse": 0.2 * jax.random.normal(ks[10], (cout, cout), f),
        "bse": 0.1 * jax.random.normal(ks[11], (cout,), f),
    }


if __name__ == "__main__":
    key = jax.random.PRNGKey(0)
    kx, kp = jax.random.split(key)
    N, Cin, Cout, H, W = 2, 4, 8, 16, 16

    x = jax.random.normal(kx, (N, Cin, H, W), jnp.float32)
    params = _init_params(kp, Cin, Cout)

    ref = _ref_forward(x, params)

    # exact-precision path (f32 MXU inputs): tight check against the XLA reference
    out_f32 = jax.block_until_ready(
        unet_res_block_forward(x, params, use_bf16_matmul=False))
    np.testing.assert_allclose(np.asarray(out_f32), np.asarray(ref),
                               rtol=2e-4, atol=2e-4)

    # performance path (bf16 MXU inputs, f32 accumulation / f32 elementwise math):
    # loose sanity check only -- bf16 rounding of the conv inputs is expected.
    out_bf16 = jax.block_until_ready(
        unet_res_block_forward(x, params, use_bf16_matmul=True))
    np.testing.assert_allclose(np.asarray(out_bf16), np.asarray(ref),
                               rtol=1e-1, atol=1e-1)

    print("KERNEL_OK")
</pallas_src>

<mosaic_0001>
module attributes {stable_mosaic.version = 11 : i64} {
  func.func @_fused_kernel(%arg0: i32, %arg1: memref<1x4x256xf32, #tpu.memory_space<vmem>>, %arg2: memref<72x4xf32, #tpu.memory_space<vmem>>, %arg3: memref<72x8xf32, #tpu.memory_space<vmem>>, %arg4: memref<8x4xf32, #tpu.memory_space<vmem>>, %arg5: memref<8x8xf32, #tpu.memory_space<vmem>>, %arg6: memref<2304x256xf32, #tpu.memory_space<vmem>>, %arg7: memref<10x8x1xf32, #tpu.memory_space<vmem>>, %arg8: memref<1x8x256xf32, #tpu.memory_space<vmem>>) attributes {dimension_semantics = [#tpu.dimension_semantics<parallel>], iteration_bounds = array<i64: 2>, scalar_prefetch = 0 : i64, scratch_operands = 0 : i64, tpu.core_type = #tpu.core_type<tc>, window_params = [{transform_indices = @transform_0, window_bounds = array<i64: 1, 4, 256>}, {pipeline_mode = #tpu.pipeline_mode<synchronous>, transform_indices = @transform_1, window_bounds = array<i64: 72, 4>}, {pipeline_mode = #tpu.pipeline_mode<synchronous>, transform_indices = @transform_2, window_bounds = array<i64: 72, 8>}, {pipeline_mode = #tpu.pipeline_mode<synchronous>, transform_indices = @transform_3, window_bounds = array<i64: 8, 4>}, {pipeline_mode = #tpu.pipeline_mode<synchronous>, transform_indices = @transform_4, window_bounds = array<i64: 8, 8>}, {pipeline_mode = #tpu.pipeline_mode<synchronous>, transform_indices = @transform_5, window_bounds = array<i64: 2304, 256>}, {pipeline_mode = #tpu.pipeline_mode<synchronous>, transform_indices = @transform_6, window_bounds = array<i64: 10, 8, 1>}, {transform_indices = @transform_7, window_bounds = array<i64: 1, 8, 256>}]} {
    %c0 = arith.constant 0 : index
    %c0_0 = arith.constant 0 : index
    %c0_1 = arith.constant 0 : index
    %0 = vector.load %arg1[%c0, %c0_0, %c0_1] : memref<1x4x256xf32, #tpu.memory_space<vmem>>, vector<1x4x256xf32>
    %1 = vector.shape_cast %0 : vector<1x4x256xf32> to vector<4x256xf32>
    %c0_2 = arith.constant 0 : index
    %c0_3 = arith.constant 0 : index
    %c0_4 = arith.constant 0 : index
    %2 = vector.load %arg7[%c0_2, %c0_3, %c0_4] : memref<10x8x1xf32, #tpu.memory_space<vmem>>, vector<1x8x1xf32>
    %3 = vector.shape_cast %2 : vector<1x8x1xf32> to vector<8x1xf32>
    %c1 = arith.constant 1 : index
    %c0_5 = arith.constant 0 : index
    %c0_6 = arith.constant 0 : index
    %4 = vector.load %arg7[%c1, %c0_5, %c0_6] : memref<10x8x1xf32, #tpu.memory_space<vmem>>, vector<1x8x1xf32>
    %5 = vector.shape_cast %4 : vector<1x8x1xf32> to vector<8x1xf32>
    %c2 = arith.constant 2 : index
    %c0_7 = arith.constant 0 : index
    %c0_8 = arith.constant 0 : index
    %6 = vector.load %arg7[%c2, %c0_7, %c0_8] : memref<10x8x1xf32, #tpu.memory_space<vmem>>, vector<1x8x1xf32>
    %7 = vector.shape_cast %6 : vector<1x8x1xf32> to vector<8x1xf32>
    %c3 = arith.constant 3 : index
    %c0_9 = arith.constant 0 : index
    %c0_10 = arith.constant 0 : index
    %8 = vector.load %arg7[%c3, %c0_9, %c0_10] : memref<10x8x1xf32, #tpu.memory_space<vmem>>, vector<1x8x1xf32>
    %9 = vector.shape_cast %8 : vector<1x8x1xf32> to vector<8x1xf32>
    %c4 = arith.constant 4 : index
    %c0_11 = arith.constant 0 : index
    %c0_12 = arith.constant 0 : index
    %10 = vector.load %arg7[%c4, %c0_11, %c0_12] : memref<10x8x1xf32, #tpu.memory_space<vmem>>, vector<1x8x1xf32>
    %11 = vector.shape_cast %10 : vector<1x8x1xf32> to vector<8x1xf32>
    %c5 = arith.constant 5 : index
    %c0_13 = arith.constant 0 : index
    %c0_14 = arith.constant 0 : index
    %12 = vector.load %arg7[%c5, %c0_13, %c0_14] : memref<10x8x1xf32, #tpu.memory_space<vmem>>, vector<1x8x1xf32>
    %13 = vector.shape_cast %12 : vector<1x8x1xf32> to vector<8x1xf32>
    %c6 = arith.constant 6 : index
    %c0_15 = arith.constant 0 : index
    %c0_16 = arith.constant 0 : index
    %14 = vector.load %arg7[%c6, %c0_15, %c0_16] : memref<10x8x1xf32, #tpu.memory_space<vmem>>, vector<1x8x1xf32>
    %15 = vector.shape_cast %14 : vector<1x8x1xf32> to vector<8x1xf32>
    %c7 = arith.constant 7 : index
    %c0_17 = arith.constant 0 : index
    %c0_18 = arith.constant 0 : index
    %16 = vector.load %arg7[%c7, %c0_17, %c0_18] : memref<10x8x1xf32, #tpu.memory_space<vmem>>, vector<1x8x1xf32>
    %17 = vector.shape_cast %16 : vector<1x8x1xf32> to vector<8x1xf32>
    %c8 = arith.constant 8 : index
    %c0_19 = arith.constant 0 : index
    %c0_20 = arith.constant 0 : index
    %18 = vector.load %arg7[%c8, %c0_19, %c0_20] : memref<10x8x1xf32, #tpu.memory_space<vmem>>, vector<1x8x1xf32>
    %19 = vector.shape_cast %18 : vector<1x8x1xf32> to vector<8x1xf32>
    %c9 = arith.constant 9 : index
    %c0_21 = arith.constant 0 : index
    %c0_22 = arith.constant 0 : index
    %20 = vector.load %arg7[%c9, %c0_21, %c0_22] : memref<10x8x1xf32, #tpu.memory_space<vmem>>, vector<1x8x1xf32>
    %21 = vector.shape_cast %20 : vector<1x8x1xf32> to vector<8x1xf32>
    %c0_23 = arith.constant 0 : index
    %c0_24 = arith.constant 0 : index
    %22 = vector.load %arg2[%c0_23, %c0_24] : memref<72x4xf32, #tpu.memory_space<vmem>>, vector<72x4xf32>
    %cst = arith.constant dense<0.000000e+00> : vector<72x256xf32>
    %23 = tpu.matmul %22, %1, %cst {dimension_numbers = #tpu.dot_dimension_numbers<[1], [0], [0], [1], [0, 0, 1, 1], [], []>} : vector<72x4xf32>, vector<4x256xf32>, vector<72x256xf32> -> vector<72x256xf32>
    %24 = vector.extract_strided_slice %23 {offsets = [0, 0], sizes = [8, 256], strides = [1, 1]} : vector<72x256xf32> to vector<8x256xf32>
    %25 = vector.extract_strided_slice %23 {offsets = [8, 0], sizes = [8, 256], strides = [1, 1]} : vector<72x256xf32> to vector<8x256xf32>
    %26 = vector.extract_strided_slice %23 {offsets = [16, 0], sizes = [8, 256], strides = [1, 1]} : vector<72x256xf32> to vector<8x256xf32>
    %27 = vector.extract_strided_slice %23 {offsets = [24, 0], sizes = [8, 256], strides = [1, 1]} : vector<72x256xf32> to vector<8x256xf32>
    %28 = vector.extract_strided_slice %23 {offsets = [32, 0], sizes = [8, 256], strides = [1, 1]} : vector<72x256xf32> to vector<8x256xf32>
    %29 = vector.extract_strided_slice %23 {offsets = [40, 0], sizes = [8, 256], strides = [1, 1]} : vector<72x256xf32> to vector<8x256xf32>
    %30 = vector.extract_strided_slice %23 {offsets = [48, 0], sizes = [8, 256], strides = [1, 1]} : vector<72x256xf32> to vector<8x256xf32>
    %31 = vector.extract_strided_slice %23 {offsets = [56, 0], sizes = [8, 256], strides = [1, 1]} : vector<72x256xf32> to vector<8x256xf32>
    %32 = vector.extract_strided_slice %23 {offsets = [64, 0], sizes = [8, 256], strides = [1, 1]} : vector<72x256xf32> to vector<8x256xf32>
    %33 = tpu.concatenate %24, %25, %26, %27, %28, %29, %30, %31, %32 in 1 : vector<8x256xf32>, vector<8x256xf32>, vector<8x256xf32>, vector<8x256xf32>, vector<8x256xf32>, vector<8x256xf32>, vector<8x256xf32>, vector<8x256xf32>, vector<8x256xf32> -> vector<8x2304xf32>
    %c0_25 = arith.constant 0 : index
    %c0_26 = arith.constant 0 : index
    %34 = vector.load %arg6[%c0_25, %c0_26] : memref<2304x256xf32, #tpu.memory_space<vmem>>, vector<2304x256xf32>
    %cst_27 = arith.constant dense<0.000000e+00> : vector<8x256xf32>
    %35 = tpu.matmul %33, %34, %cst_27 {dimension_numbers = #tpu.dot_dimension_numbers<[1], [0], [0], [1], [0, 0, 1, 1], [], []>} : vector<8x2304xf32>, vector<2304x256xf32>, vector<8x256xf32> -> vector<8x256xf32>
    %36 = vector.broadcast %3 : vector<8x1xf32> to vector<8x256xf32>
    %37 = arith.addf %35, %36 : vector<8x256xf32>
    %cst_28 = arith.constant dense<0.000000e+00> : vector<8xf32>
    %38 = vector.multi_reduction <add>, %37, %cst_28 [1] : vector<8x256xf32> to vector<8xf32>
    %39 = vector.shape_cast %38 : vector<8xf32> to vector<8x1xf32>
    %40 = arith.mulf %37, %37 : vector<8x256xf32>
    %cst_29 = arith.constant dense<0.000000e+00> : vector<8xf32>
    %41 = vector.multi_reduction <add>, %40, %cst_29 [1] : vector<8x256xf32> to vector<8xf32>
    %42 = vector.shape_cast %41 : vector<8xf32> to vector<8x1xf32>
    %cst_30 = arith.constant 3.906250e-03 : f32
    %43 = vector.broadcast %cst_30 : f32 to vector<8x1xf32>
    %44 = arith.mulf %39, %43 : vector<8x1xf32>
    %cst_31 = arith.constant 3.906250e-03 : f32
    %45 = vector.broadcast %cst_31 : f32 to vector<8x1xf32>
    %46 = arith.mulf %42, %45 : vector<8x1xf32>
    %47 = arith.mulf %44, %44 : vector<8x1xf32>
    %48 = arith.subf %46, %47 : vector<8x1xf32>
    %49 = vector.broadcast %44 : vector<8x1xf32> to vector<8x256xf32>
    %50 = arith.subf %37, %49 : vector<8x256xf32>
    %cst_32 = arith.constant 9.99999974E-6 : f32
    %51 = vector.broadcast %cst_32 : f32 to vector<8x1xf32>
    %52 = arith.addf %48, %51 : vector<8x1xf32>
    %53 = math.rsqrt %52 : vector<8x1xf32>
    %54 = arith.mulf %53, %5 : vector<8x1xf32>
    %55 = vector.broadcast %54 : vector<8x1xf32> to vector<8x256xf32>
    %56 = arith.mulf %50, %55 : vector<8x256xf32>
    %57 = vector.broadcast %7 : vector<8x1xf32> to vector<8x256xf32>
    %58 = arith.addf %56, %57 : vector<8x256xf32>
    %cst_33 = arith.constant 0.000000e+00 : f32
    %59 = vector.broadcast %cst_33 : f32 to vector<8x256xf32>
    %60 = arith.cmpf oge, %58, %59 : vector<8x256xf32>
    %cst_34 = arith.constant 0.00999999977 : f32
    %61 = vector.broadcast %cst_34 : f32 to vector<8x256xf32>
    %62 = arith.mulf %61, %58 : vector<8x256xf32>
    %63 = arith.select %60, %58, %62 : vector<8x256xi1>, vector<8x256xf32>
    %c0_35 = arith.constant 0 : index
    %c0_36 = arith.constant 0 : index
    %64 = vector.load %arg3[%c0_35, %c0_36] : memref<72x8xf32, #tpu.memory_space<vmem>>, vector<72x8xf32>
    %cst_37 = arith.constant dense<0.000000e+00> : vector<72x256xf32>
    %65 = tpu.matmul %64, %63, %cst_37 {dimension_numbers = #tpu.dot_dimension_numbers<[1], [0], [0], [1], [0, 0, 1, 1], [], []>} : vector<72x8xf32>, vector<8x256xf32>, vector<72x256xf32> -> vector<72x256xf32>
    %66 = vector.extract_strided_slice %65 {offsets = [0, 0], sizes = [8, 256], strides = [1, 1]} : vector<72x256xf32> to vector<8x256xf32>
    %67 = vector.extract_strided_slice %65 {offsets = [8, 0], sizes = [8, 256], strides = [1, 1]} : vector<72x256xf32> to vector<8x256xf32>
    %68 = vector.extract_strided_slice %65 {offsets = [16, 0], sizes = [8, 256], strides = [1, 1]} : vector<72x256xf32> to vector<8x256xf32>
    %69 = vector.extract_strided_slice %65 {offsets = [24, 0], sizes = [8, 256], strides = [1, 1]} : vector<72x256xf32> to vector<8x256xf32>
    %70 = vector.extract_strided_slice %65 {offsets = [32, 0], sizes = [8, 256], strides = [1, 1]} : vector<72x256xf32> to vector<8x256xf32>
    %71 = vector.extract_strided_slice %65 {offsets = [40, 0], sizes = [8, 256], strides = [1, 1]} : vector<72x256xf32> to vector<8x256xf32>
    %72 = vector.extract_strided_slice %65 {offsets = [48, 0], sizes = [8, 256], strides = [1, 1]} : vector<72x256xf32> to vector<8x256xf32>
    %73 = vector.extract_strided_slice %65 {offsets = [56, 0], sizes = [8, 256], strides = [1, 1]} : vector<72x256xf32> to vector<8x256xf32>
    %74 = vector.extract_strided_slice %65 {offsets = [64, 0], sizes = [8, 256], strides = [1, 1]} : vector<72x256xf32> to vector<8x256xf32>
    %75 = tpu.concatenate %66, %67, %68, %69, %70, %71, %72, %73, %74 in 1 : vector<8x256xf32>, vector<8x256xf32>, vector<8x256xf32>, vector<8x256xf32>, vector<8x256xf32>, vector<8x256xf32>, vector<8x256xf32>, vector<8x256xf32>, vector<8x256xf32> -> vector<8x2304xf32>
    %c0_38 = arith.constant 0 : index
    %c0_39 = arith.constant 0 : index
    %76 = vector.load %arg6[%c0_38, %c0_39] : memref<2304x256xf32, #tpu.memory_space<vmem>>, vector<2304x256xf32>
    %cst_40 = arith.constant dense<0.000000e+00> : vector<8x256xf32>
    %77 = tpu.matmul %75, %76, %cst_40 {dimension_numbers = #tpu.dot_dimension_numbers<[1], [0], [0], [1], [0, 0, 1, 1], [], []>} : vector<8x2304xf32>, vector<2304x256xf32>, vector<8x256xf32> -> vector<8x256xf32>
    %78 = vector.broadcast %9 : vector<8x1xf32> to vector<8x256xf32>
    %79 = arith.addf %77, %78 : vector<8x256xf32>
    %cst_41 = arith.constant dense<0.000000e+00> : vector<8xf32>
    %80 = vector.multi_reduction <add>, %79, %cst_41 [1] : vector<8x256xf32> to vector<8xf32>
    %81 = vector.shape_cast %80 : vector<8xf32> to vector<8x1xf32>
    %82 = arith.mulf %79, %79 : vector<8x256xf32>
    %cst_42 = arith.constant dense<0.000000e+00> : vector<8xf32>
    %83 = vector.multi_reduction <add>, %82, %cst_42 [1] : vector<8x256xf32> to vector<8xf32>
    %84 = vector.shape_cast %83 : vector<8xf32> to vector<8x1xf32>
    %cst_43 = arith.constant 3.906250e-03 : f32
    %85 = vector.broadcast %cst_43 : f32 to vector<8x1xf32>
    %86 = arith.mulf %81, %85 : vector<8x1xf32>
    %cst_44 = arith.constant 3.906250e-03 : f32
    %87 = vector.broadcast %cst_44 : f32 to vector<8x1xf32>
    %88 = arith.mulf %84, %87 : vector<8x1xf32>
    %89 = arith.mulf %86, %86 : vector<8x1xf32>
    %90 = arith.subf %88, %89 : vector<8x1xf32>
    %91 = vector.broadcast %86 : vector<8x1xf32> to vector<8x256xf32>
    %92 = arith.subf %79, %91 : vector<8x256xf32>
    %cst_45 = arith.constant 9.99999974E-6 : f32
    %93 = vector.broadcast %cst_45 : f32 to vector<8x1xf32>
    %94 = arith.addf %90, %93 : vector<8x1xf32>
    %95 = math.rsqrt %94 : vector<8x1xf32>
    %96 = arith.mulf %95, %11 : vector<8x1xf32>
    %97 = vector.broadcast %96 : vector<8x1xf32> to vector<8x256xf32>
    %98 = arith.mulf %92, %97 : vector<8x256xf32>
    %99 = vector.broadcast %13 : vector<8x1xf32> to vector<8x256xf32>
    %100 = arith.addf %98, %99 : vector<8x256xf32>
    %c0_46 = arith.constant 0 : index
    %c0_47 = arith.constant 0 : index
    %101 = vector.load %arg4[%c0_46, %c0_47] : memref<8x4xf32, #tpu.memory_space<vmem>>, vector<8x4xf32>
    %cst_48 = arith.constant dense<0.000000e+00> : vector<8x256xf32>
    %102 = tpu.matmul %101, %1, %cst_48 {dimension_numbers = #tpu.dot_dimension_numbers<[1], [0], [0], [1], [0, 0, 1, 1], [], []>} : vector<8x4xf32>, vector<4x256xf32>, vector<8x256xf32> -> vector<8x256xf32>
    %103 = vector.broadcast %15 : vector<8x1xf32> to vector<8x256xf32>
    %104 = arith.addf %102, %103 : vector<8x256xf32>
    %cst_49 = arith.constant dense<0.000000e+00> : vector<8xf32>
    %105 = vector.multi_reduction <add>, %104, %cst_49 [1] : vector<8x256xf32> to vector<8xf32>
    %106 = vector.shape_cast %105 : vector<8xf32> to vector<8x1xf32>
    %107 = arith.mulf %104, %104 : vector<8x256xf32>
    %cst_50 = arith.constant dense<0.000000e+00> : vector<8xf32>
    %108 = vector.multi_reduction <add>, %107, %cst_50 [1] : vector<8x256xf32> to vector<8xf32>
    %109 = vector.shape_cast %108 : vector<8xf32> to vector<8x1xf32>
    %cst_51 = arith.constant 3.906250e-03 : f32
    %110 = vector.broadcast %cst_51 : f32 to vector<8x1xf32>
    %111 = arith.mulf %106, %110 : vector<8x1xf32>
    %cst_52 = arith.constant 3.906250e-03 : f32
    %112 = vector.broadcast %cst_52 : f32 to vector<8x1xf32>
    %113 = arith.mulf %109, %112 : vector<8x1xf32>
    %114 = arith.mulf %111, %111 : vector<8x1xf32>
    %115 = arith.subf %113, %114 : vector<8x1xf32>
    %116 = vector.broadcast %111 : vector<8x1xf32> to vector<8x256xf32>
    %117 = arith.subf %104, %116 : vector<8x256xf32>
    %cst_53 = arith.constant 9.99999974E-6 : f32
    %118 = vector.broadcast %cst_53 : f32 to vector<8x1xf32>
    %119 = arith.addf %115, %118 : vector<8x1xf32>
    %120 = math.rsqrt %119 : vector<8x1xf32>
    %121 = arith.mulf %120, %17 : vector<8x1xf32>
    %122 = vector.broadcast %121 : vector<8x1xf32> to vector<8x256xf32>
    %123 = arith.mulf %117, %122 : vector<8x256xf32>
    %124 = vector.broadcast %19 : vector<8x1xf32> to vector<8x256xf32>
    %125 = arith.addf %123, %124 : vector<8x256xf32>
    %c0_54 = arith.constant 0 : index
    %c0_55 = arith.constant 0 : index
    %126 = vector.load %arg5[%c0_54, %c0_55] : memref<8x8xf32, #tpu.memory_space<vmem>>, vector<8x8xf32>
    %cst_56 = arith.constant dense<0.000000e+00> : vector<8x256xf32>
    %127 = tpu.matmul %126, %100, %cst_56 {dimension_numbers = #tpu.dot_dimension_numbers<[1], [0], [0], [1], [0, 0, 1, 1], [], []>} : vector<8x8xf32>, vector<8x256xf32>, vector<8x256xf32> -> vector<8x256xf32>
    %128 = vector.broadcast %21 : vector<8x1xf32> to vector<8x256xf32>
    %129 = arith.addf %127, %128 : vector<8x256xf32>
    %130 = arith.negf %129 : vector<8x256xf32>
    %131 = math.exp %130 : vector<8x256xf32>
    %cst_57 = arith.constant 1.000000e+00 : f32
    %132 = vector.broadcast %cst_57 : f32 to vector<8x256xf32>
    %133 = arith.addf %132, %131 : vector<8x256xf32>
    %134 = arith.divf %132, %133 : vector<8x256xf32>
    %135 = arith.mulf %100, %134 : vector<8x256xf32>
    %136 = arith.addf %135, %125 : vector<8x256xf32>
    %cst_58 = arith.constant 0.000000e+00 : f32
    %137 = vector.broadcast %cst_58 : f32 to vector<8x256xf32>
    %138 = arith.cmpf oge, %136, %137 : vector<8x256xf32>
    %cst_59 = arith.constant 0.00999999977 : f32
    %139 = vector.broadcast %cst_59 : f32 to vector<8x256xf32>
    %140 = arith.mulf %139, %136 : vector<8x256xf32>
    %141 = arith.select %138, %136, %140 : vector<8x256xi1>, vector<8x256xf32>
    %c0_60 = arith.constant 0 : index
    %c0_61 = arith.constant 0 : index
    %c0_62 = arith.constant 0 : index
    %142 = vector.load %arg8[%c0_60, %c0_61, %c0_62] : memref<1x8x256xf32, #tpu.memory_space<vmem>>, vector<1x8x256xf32>
    %143 = vector.shape_cast %142 : vector<1x8x256xf32> to vector<8x256xf32>
    %144 = vector.shape_cast %141 : vector<8x256xf32> to vector<1x8x256xf32>
    tpu.vector_store %arg8[%c0_60, %c0_61, %c0_62], %144 {strides = array<i32>} : memref<1x8x256xf32, #tpu.memory_space<vmem>>, vector<1x8x256xf32>,
    return
  }
  func.func @transform_0(%arg0: i32) -> (i32, i32, i32) {
    %c0_i32 = arith.constant 0 : i32
    %c0_i32_0 = arith.constant 0 : i32
    %c0_i32_1 = arith.constant 0 : i32
    return %arg0, %c0_i32, %c0_i32_0 : i32, i32, i32
  }
  func.func @transform_1(%arg0: i32) -> (i32, i32) {
    %c0_i32 = arith.constant 0 : i32
    %c0_i32_0 = arith.constant 0 : i32
    %c0_i32_1 = arith.constant 0 : i32
    return %c0_i32, %c0_i32_0 : i32, i32
  }
  func.func @transform_2(%arg0: i32) -> (i32, i32) {
    %c0_i32 = arith.constant 0 : i32
    %c0_i32_0 = arith.constant 0 : i32
    %c0_i32_1 = arith.constant 0 : i32
    return %c0_i32, %c0_i32_0 : i32, i32
  }
  func.func @transform_3(%arg0: i32) -> (i32, i32) {
    %c0_i32 = arith.constant 0 : i32
    %c0_i32_0 = arith.constant 0 : i32
    %c0_i32_1 = arith.constant 0 : i32
    return %c0_i32, %c0_i32_0 : i32, i32
  }
  func.func @transform_4(%arg0: i32) -> (i32, i32) {
    %c0_i32 = arith.constant 0 : i32
    %c0_i32_0 = arith.constant 0 : i32
    %c0_i32_1 = arith.constant 0 : i32
    return %c0_i32, %c0_i32_0 : i32, i32
  }
  func.func @transform_5(%arg0: i32) -> (i32, i32) {
    %c0_i32 = arith.constant 0 : i32
    %c0_i32_0 = arith.constant 0 : i32
    %c0_i32_1 = arith.constant 0 : i32
    return %c0_i32, %c0_i32_0 : i32, i32
  }
  func.func @transform_6(%arg0: i32) -> (i32, i32, i32) {
    %c0_i32 = arith.constant 0 : i32
    %c0_i32_0 = arith.constant 0 : i32
    %c0_i32_1 = arith.constant 0 : i32
    %c0_i32_2 = arith.constant 0 : i32
    return %c0_i32, %c0_i32_0, %c0_i32_1 : i32, i32, i32
  }
  func.func @transform_7(%arg0: i32) -> (i32, i32, i32) {
    %c0_i32 = arith.constant 0 : i32
    %c0_i32_0 = arith.constant 0 : i32
    %c0_i32_1 = arith.constant 0 : i32
    return %arg0, %c0_i32, %c0_i32_0 : i32, i32, i32
  }
}

</mosaic_0001>

<bundles_post_ra>
// kernel: unet_res_block_forward.1
= control target key start
LH: loop header
LB: loop body
LE: loop exit
PB: predicated region body
PF: predicated region fallthrough
CT: control target
= control target key end

     0   :  { %12 = vsyncpa [#allocation3], 0  ;;  %s3720_s24 = smov 0   ;;  %s4057_s0 = inlined_call_operand.vmem [shape: f32[2,4,256], index: 0, kind: input, shape index: {}]   ;;  %s4058_s1 = inlined_call_operand.vmem [shape: f32[72,4], index: 1, kind: input, shape index: {}]   ;;  %s4059_s2 = inlined_call_operand.vmem [shape: f32[72,8], index: 2, kind: input, shape index: {}]   ;;  %s4060_s3 = inlined_call_operand.vmem [shape: f32[8,4], index: 3, kind: input, shape index: {}]   ;;  %s4061_s4 = inlined_call_operand.vmem [shape: f32[8,8], index: 4, kind: input, shape index: {}]   ;;  %s4062_s5 = inlined_call_operand.hbm [shape: f32[2304,256], index: 5, kind: input, shape index: {}]   ;;  %s4063_s6 = inlined_call_operand.vmem [shape: f32[10,8,1], index: 6, kind: input, shape index: {}]   ;;  %s4064_s7 = inlined_call_operand.vmem [shape: f32[2,8,256], index: 7, kind: output, shape index: {}]  }
   0x1 LB: > { %s224_s27 = sshll.u32 %s4062_s5, 4  ;;  %s2949_s28 = sadd.s32 4294967295, %s3674_s24   ;;  %s3674_s24 = sphi %s3720_s24, %s18_s24   ;;  %s225_s27 = int_to_ptr.hbm [resolvable:$true] %s224_s27 }
   0x2   : > { %p2951_p0 = scmp.ge.s32.totalorder %s3674_s24, 1  ;;  %p201_p1 = scmp.lt.s32.totalorder %s3674_s24, 3 }
   0x3   : > { %p3027_p2 = scmp.eq.s32.totalorder %s2949_s28, 0  ;;  %s3676_s29 = smov [#allocation2]  }
   0x4   : > { %p202_p3 = pnand %p2951_p0, %p201_p1  ;;  %s226_s30 = sshll.u32 %s3676_s29, 4  ;;  %s227_s30 = int_to_ptr.vmem [resolvable:$true] %s226_s30 }
   0x5   : > { %s3677_s8 = smov 256   ;;  %s3678_s9 = smov 16  }
   0x6   : > { %p3023_p4 = pneg %p202_p3  ;;  %253 = sbr.rel (%p202_p3) target bundleno = 1874 (0x752), region = 48 }
   0x8   : > { %p3024_p5 = pnand %p3027_p2, %p3023_p4 }
   0xa   : > { %3026 = dma.hbm_to_vmem [thread:$0]  (!%p3024_p5), %s225_s27, 73728, %s227_s30, [#allocation3], %s3677_s8, %s3677_s8, %s3678_s9  }
   0xb   : > { %3669 = dma.done.wait (%p3027_p2), [#allocation3], 73728  }
   0xc   : > { %3671 = vsyncadd (%p3027_p2), [#allocation3], 4294893568  ;;  %p286_p6 = scmp.lt.s32.totalorder %s2949_s28, 1  ;;  %vm357_vm0 = vcmask 1043456   ;;  %v316_v1 = vld [vmem:[%s4058_s1] sm:$0xff]  ;;  %vm329_vm1 = vcmask 31744  }
   0xd   : > { %v317_v4 = vld [vmem:[%s4058_s1 + $0x8] sm:$0xff]  ;;  %v480_v5 = vld [vmem:[#allocation2 + $0xf0] sm:$0xff]  ;;  %v318_v13 = vld [vmem:[%s4058_s1 + $0x10] sm:$0xff]  ;;  %vm1806_vm7 = vcmask 64512  }
   0xe   : > { %s4066_s28 = smov (!%p286_p6, %s2949_s28), 1  ;;  %v512_v6 = vld [vmem:[#allocation2 + $0x1f0] sm:$0xff]  ;;  %v478_v7 = vld [vmem:[#allocation2 + $0xe0] sm:$0xff]  ;;  %1031 = vmatpush.msra.mxu2 %v480_v5  ;;  %v320_v41 = vld [vmem:[%s4058_s1 + $0x20] sm:$0xff] }
   0xf   : > { %s3017_s10 = sshll.u32 %s4066_s28, 3  ;;  %1051 = vmatpush.msra.mxu3 %v512_v6  ;;  %v510_v8 = vld [vmem:[#allocation2 + $0x1e0] sm:$0xff]  ;;  %v476_v9 = vld [vmem:[#allocation2 + $0xd0] sm:$0xff]  ;;  %s3018_s11 = sshll.u32 %s4066_s28, 4 }
  0x10   : > { %s290_s13 = scalar_lea.vmem %s4057_s0, %s3017_s10  ;;  %v508_v10 = vld [vmem:[#allocation2 + $0x1d0] sm:$0xff]  ;;  %1032 = vmatpush.msra.mxu2 %v478_v7  ;;  %v474_v11 = vld [vmem:[#allocation2 + $0xc0] sm:$0xff]  ;;  %v322_v7 = vld [vmem:[%s4058_s1 + $0x30] sm:$0xff]  ;;  %s295_s14 = scalar_lea.vmem %s4064_s7, %s3018_s11 }
  0x11   : > { %v296_v0 = vld [vmem:[%s290_s13] sm:$0xff]  ;;  %1052 = vmatpush.msra.mxu3 %v510_v8  ;;  %v506_v12 = vld [vmem:[#allocation2 + $0x1c0] sm:$0xff]  ;;  %v472_v14 = vld [vmem:[#allocation2 + $0xb0] sm:$0xff] }
  0x12   : > { %326 = vst [vmem:[#allocation1] ss:$2 sm:$0xff] %v296_v0  ;;  %1033 = vmatpush.msra.mxu2 %v476_v9  ;;  %v504_v15 = vld [vmem:[#allocation2 + $0x1b0] sm:$0xff]  ;;  %v470_v16 = vld [vmem:[#allocation2 + $0xa0] sm:$0xff] }
  0x13   : > { %1053 = vmatpush.msra.mxu3 %v508_v10  ;;  %v502_v17 = vld [vmem:[#allocation2 + $0x1a0] sm:$0xff]  ;;  %v468_v18 = vld [vmem:[#allocation2 + $0x90] sm:$0xff] }
  0x14   : > { %1034 = vmatpush.msra.mxu2 %v474_v11  ;;  %v500_v19 = vld [vmem:[#allocation2 + $0x190] sm:$0xff]  ;;  %v466_v22 = vld [vmem:[#allocation2 + $0x80] sm:$0xff] }
  0x15   : > { %1054 = vmatpush.msra.mxu3 %v506_v12  ;;  %v608_v20 = vld [vmem:[#allocation2 + $0x4f0] sm:$0xff]  ;;  %v498_v23 = vld [vmem:[#allocation2 + $0x180] sm:$0xff] }
  0x16   : > { %1035 = vmatpush.msra.mxu2 %v472_v14  ;;  %v640_v21 = vld [vmem:[#allocation2 + $0x5f0] sm:$0xff]  ;;  %v606_v24 = vld [vmem:[#allocation2 + $0x4e0] sm:$0xff] }
  0x17   : > { %1055 = vmatpush.msra.mxu3 %v504_v15  ;;  %v319_v25 = vld [vmem:[%s4058_s1 + $0x18] sm:$0xff]  ;;  %v638_v26 = vld [vmem:[#allocation2 + $0x5e0] sm:$0xff] }
  0x18   : > { %1036 = vmatpush.msra.mxu2 %v470_v16  ;;  %v464_v27 = vld [vmem:[#allocation2 + $0x70] sm:$0xff]  ;;  %v462_v31 = vld [vmem:[#allocation2 + $0x60] sm:$0xff] }
  0x19   : > { %v327_v2 = vld.sshfl [vmem:[#allocation1] sm:$0xff pattern:$0x75316420]  ;;  %v328_v3 = vld.sshfl [vmem:[#allocation1 + $0x8] sm:$0xff pattern:$0x75316420]  ;;  %1056 = vmatpush.msra.mxu3 %v502_v17 }
  0x1a   : > { %2969 = vmatpush.msk.msra.mxu0 %vm357_vm0, %v327_v2  ;;  %2979 = vmatpush.msk.msra.mxu1 %vm357_vm0, %v328_v3  ;;  %2693 = vst [vmem:[#allocation1] ss:$2 sm:$0xff] %v296_v0  ;;  %v496_v28 = vld [vmem:[#allocation2 + $0x170] sm:$0xff]  ;;  %v494_v32 = vld [vmem:[#allocation2 + $0x160] sm:$0xff] }
  0x1b   : > { %2970 = vmatmul.msk.f32.vlgmr.msra.gmra.mxu0 %vm329_vm1, %v316_v1  ;;  %2980 = vmatmul.msk.f32.vlgmr.msra.gmra.mxu1 %vm329_vm1, %v316_v1  ;;  %v604_v29 = vld [vmem:[#allocation2 + $0x4d0] sm:$0xff]  ;;  %v602_v33 = vld [vmem:[#allocation2 + $0x4c0] sm:$0xff] }
  0x1c   : > { %1111 = vmatpush.msrb.mxu0 %v608_v20  ;;  %1131 = vmatpush.msrb.mxu1 %v640_v21  ;;  %v636_v30 = vld [vmem:[#allocation2 + $0x5d0] sm:$0xff]  ;;  %v634_v34 = vld [vmem:[#allocation2 + $0x5c0] sm:$0xff] }
  0x1d   : > { %1037 = vmatpush.msra.mxu2 %v468_v18  ;;  %1057 = vmatpush.msra.mxu3 %v500_v19  ;;  %v460_v35 = vld [vmem:[#allocation2 + $0x50] sm:$0xff]  ;;  %v458_v39 = vld [vmem:[#allocation2 + $0x40] sm:$0xff] }
  0x1e   : > { %1112 = vmatpush.msrb.mxu0 %v606_v24  ;;  %1132 = vmatpush.msrb.mxu1 %v638_v26  ;;  %v492_v36 = vld [vmem:[#allocation2 + $0x150] sm:$0xff]  ;;  %v490_v40 = vld [vmem:[#allocation2 + $0x140] sm:$0xff] }
  0x1f   : > { %1038 = vmatpush.msra.mxu2 %v466_v22  ;;  %1058 = vmatpush.msra.mxu3 %v498_v23  ;;  %v600_v37 = vld [vmem:[#allocation2 + $0x4b0] sm:$0xff]  ;;  %v598_v44 = vld [vmem:[#allocation2 + $0x4a0] sm:$0xff] }
  0x20   : > { %1113 = vmatpush.msrb.mxu0 %v604_v29  ;;  %1133 = vmatpush.msrb.mxu1 %v636_v30  ;;  %v632_v38 = vld [vmem:[#allocation2 + $0x5b0] sm:$0xff]  ;;  %v630_v45 = vld [vmem:[#allocation2 + $0x5a0] sm:$0xff] }
  0x21   : > { %1039 = vmatpush.msra.mxu2 %v464_v27  ;;  %1059 = vmatpush.msra.mxu3 %v496_v28  ;;  %v456_v42 = vld [vmem:[#allocation2 + $0x30] sm:$0xff]  ;;  %v454_v46 = vld [vmem:[#allocation2 + $0x20] sm:$0xff] }
  0x22   : > { %1114 = vmatpush.msrb.mxu0 %v602_v33  ;;  %1134 = vmatpush.msrb.mxu1 %v634_v34  ;;  %v488_v43 = vld [vmem:[#allocation2 + $0x130] sm:$0xff]  ;;  %v486_v47 = vld [vmem:[#allocation2 + $0x120] sm:$0xff] }
  0x23   : > { %2971 = vmatmul.msk.f32.gmra.mxu0 %vm329_vm1, %v317_v4  ;;  %2981 = vmatmul.msk.f32.gmra.mxu1 %vm329_vm1, %v317_v4  ;;  %v596_v48 = vld [vmem:[#allocation2 + $0x490] sm:$0xff]  ;;  %v594_v52 = vld [vmem:[#allocation2 + $0x480] sm:$0xff] }
  0x24   : > { %1040 = vmatpush.msra.mxu2 %v462_v31  ;;  %1060 = vmatpush.msra.mxu3 %v494_v32  ;;  %v628_v49 = vld [vmem:[#allocation2 + $0x590] sm:$0xff]  ;;  %v626_v53 = vld [vmem:[#allocation2 + $0x580] sm:$0xff] }
  0x25   : > { %1115 = vmatpush.msrb.mxu0 %v600_v37  ;;  %1135 = vmatpush.msrb.mxu1 %v632_v38  ;;  %v452_v50 = vld [vmem:[#allocation2 + $0x10] sm:$0xff]  ;;  %v450_v54 = vld [vmem:[#allocation2] sm:$0xff]  ;;  %v324_v37 = vld [vmem:[%s4058_s1 + $0x40] sm:$0xff] }
  0x26   : > { %1041 = vmatpush.msra.mxu2 %v460_v35  ;;  %1061 = vmatpush.msra.mxu3 %v492_v36  ;;  %v484_v51 = vld [vmem:[#allocation2 + $0x110] sm:$0xff]  ;;  %v482_v55 = vld [vmem:[#allocation2 + $0x100] sm:$0xff] }
  0x27   : > { %1116 = vmatpush.msrb.mxu0 %v598_v44  ;;  %1136 = vmatpush.msrb.mxu1 %v630_v45  ;;  %v321_v56 = vld [vmem:[%s4058_s1 + $0x28] sm:$0xff]  ;;  %v544_v57 = vld [vmem:[#allocation2 + $0x2f0] sm:$0xff] }
  0x28   : > { %1042 = vmatpush.msra.mxu2 %v458_v39  ;;  %1062 = vmatpush.msra.mxu3 %v490_v40  ;;  %v576_v58 = vld [vmem:[#allocation2 + $0x3f0] sm:$0xff]  ;;  %v542_v61 = vld [vmem:[#allocation2 + $0x2e0] sm:$0xff] }
  0x29   : > { %1117 = vmatpush.msrb.mxu0 %v596_v48  ;;  %1137 = vmatpush.msrb.mxu1 %v628_v49  ;;  %v592_v59 = vld [vmem:[#allocation2 + $0x470] sm:$0xff]  ;;  %v574_v62 = vld [vmem:[#allocation2 + $0x3e0] sm:$0xff] }
  0x2a   : > { %1043 = vmatpush.msra.mxu2 %v456_v42  ;;  %1063 = vmatpush.msra.mxu3 %v488_v43  ;;  %v624_v60 = vld [vmem:[#allocation2 + $0x570] sm:$0xff]  ;;  %v590_v63 = vld [vmem:[#allocation2 + $0x460] sm:$0xff] }
  0x2b   : > { %2972 = vmatmul.msk.f32.gmra.mxu0 %vm329_vm1, %v318_v13  ;;  %2982 = vmatmul.msk.f32.gmra.mxu1 %vm329_vm1, %v318_v13  ;;  %v622_v0 = vld [vmem:[#allocation2 + $0x560] sm:$0xff]  ;;  %v540_v1 = vld [vmem:[#allocation2 + $0x2d0] sm:$0xff] }
  0x2c   : > { %1044 = vmatpush.msra.mxu2 %v454_v46  ;;  %1064 = vmatpush.msra.mxu3 %v486_v47  ;;  %v572_v2 = vld [vmem:[#allocation2 + $0x3d0] sm:$0xff]  ;;  %v538_v5 = vld [vmem:[#allocation2 + $0x2c0] sm:$0xff] }
  0x2d   : > { %1118 = vmatpush.msrb.mxu0 %v594_v52  ;;  %1138 = vmatpush.msrb.mxu1 %v626_v53  ;;  %v588_v3 = vld [vmem:[#allocation2 + $0x450] sm:$0xff]  ;;  %v570_v6 = vld [vmem:[#allocation2 + $0x3c0] sm:$0xff] }
  0x2e   : > { %1045 = vmatpush.msra.mxu2 %v452_v50  ;;  %1065 = vmatpush.msra.mxu3 %v484_v51  ;;  %v620_v4 = vld [vmem:[#allocation2 + $0x550] sm:$0xff]  ;;  %v586_v8 = vld [vmem:[#allocation2 + $0x440] sm:$0xff] }
  0x2f   : > { %1119 = vmatpush.msrb.mxu0 %v592_v59  ;;  %1139 = vmatpush.msrb.mxu1 %v624_v60  ;;  %v618_v9 = vld [vmem:[#allocation2 + $0x540] sm:$0xff]  ;;  %v536_v10 = vld [vmem:[#allocation2 + $0x2b0] sm:$0xff] }
  0x30   : > { %1046 = vmatpush.msra.mxu2 %v450_v54  ;;  %1066 = vmatpush.msra.mxu3 %v482_v55  ;;  %v568_v11 = vld [vmem:[#allocation2 + $0x3b0] sm:$0xff]  ;;  %v534_v14 = vld [vmem:[#allocation2 + $0x2a0] sm:$0xff] }
  0x31   : > { %1120 = vmatpush.msrb.mxu0 %v590_v63  ;;  %1140 = vmatpush.msrb.mxu1 %v622_v0  ;;  %v584_v12 = vld [vmem:[#allocation2 + $0x430] sm:$0xff]  ;;  %v566_v15 = vld [vmem:[#allocation2 + $0x3a0] sm:$0xff] }
  0x32   : > { %1071 = vmatpush.msrb.mxu2 %v544_v57  ;;  %1091 = vmatpush.msrb.mxu3 %v576_v58  ;;  %v616_v13 = vld [vmem:[#allocation2 + $0x530] sm:$0xff]  ;;  %v582_v16 = vld [vmem:[#allocation2 + $0x420] sm:$0xff] }
  0x33   : > { %2973 = vmatmul.msk.f32.gmra.mxu0 %vm329_vm1, %v319_v25  ;;  %2983 = vmatmul.msk.f32.gmra.mxu1 %vm329_vm1, %v319_v25  ;;  %v614_v17 = vld [vmem:[#allocation2 + $0x520] sm:$0xff]  ;;  %v532_v18 = vld [vmem:[#allocation2 + $0x290] sm:$0xff] }
  0x34   : > { %1072 = vmatpush.msrb.mxu2 %v542_v61  ;;  %1092 = vmatpush.msrb.mxu3 %v574_v62  ;;  %v564_v19 = vld [vmem:[#allocation2 + $0x390] sm:$0xff]  ;;  %v530_v23 = vld [vmem:[#allocation2 + $0x280] sm:$0xff] }
  0x35   : > { %1121 = vmatpush.msrb.mxu0 %v588_v3  ;;  %1141 = vmatpush.msrb.mxu1 %v620_v4  ;;  %v580_v20 = vld [vmem:[#allocation2 + $0x410] sm:$0xff]  ;;  %v562_v24 = vld [vmem:[#allocation2 + $0x380] sm:$0xff] }
  0x36   : > { %1073 = vmatpush.msrb.mxu2 %v540_v1  ;;  %1093 = vmatpush.msrb.mxu3 %v572_v2  ;;  %v612_v21 = vld [vmem:[#allocation2 + $0x510] sm:$0xff]  ;;  %v578_v25 = vld [vmem:[#allocation2 + $0x400] sm:$0xff] }
  0x37   : > { %1122 = vmatpush.msrb.mxu0 %v586_v8  ;;  %1142 = vmatpush.msrb.mxu1 %v618_v9  ;;  %v323_v22 = vld [vmem:[%s4058_s1 + $0x38] sm:$0xff]  ;;  %v610_v26 = vld [vmem:[#allocation2 + $0x500] sm:$0xff] }
  0x38   : > { %1074 = vmatpush.msrb.mxu2 %v538_v5  ;;  %1094 = vmatpush.msrb.mxu3 %v570_v6  ;;  %v528_v27 = vld [vmem:[#allocation2 + $0x270] sm:$0xff]  ;;  %v526_v31 = vld [vmem:[#allocation2 + $0x260] sm:$0xff] }
  0x39   : > { %1123 = vmatpush.msrb.mxu0 %v584_v12  ;;  %1143 = vmatpush.msrb.mxu1 %v616_v13  ;;  %v560_v28 = vld [vmem:[#allocation2 + $0x370] sm:$0xff]  ;;  %v558_v32 = vld [vmem:[#allocation2 + $0x360] sm:$0xff]  ;;  %v3679_v12 = vmov 0   ;;  %v297_v13 = vld [vmem:[%s4063_s6] sm:$0xff] }
  0x3a   : > { %1075 = vmatpush.msrb.mxu2 %v536_v10  ;;  %1095 = vmatpush.msrb.mxu3 %v568_v11  ;;  %v736_v29 = vld [vmem:[#allocation2 + $0x8f0] sm:$0xff]  ;;  %v734_v33 = vld [vmem:[#allocation2 + $0x8e0] sm:$0xff] }
  0x3b   : > { %2974 = vmatmul.msk.f32.gmra.mxu0 %vm329_vm1, %v320_v41  ;;  %2984 = vmatmul.msk.f32.gmra.mxu1 %vm329_vm1, %v320_v41  ;;  %v768_v30 = vld [vmem:[#allocation2 + $0x9f0] sm:$0xff]  ;;  %v766_v34 = vld [vmem:[#allocation2 + $0x9e0] sm:$0xff] }
  0x3c   : > { %1076 = vmatpush.msrb.mxu2 %v534_v14  ;;  %1096 = vmatpush.msrb.mxu3 %v566_v15  ;;  %v524_v35 = vld [vmem:[#allocation2 + $0x250] sm:$0xff]  ;;  %v522_v40 = vld [vmem:[#allocation2 + $0x240] sm:$0xff] }
  0x3d   : > { %1124 = vmatpush.msrb.mxu0 %v582_v16  ;;  %1144 = vmatpush.msrb.mxu1 %v614_v17  ;;  %v556_v36 = vld [vmem:[#allocation2 + $0x350] sm:$0xff]  ;;  %v554_v41 = vld [vmem:[#allocation2 + $0x340] sm:$0xff] }
  0x3e   : > { %1077 = vmatpush.msrb.mxu2 %v532_v18  ;;  %1097 = vmatpush.msrb.mxu3 %v564_v19  ;;  %v732_v38 = vld [vmem:[#allocation2 + $0x8d0] sm:$0xff]  ;;  %v730_v42 = vld [vmem:[#allocation2 + $0x8c0] sm:$0xff] }
  0x3f   : > { %1125 = vmatpush.msrb.mxu0 %v580_v20  ;;  %1145 = vmatpush.msrb.mxu1 %v612_v21  ;;  %v764_v39 = vld [vmem:[#allocation2 + $0x9d0] sm:$0xff]  ;;  %v762_v43 = vld [vmem:[#allocation2 + $0x9c0] sm:$0xff] }
  0x40   : > { %1078 = vmatpush.msrb.mxu2 %v530_v23  ;;  %1098 = vmatpush.msrb.mxu3 %v562_v24  ;;  %v520_v44 = vld [vmem:[#allocation2 + $0x230] sm:$0xff]  ;;  %v518_v48 = vld [vmem:[#allocation2 + $0x220] sm:$0xff] }
  0x41   : > { %1126 = vmatpush.msrb.mxu0 %v578_v25  ;;  %1146 = vmatpush.msrb.mxu1 %v610_v26  ;;  %v552_v45 = vld [vmem:[#allocation2 + $0x330] sm:$0xff]  ;;  %v550_v49 = vld [vmem:[#allocation2 + $0x320] sm:$0xff] }
  0x42   : > { %1079 = vmatpush.msrb.mxu2 %v528_v27  ;;  %1099 = vmatpush.msrb.mxu3 %v560_v28  ;;  %v728_v46 = vld [vmem:[#allocation2 + $0x8b0] sm:$0xff]  ;;  %v726_v50 = vld [vmem:[#allocation2 + $0x8a0] sm:$0xff] }
  0x43   : > { %2975 = vmatmul.msk.f32.gmra.mxu0 %vm329_vm1, %v321_v56  ;;  %2985 = vmatmul.msk.f32.gmra.mxu1 %vm329_vm1, %v321_v56  ;;  %v760_v47 = vld [vmem:[#allocation2 + $0x9b0] sm:$0xff]  ;;  %v758_v51 = vld [vmem:[#allocation2 + $0x9a0] sm:$0xff] }
  0x44   : > { %1191 = vmatpush.msra.mxu0 %v736_v29  ;;  %1211 = vmatpush.msra.mxu1 %v768_v30  ;;  %v516_v52 = vld [vmem:[#allocation2 + $0x210] sm:$0xff]  ;;  %v514_v56 = vld [vmem:[#allocation2 + $0x200] sm:$0xff] }
  0x45   : > { %1080 = vmatpush.msrb.mxu2 %v526_v31  ;;  %1100 = vmatpush.msrb.mxu3 %v558_v32  ;;  %v548_v53 = vld [vmem:[#allocation2 + $0x310] sm:$0xff]  ;;  %v546_v57 = vld [vmem:[#allocation2 + $0x300] sm:$0xff] }
  0x46   : > { %1192 = vmatpush.msra.mxu0 %v734_v33  ;;  %1212 = vmatpush.msra.mxu1 %v766_v34  ;;  %v724_v54 = vld [vmem:[#allocation2 + $0x890] sm:$0xff]  ;;  %v722_v58 = vld [vmem:[#allocation2 + $0x880] sm:$0xff] }
  0x47   : > { %1081 = vmatpush.msrb.mxu2 %v524_v35  ;;  %1101 = vmatpush.msrb.mxu3 %v556_v36  ;;  %v756_v55 = vld [vmem:[#allocation2 + $0x990] sm:$0xff]  ;;  %v754_v59 = vld [vmem:[#allocation2 + $0x980] sm:$0xff] }
  0x48   : > { %1193 = vmatpush.msra.mxu0 %v732_v38  ;;  %1213 = vmatpush.msra.mxu1 %v764_v39  ;;  %v720_v60 = vld [vmem:[#allocation2 + $0x870] sm:$0xff]  ;;  %v718_v62 = vld [vmem:[#allocation2 + $0x860] sm:$0xff] }
  0x49   : > { %1082 = vmatpush.msrb.mxu2 %v522_v40  ;;  %1102 = vmatpush.msrb.mxu3 %v554_v41  ;;  %v752_v61 = vld [vmem:[#allocation2 + $0x970] sm:$0xff]  ;;  %v750_v63 = vld [vmem:[#allocation2 + $0x960] sm:$0xff] }
  0x4a   : > { %1194 = vmatpush.msra.mxu0 %v730_v42  ;;  %1214 = vmatpush.msra.mxu1 %v762_v43  ;;  %v716_v0 = vld [vmem:[#allocation2 + $0x850] sm:$0xff]  ;;  %v714_v2 = vld [vmem:[#allocation2 + $0x840] sm:$0xff] }
  0x4b   : > { %2976 = vmatmul.msk.f32.gmra.mxu0 %vm329_vm1, %v322_v7  ;;  %2986 = vmatmul.msk.f32.gmra.mxu1 %vm329_vm1, %v322_v7  ;;  %v748_v1 = vld [vmem:[#allocation2 + $0x950] sm:$0xff]  ;;  %v746_v3 = vld [vmem:[#allocation2 + $0x940] sm:$0xff] }
  0x4c   : > { %1083 = vmatpush.msrb.mxu2 %v520_v44  ;;  %1103 = vmatpush.msrb.mxu3 %v552_v45  ;;  %v712_v4 = vld [vmem:[#allocation2 + $0x830] sm:$0xff]  ;;  %v710_v6 = vld [vmem:[#allocation2 + $0x820] sm:$0xff] }
  0x4d   : > { %1195 = vmatpush.msra.mxu0 %v728_v46  ;;  %1215 = vmatpush.msra.mxu1 %v760_v47  ;;  %v744_v5 = vld [vmem:[#allocation2 + $0x930] sm:$0xff]  ;;  %v742_v7 = vld [vmem:[#allocation2 + $0x920] sm:$0xff] }
  0x4e   : > { %1084 = vmatpush.msrb.mxu2 %v518_v48  ;;  %1104 = vmatpush.msrb.mxu3 %v550_v49  ;;  %v708_v8 = vld [vmem:[#allocation2 + $0x810] sm:$0xff]  ;;  %v706_v10 = vld [vmem:[#allocation2 + $0x800] sm:$0xff] }
  0x4f   : > { %1196 = vmatpush.msra.mxu0 %v726_v50  ;;  %1216 = vmatpush.msra.mxu1 %v758_v51  ;;  %v740_v9 = vld [vmem:[#allocation2 + $0x910] sm:$0xff]  ;;  %v738_v11 = vld [vmem:[#allocation2 + $0x900] sm:$0xff] }
  0x50   : > { %1085 = vmatpush.msrb.mxu2 %v516_v52  ;;  %1105 = vmatpush.msrb.mxu3 %v548_v53  ;;  %v672_v14 = vld [vmem:[#allocation2 + $0x6f0] sm:$0xff]  ;;  %v670_v18 = vld [vmem:[#allocation2 + $0x6e0] sm:$0xff] }
  0x51   : > { %1197 = vmatpush.msra.mxu0 %v724_v54  ;;  %1217 = vmatpush.msra.mxu1 %v756_v55  ;;  %v704_v15 = vld [vmem:[#allocation2 + $0x7f0] sm:$0xff]  ;;  %v702_v19 = vld [vmem:[#allocation2 + $0x7e0] sm:$0xff] }
  0x52   : > { %1086 = vmatpush.msrb.mxu2 %v514_v56  ;;  %1106 = vmatpush.msrb.mxu3 %v546_v57  ;;  %v668_v20 = vld [vmem:[#allocation2 + $0x6d0] sm:$0xff]  ;;  %v698_v23 = vld [vmem:[#allocation2 + $0x7c0] sm:$0xff] }
  0x53   : > { %2977 = vmatmul.msk.f32.gmra.mxu0 %vm329_vm1, %v323_v22  ;;  %2987 = vmatmul.msk.f32.gmra.mxu1 %vm329_vm1, %v323_v22  ;;  %v700_v21 = vld [vmem:[#allocation2 + $0x7d0] sm:$0xff]  ;;  %v666_v22 = vld [vmem:[#allocation2 + $0x6c0] sm:$0xff] }
  0x54   : > { %1198 = vmatpush.msra.mxu0 %v722_v58  ;;  %1218 = vmatpush.msra.mxu1 %v754_v59  ;;  %v664_v24 = vld [vmem:[#allocation2 + $0x6b0] sm:$0xff]  ;;  %v662_v28 = vld [vmem:[#allocation2 + $0x6a0] sm:$0xff] }
  0x55   : > { %3041 = vset.pattern.permute.xlu0 %v3679_v12  ;;  %3042 = vset.pattern.permute.xlu1 %v3679_v12  ;;  %v696_v25 = vld [vmem:[#allocation2 + $0x7b0] sm:$0xff]  ;;  %v694_v29 = vld [vmem:[#allocation2 + $0x7a0] sm:$0xff] }
  0x56   : > { %1199 = vmatpush.msra.mxu0 %v720_v60  ;;  %1219 = vmatpush.msra.mxu1 %v752_v61  ;;  %v660_v30 = vld [vmem:[#allocation2 + $0x690] sm:$0xff]  ;;  %v658_v32 = vld [vmem:[#allocation2 + $0x680] sm:$0xff] }
  0x57   : > { %3043 = vset.pattern.permute.xlu2 %v3679_v12  ;;  %1028 = vperm.xlu0 %3041, %v297_v13   ;;  %v692_v31 = vld [vmem:[#allocation2 + $0x790] sm:$0xff]  ;;  %v690_v33 = vld [vmem:[#allocation2 + $0x780] sm:$0xff] }
  0x58   : > { %1200 = vmatpush.msra.mxu0 %v718_v62  ;;  %1220 = vmatpush.msra.mxu1 %v750_v63  ;;  %v656_v34 = vld [vmem:[#allocation2 + $0x670] sm:$0xff]  ;;  %v654_v40 = vld [vmem:[#allocation2 + $0x660] sm:$0xff] }
  0x59   : > { %v688_v35 = vld [vmem:[#allocation2 + $0x770] sm:$0xff]  ;;  %v686_v41 = vld [vmem:[#allocation2 + $0x760] sm:$0xff] }
  0x5a   : > { %1201 = vmatpush.msra.mxu0 %v716_v0  ;;  %1221 = vmatpush.msra.mxu1 %v748_v1  ;;  %v864_v38 = vld [vmem:[#allocation2 + $0xcf0] sm:$0xff]  ;;  %v862_v42 = vld [vmem:[#allocation2 + $0xce0] sm:$0xff] }
  0x5b   : > { %2978 = vmatmul.msk.f32.gmra.mxu0 %vm329_vm1, %v324_v37  ;;  %2988 = vmatmul.msk.f32.gmra.mxu1 %vm329_vm1, %v324_v37  ;;  %v896_v39 = vld [vmem:[#allocation2 + $0xdf0] sm:$0xff]  ;;  %v894_v43 = vld [vmem:[#allocation2 + $0xde0] sm:$0xff] }
  0x5c   : > { %1202 = vmatpush.msra.mxu0 %v714_v2  ;;  %1222 = vmatpush.msra.mxu1 %v746_v3  ;;  %v652_v44 = vld [vmem:[#allocation2 + $0x650] sm:$0xff]  ;;  %v650_v48 = vld [vmem:[#allocation2 + $0x640] sm:$0xff] }
  0x5d   : > { %v684_v45 = vld [vmem:[#allocation2 + $0x750] sm:$0xff]  ;;  %v682_v49 = vld [vmem:[#allocation2 + $0x740] sm:$0xff] }
  0x5e   : > { %1203 = vmatpush.msra.mxu0 %v712_v4  ;;  %1223 = vmatpush.msra.mxu1 %v744_v5  ;;  %v860_v46 = vld [vmem:[#allocation2 + $0xcd0] sm:$0xff]  ;;  %v858_v50 = vld [vmem:[#allocation2 + $0xcc0] sm:$0xff] }
  0x5f   : > { %v892_v47 = vld [vmem:[#allocation2 + $0xdd0] sm:$0xff]  ;;  %v890_v51 = vld [vmem:[#allocation2 + $0xdc0] sm:$0xff] }
  0x60   : > { %1204 = vmatpush.msra.mxu0 %v710_v6  ;;  %1224 = vmatpush.msra.mxu1 %v742_v7  ;;  %v648_v52 = vld [vmem:[#allocation2 + $0x630] sm:$0xff]  ;;  %v646_v56 = vld [vmem:[#allocation2 + $0x620] sm:$0xff] }
  0x61   : > { %v680_v53 = vld [vmem:[#allocation2 + $0x730] sm:$0xff]  ;;  %v678_v57 = vld [vmem:[#allocation2 + $0x720] sm:$0xff] }
  0x62   : > { %1205 = vmatpush.msra.mxu0 %v708_v8  ;;  %1225 = vmatpush.msra.mxu1 %v740_v9  ;;  %v856_v54 = vld [vmem:[#allocation2 + $0xcb0] sm:$0xff]  ;;  %v854_v58 = vld [vmem:[#allocation2 + $0xca0] sm:$0xff] }
  0x63   : > { %v888_v55 = vld [vmem:[#allocation2 + $0xdb0] sm:$0xff]  ;;  %v886_v59 = vld [vmem:[#allocation2 + $0xda0] sm:$0xff] }
  0x64   : > { %1206 = vmatpush.msra.mxu0 %v706_v10  ;;  %1226 = vmatpush.msra.mxu1 %v738_v11  ;;  %v644_v60 = vld [vmem:[#allocation2 + $0x610] sm:$0xff]  ;;  %v642_v0 = vld [vmem:[#allocation2 + $0x600] sm:$0xff] }
  0x65   : > { %v676_v61 = vld [vmem:[#allocation2 + $0x710] sm:$0xff]  ;;  %v674_v1 = vld [vmem:[#allocation2 + $0x700] sm:$0xff] }
  0x66   : > { %v852_v62 = vld [vmem:[#allocation2 + $0xc90] sm:$0xff]  ;;  %v850_v2 = vld [vmem:[#allocation2 + $0xc80] sm:$0xff] }
  0x67   : > { %v884_v63 = vld [vmem:[#allocation2 + $0xd90] sm:$0xff]  ;;  %v882_v3 = vld [vmem:[#allocation2 + $0xd80] sm:$0xff] }
  0x68   : > { %v832_v5 = vld [vmem:[#allocation2 + $0xbf0] sm:$0xff]  ;;  %v798_v10 = vld [vmem:[#allocation2 + $0xae0] sm:$0xff] }
  0x69   : > { %v800_v6 = vld [vmem:[#allocation2 + $0xaf0] sm:$0xff]  ;;  %v830_v11 = vld [vmem:[#allocation2 + $0xbe0] sm:$0xff] }
  0x6a   : > { %v848_v7 = vld [vmem:[#allocation2 + $0xc70] sm:$0xff]  ;;  %v846_v12 = vld [vmem:[#allocation2 + $0xc60] sm:$0xff] }
  0x6b   : > { %v880_v9 = vld [vmem:[#allocation2 + $0xd70] sm:$0xff]  ;;  %v878_v13 = vld [vmem:[#allocation2 + $0xd60] sm:$0xff] }
  0x98   : > { %v3787_v16 = vpop.f32.mrf.mxu0  ;;  %v3789_v17 = vpop.f32.mrf.mxu1 }
  0x99   : > { %1047 = vmatmul.f32.vlgmr.msra.gmra.mxu2 %v3787_v16  ;;  %1067 = vmatmul.f32.vlgmr.msra.gmra.mxu3 %v3789_v17 }
  0x9a   : > { %1151 = vmatpush.msra.mxu2 %v672_v14  ;;  %1171 = vmatpush.msra.mxu3 %v704_v15  ;;  %v796_v14 = vld [vmem:[#allocation2 + $0xad0] sm:$0xff] }
  0x9b   : > { %v828_v15 = vld [vmem:[#allocation2 + $0xbd0] sm:$0xff] }
  0x9c   : > { %1152 = vmatpush.msra.mxu2 %v670_v18  ;;  %1172 = vmatpush.msra.mxu3 %v702_v19  ;;  %v844_v18 = vld [vmem:[#allocation2 + $0xc50] sm:$0xff] }
  0x9d   : > { %v876_v19 = vld [vmem:[#allocation2 + $0xd50] sm:$0xff] }
  0x9e   : > { %1153 = vmatpush.msra.mxu2 %v668_v20  ;;  %1173 = vmatpush.msra.mxu3 %v700_v21  ;;  %v794_v20 = vld [vmem:[#allocation2 + $0xac0] sm:$0xff] }
  0x9f   : > { %v826_v21 = vld [vmem:[#allocation2 + $0xbc0] sm:$0xff] }
  0xa0   : > { %1154 = vmatpush.msra.mxu2 %v666_v22  ;;  %1174 = vmatpush.msra.mxu3 %v698_v23  ;;  %v3793_v26 = vpop.f32.mrf.mxu0  ;;  %v3795_v27 = vpop.f32.mrf.mxu1  ;;  %v842_v22 = vld [vmem:[#allocation2 + $0xc40] sm:$0xff] }
  0xa1   : > { %1087 = vmatmul.f32.vlgmr.msrb.gmra.mxu2 %v3793_v26  ;;  %1107 = vmatmul.f32.vlgmr.msrb.gmra.mxu3 %v3795_v27  ;;  %v874_v23 = vld [vmem:[#allocation2 + $0xd40] sm:$0xff] }
  0xa2   : > { %1155 = vmatpush.msra.mxu2 %v664_v24  ;;  %1175 = vmatpush.msra.mxu3 %v696_v25  ;;  %v792_v24 = vld [vmem:[#allocation2 + $0xab0] sm:$0xff] }
  0xa3   : > { %v824_v25 = vld [vmem:[#allocation2 + $0xbb0] sm:$0xff] }
  0xa4   : > { %1156 = vmatpush.msra.mxu2 %v662_v28  ;;  %1176 = vmatpush.msra.mxu3 %v694_v29  ;;  %v840_v28 = vld [vmem:[#allocation2 + $0xc30] sm:$0xff] }
  0xa5   : > { %v872_v29 = vld [vmem:[#allocation2 + $0xd30] sm:$0xff] }
  0xa6   : > { %1157 = vmatpush.msra.mxu2 %v660_v30  ;;  %1177 = vmatpush.msra.mxu3 %v692_v31  ;;  %v790_v31 = vld [vmem:[#allocation2 + $0xaa0] sm:$0xff] }
  0xa8   : > { %1158 = vmatpush.msra.mxu2 %v658_v32  ;;  %1178 = vmatpush.msra.mxu3 %v690_v33  ;;  %v3799_v36 = vpop.f32.mrf.mxu0  ;;  %v3801_v37 = vpop.f32.mrf.mxu1  ;;  %v822_v32 = vld [vmem:[#allocation2 + $0xba0] sm:$0xff] }
  0xa9   : > { %1127 = vmatmul.f32.vlgmr.msrb.gmra.mxu0 %v3799_v36  ;;  %1147 = vmatmul.f32.vlgmr.msrb.gmra.mxu1 %v3801_v37  ;;  %v838_v33 = vld [vmem:[#allocation2 + $0xc20] sm:$0xff] }
  0xaa   : > { %1159 = vmatpush.msra.mxu2 %v656_v34  ;;  %1179 = vmatpush.msra.mxu3 %v688_v35  ;;  %v870_v34 = vld [vmem:[#allocation2 + $0xd20] sm:$0xff]  ;;  %v788_v35 = vld [vmem:[#allocation2 + $0xa90] sm:$0xff] }
  0xab   : > { %1271 = vmatpush.msrb.mxu0 %v864_v38  ;;  %1291 = vmatpush.msrb.mxu1 %v896_v39  ;;  %v820_v39 = vld [vmem:[#allocation2 + $0xb90] sm:$0xff] }
  0xac   : > { %1160 = vmatpush.msra.mxu2 %v654_v40  ;;  %1180 = vmatpush.msra.mxu3 %v686_v41  ;;  %v836_v40 = vld [vmem:[#allocation2 + $0xc10] sm:$0xff] }
  0xad   : > { %1272 = vmatpush.msrb.mxu0 %v862_v42  ;;  %1292 = vmatpush.msrb.mxu1 %v894_v43  ;;  %v868_v41 = vld [vmem:[#allocation2 + $0xd10] sm:$0xff]  ;;  %v786_v42 = vld [vmem:[#allocation2 + $0xa80] sm:$0xff] }
  0xae   : > { %1161 = vmatpush.msra.mxu2 %v652_v44  ;;  %1181 = vmatpush.msra.mxu3 %v684_v45  ;;  %v818_v43 = vld [vmem:[#allocation2 + $0xb80] sm:$0xff] }
  0xaf   : > { %1273 = vmatpush.msrb.mxu0 %v860_v46  ;;  %1293 = vmatpush.msrb.mxu1 %v892_v47  ;;  %v834_v44 = vld [vmem:[#allocation2 + $0xc00] sm:$0xff]  ;;  %v784_v46 = vld [vmem:[#allocation2 + $0xa70] sm:$0xff] }
  0xb0   : > { %1162 = vmatpush.msra.mxu2 %v650_v48  ;;  %1182 = vmatpush.msra.mxu3 %v682_v49  ;;  %v3805_v4 = vpop.f32.mrf.mxu0  ;;  %v3807_v8 = vpop.f32.mrf.mxu1  ;;  %v866_v45 = vld [vmem:[#allocation2 + $0xd00] sm:$0xff]  ;;  %v816_v47 = vld [vmem:[#allocation2 + $0xb70] sm:$0xff] }
  0xb1   : > { %1274 = vmatpush.msrb.mxu0 %v858_v50  ;;  %1294 = vmatpush.msrb.mxu1 %v890_v51  ;;  %v992_v48 = vld [vmem:[#allocation2 + $0x10f0] sm:$0xff]  ;;  %v782_v50 = vld [vmem:[#allocation2 + $0xa60] sm:$0xff] }
  0xb2   : > { %1163 = vmatpush.msra.mxu2 %v648_v52  ;;  %1183 = vmatpush.msra.mxu3 %v680_v53  ;;  %v1024_v49 = vld [vmem:[#allocation2 + $0x11f0] sm:$0xff]  ;;  %v814_v51 = vld [vmem:[#allocation2 + $0xb60] sm:$0xff] }
  0xb3   : > { %1275 = vmatpush.msrb.mxu0 %v856_v54  ;;  %1295 = vmatpush.msrb.mxu1 %v888_v55  ;;  %v990_v52 = vld [vmem:[#allocation2 + $0x10e0] sm:$0xff]  ;;  %v780_v54 = vld [vmem:[#allocation2 + $0xa50] sm:$0xff] }
  0xb4   : > { %1164 = vmatpush.msra.mxu2 %v646_v56  ;;  %1184 = vmatpush.msra.mxu3 %v678_v57  ;;  %v1022_v53 = vld [vmem:[#allocation2 + $0x11e0] sm:$0xff]  ;;  %v812_v55 = vld [vmem:[#allocation2 + $0xb50] sm:$0xff] }
  0xb5   : > { %1276 = vmatpush.msrb.mxu0 %v854_v58  ;;  %1296 = vmatpush.msrb.mxu1 %v886_v59  ;;  %v988_v56 = vld [vmem:[#allocation2 + $0x10d0] sm:$0xff]  ;;  %v778_v58 = vld [vmem:[#allocation2 + $0xa40] sm:$0xff] }
  0xb6   : > { %1165 = vmatpush.msra.mxu2 %v644_v60  ;;  %1185 = vmatpush.msra.mxu3 %v676_v61  ;;  %v1020_v57 = vld [vmem:[#allocation2 + $0x11d0] sm:$0xff]  ;;  %v810_v59 = vld [vmem:[#allocation2 + $0xb40] sm:$0xff] }
  0xb7   : > { %1277 = vmatpush.msrb.mxu0 %v852_v62  ;;  %1297 = vmatpush.msrb.mxu1 %v884_v63  ;;  %v986_v60 = vld [vmem:[#allocation2 + $0x10c0] sm:$0xff]  ;;  %v776_v62 = vld [vmem:[#allocation2 + $0xa30] sm:$0xff] }
  0xb8   : > { %1166 = vmatpush.msra.mxu2 %v642_v0  ;;  %1186 = vmatpush.msra.mxu3 %v674_v1  ;;  %v3811_v30 = vpop.f32.mrf.mxu0  ;;  %v3814_v38 = vpop.f32.mrf.mxu1  ;;  %v1018_v61 = vld [vmem:[#allocation2 + $0x11c0] sm:$0xff]  ;;  %v808_v63 = vld [vmem:[#allocation2 + $0xb30] sm:$0xff] }
  0xb9   : > { %1278 = vmatpush.msrb.mxu0 %v850_v2  ;;  %1298 = vmatpush.msrb.mxu1 %v882_v3  ;;  %v984_v0 = vld [vmem:[#allocation2 + $0x10b0] sm:$0xff]  ;;  %v774_v2 = vld [vmem:[#allocation2 + $0xa20] sm:$0xff] }
  0xba   : > { %1167 = vmatmul.f32.vlgmr.msra.gmra.mxu2 %v3805_v4  ;;  %1251 = vmatpush.msrb.mxu3 %v832_v5  ;;  %v1016_v1 = vld [vmem:[#allocation2 + $0x11b0] sm:$0xff]  ;;  %v806_v3 = vld [vmem:[#allocation2 + $0xb20] sm:$0xff] }
  0xbb   : > { %1231 = vmatpush.msrb.mxu2 %v800_v6  ;;  %1279 = vmatpush.msrb.mxu0 %v848_v7  ;;  %v982_v5 = vld [vmem:[#allocation2 + $0x10a0] sm:$0xff]  ;;  %v772_v7 = vld [vmem:[#allocation2 + $0xa10] sm:$0xff] }
  0xbc   : > { %1299 = vmatpush.msrb.mxu1 %v880_v9  ;;  %1187 = vmatmul.f32.vlgmr.msra.gmra.mxu3 %v3807_v8  ;;  %v1014_v6 = vld [vmem:[#allocation2 + $0x11a0] sm:$0xff]  ;;  %v804_v9 = vld [vmem:[#allocation2 + $0xb10] sm:$0xff] }
  0xbd   : > { %1232 = vmatpush.msrb.mxu2 %v798_v10  ;;  %1252 = vmatpush.msrb.mxu3 %v830_v11  ;;  %v980_v10 = vld [vmem:[#allocation2 + $0x1090] sm:$0xff] }
  0xbe   : > { %1280 = vmatpush.msrb.mxu0 %v846_v12  ;;  %1300 = vmatpush.msrb.mxu1 %v878_v13  ;;  %v1012_v11 = vld [vmem:[#allocation2 + $0x1190] sm:$0xff]  ;;  %v770_v12 = vld [vmem:[#allocation2 + $0xa00] sm:$0xff] }
  0xbf   : > { %1233 = vmatpush.msrb.mxu2 %v796_v14  ;;  %1253 = vmatpush.msrb.mxu3 %v828_v15  ;;  %v802_v13 = vld [vmem:[#allocation2 + $0xb00] sm:$0xff] }
  0xc0   : > { %1281 = vmatpush.msrb.mxu0 %v844_v18  ;;  %1301 = vmatpush.msrb.mxu1 %v876_v19  ;;  %v978_v14 = vld [vmem:[#allocation2 + $0x1080] sm:$0xff]  ;;  %v3817_v18 = vpop.f32.mrf.mxu0  ;;  %v960_v19 = vld [vmem:[#allocation2 + $0xff0] sm:$0xff] }
  0xc1   : > { %1234 = vmatpush.msrb.mxu2 %v794_v20  ;;  %1254 = vmatpush.msrb.mxu3 %v826_v21  ;;  %v1010_v15 = vld [vmem:[#allocation2 + $0x1180] sm:$0xff]  ;;  %v928_v20 = vld [vmem:[#allocation2 + $0xef0] sm:$0xff] }
  0xc2   : > { %1282 = vmatpush.msrb.mxu0 %v842_v22  ;;  %1302 = vmatpush.msrb.mxu1 %v874_v23  ;;  %v976_v21 = vld [vmem:[#allocation2 + $0x1070] sm:$0xff]  ;;  %v3819_v22 = vpop.f32.mrf.mxu1 }
  0xc3   : > { %1235 = vmatpush.msrb.mxu2 %v792_v24  ;;  %1255 = vmatpush.msrb.mxu3 %v824_v25  ;;  %v1008_v23 = vld [vmem:[#allocation2 + $0x1170] sm:$0xff]  ;;  %v926_v24 = vld [vmem:[#allocation2 + $0xee0] sm:$0xff] }
  0xc4   : > { %1283 = vmatpush.msrb.mxu0 %v840_v28  ;;  %1303 = vmatpush.msrb.mxu1 %v872_v29  ;;  %v958_v25 = vld [vmem:[#allocation2 + $0xfe0] sm:$0xff] }
  0xc5   : > { %1207 = vmatmul.f32.vlgmr.msra.gmra.mxu0 %v3811_v30  ;;  %1236 = vmatpush.msrb.mxu2 %v790_v31  ;;  %v974_v28 = vld [vmem:[#allocation2 + $0x1060] sm:$0xff]  ;;  %v924_v31 = vld [vmem:[#allocation2 + $0xed0] sm:$0xff] }
  0xc6   : > { %1256 = vmatpush.msrb.mxu3 %v822_v32  ;;  %1284 = vmatpush.msrb.mxu0 %v838_v33  ;;  %v1006_v29 = vld [vmem:[#allocation2 + $0x1160] sm:$0xff]  ;;  %v956_v32 = vld [vmem:[#allocation2 + $0xfd0] sm:$0xff] }
  0xc7   : > { %1304 = vmatpush.msrb.mxu1 %v870_v34  ;;  %1237 = vmatpush.msrb.mxu2 %v788_v35  ;;  %v972_v33 = vld [vmem:[#allocation2 + $0x1050] sm:$0xff]  ;;  %v922_v35 = vld [vmem:[#allocation2 + $0xec0] sm:$0xff] }
  0xc8   : > { %1227 = vmatmul.f32.vlgmr.msra.gmra.mxu1 %v3814_v38  ;;  %1257 = vmatpush.msrb.mxu3 %v820_v39  ;;  %v1004_v34 = vld [vmem:[#allocation2 + $0x1150] sm:$0xff]  ;;  %v954_v39 = vld [vmem:[#allocation2 + $0xfc0] sm:$0xff] }
  0xc9   : > { %1285 = vmatpush.msrb.mxu0 %v836_v40  ;;  %1305 = vmatpush.msrb.mxu1 %v868_v41  ;;  %v970_v40 = vld [vmem:[#allocation2 + $0x1040] sm:$0xff] }
  0xca   : > { %1238 = vmatpush.msrb.mxu2 %v786_v42  ;;  %1258 = vmatpush.msrb.mxu3 %v818_v43  ;;  %v1002_v41 = vld [vmem:[#allocation2 + $0x1140] sm:$0xff]  ;;  %v920_v42 = vld [vmem:[#allocation2 + $0xeb0] sm:$0xff] }
  0xcb   : > { %1286 = vmatpush.msrb.mxu0 %v834_v44  ;;  %1306 = vmatpush.msrb.mxu1 %v866_v45  ;;  %v952_v43 = vld [vmem:[#allocation2 + $0xfb0] sm:$0xff] }
  0xcc   : > { %1239 = vmatpush.msrb.mxu2 %v784_v46  ;;  %1259 = vmatpush.msrb.mxu3 %v816_v47  ;;  %v968_v44 = vld [vmem:[#allocation2 + $0x1030] sm:$0xff]  ;;  %v3823_v46 = vpop.f32.mrf.mxu0  ;;  %v918_v47 = vld [vmem:[#allocation2 + $0xea0] sm:$0xff] }
  0xcd   : > { %1351 = vmatpush.msra.mxu0 %v992_v48  ;;  %1371 = vmatpush.msra.mxu1 %v1024_v49  ;;  %v1000_v45 = vld [vmem:[#allocation2 + $0x1130] sm:$0xff]  ;;  %v950_v48 = vld [vmem:[#allocation2 + $0xfa0] sm:$0xff] }
  0xce   : > { %1240 = vmatpush.msrb.mxu2 %v782_v50  ;;  %1260 = vmatpush.msrb.mxu3 %v814_v51  ;;  %v966_v49 = vld [vmem:[#allocation2 + $0x1020] sm:$0xff]  ;;  %v916_v51 = vld [vmem:[#allocation2 + $0xe90] sm:$0xff] }
  0xcf   : > { %1352 = vmatpush.msra.mxu0 %v990_v52  ;;  %1372 = vmatpush.msra.mxu1 %v1022_v53  ;;  %v998_v50 = vld [vmem:[#allocation2 + $0x1120] sm:$0xff]  ;;  %v3826_v52 = vpop.f32.mrf.mxu1  ;;  %v948_v53 = vld [vmem:[#allocation2 + $0xf90] sm:$0xff] }
  0xd0   : > { %1241 = vmatpush.msrb.mxu2 %v780_v54  ;;  %1261 = vmatpush.msrb.mxu3 %v812_v55  ;;  %v964_v54 = vld [vmem:[#allocation2 + $0x1010] sm:$0xff] }
  0xd1   : > { %1353 = vmatpush.msra.mxu0 %v988_v56  ;;  %1373 = vmatpush.msra.mxu1 %v1020_v57  ;;  %v996_v55 = vld [vmem:[#allocation2 + $0x1110] sm:$0xff]  ;;  %v914_v56 = vld [vmem:[#allocation2 + $0xe80] sm:$0xff] }
  0xd2   : > { %1242 = vmatpush.msrb.mxu2 %v778_v58  ;;  %1262 = vmatpush.msrb.mxu3 %v810_v59  ;;  %v946_v57 = vld [vmem:[#allocation2 + $0xf80] sm:$0xff] }
  0xd3   : > { %1354 = vmatpush.msra.mxu0 %v986_v60  ;;  %1374 = vmatpush.msra.mxu1 %v1018_v61  ;;  %v962_v58 = vld [vmem:[#allocation2 + $0x1000] sm:$0xff]  ;;  %v912_v60 = vld [vmem:[#allocation2 + $0xe70] sm:$0xff] }
  0xd4   : > { %1243 = vmatpush.msrb.mxu2 %v776_v62  ;;  %1263 = vmatpush.msrb.mxu3 %v808_v63  ;;  %v994_v59 = vld [vmem:[#allocation2 + $0x1100] sm:$0xff]  ;;  %v944_v61 = vld [vmem:[#allocation2 + $0xf70] sm:$0xff]  ;;  %v545_v62 = vld [vmem:[#allocation2 + $0x2f8] sm:$0xff] }
  0xd5   : > { %1355 = vmatpush.msra.mxu0 %v984_v0  ;;  %1375 = vmatpush.msra.mxu1 %v1016_v1  ;;  %v577_v63 = vld [vmem:[#allocation2 + $0x3f8] sm:$0xff]  ;;  %v910_v0 = vld [vmem:[#allocation2 + $0xe60] sm:$0xff] }
  0xd6   : > { %1244 = vmatpush.msrb.mxu2 %v774_v2  ;;  %1264 = vmatpush.msrb.mxu3 %v806_v3  ;;  %v942_v1 = vld [vmem:[#allocation2 + $0xf60] sm:$0xff]  ;;  %v543_v2 = vld [vmem:[#allocation2 + $0x2e8] sm:$0xff] }
  0xd7   : > { %1356 = vmatpush.msra.mxu0 %v982_v5  ;;  %1376 = vmatpush.msra.mxu1 %v1014_v6  ;;  %v575_v3 = vld [vmem:[#allocation2 + $0x3e8] sm:$0xff]  ;;  %v908_v5 = vld [vmem:[#allocation2 + $0xe50] sm:$0xff] }
  0xd8   : > { %1245 = vmatpush.msrb.mxu2 %v772_v7  ;;  %1265 = vmatpush.msrb.mxu3 %v804_v9  ;;  %v940_v6 = vld [vmem:[#allocation2 + $0xf50] sm:$0xff]  ;;  %v541_v7 = vld [vmem:[#allocation2 + $0x2d8] sm:$0xff] }
  0xd9   : > { %1357 = vmatpush.msra.mxu0 %v980_v10  ;;  %1377 = vmatpush.msra.mxu1 %v1012_v11  ;;  %v573_v9 = vld [vmem:[#allocation2 + $0x3d8] sm:$0xff]  ;;  %v906_v10 = vld [vmem:[#allocation2 + $0xe40] sm:$0xff] }
  0xda   : > { %1246 = vmatpush.msrb.mxu2 %v770_v12  ;;  %1266 = vmatpush.msrb.mxu3 %v802_v13  ;;  %v938_v11 = vld [vmem:[#allocation2 + $0xf40] sm:$0xff]  ;;  %v539_v12 = vld [vmem:[#allocation2 + $0x2c8] sm:$0xff] }
  0xdb   : > { %1358 = vmatpush.msra.mxu0 %v978_v14  ;;  %1378 = vmatpush.msra.mxu1 %v1010_v15  ;;  %v571_v13 = vld [vmem:[#allocation2 + $0x3c8] sm:$0xff]  ;;  %v904_v14 = vld [vmem:[#allocation2 + $0xe30] sm:$0xff] }
  0xdc   : > { %1247 = vmatmul.f32.vlgmr.msrb.gmra.mxu2 %v3817_v18  ;;  %1331 = vmatpush.msra.mxu3 %v960_v19  ;;  %v936_v15 = vld [vmem:[#allocation2 + $0xf30] sm:$0xff]  ;;  %v537_v19 = vld [vmem:[#allocation2 + $0x2b8] sm:$0xff] }
  0xdd   : > { %1311 = vmatpush.msra.mxu2 %v928_v20  ;;  %1359 = vmatpush.msra.mxu0 %v976_v21  ;;  %v569_v20 = vld [vmem:[#allocation2 + $0x3b8] sm:$0xff]  ;;  %v902_v21 = vld [vmem:[#allocation2 + $0xe20] sm:$0xff] }
  0xde   : > { %1379 = vmatpush.msra.mxu1 %v1008_v23  ;;  %1267 = vmatmul.f32.vlgmr.msrb.gmra.mxu3 %v3819_v22  ;;  %v934_v23 = vld [vmem:[#allocation2 + $0xf20] sm:$0xff] }
  0xdf   : > { %1312 = vmatpush.msra.mxu2 %v926_v24  ;;  %1332 = vmatpush.msra.mxu3 %v958_v25  ;;  %v535_v24 = vld [vmem:[#allocation2 + $0x2a8] sm:$0xff] }
  0xe0   : > { %1360 = vmatpush.msra.mxu0 %v974_v28  ;;  %1380 = vmatpush.msra.mxu1 %v1006_v29  ;;  %v567_v25 = vld [vmem:[#allocation2 + $0x3a8] sm:$0xff]  ;;  %v900_v28 = vld [vmem:[#allocation2 + $0xe10] sm:$0xff] }
  0xe1   : > { %1313 = vmatpush.msra.mxu2 %v924_v31  ;;  %1333 = vmatpush.msra.mxu3 %v956_v32  ;;  %v932_v29 = vld [vmem:[#allocation2 + $0xf10] sm:$0xff]  ;;  %v533_v31 = vld [vmem:[#allocation2 + $0x298] sm:$0xff] }
  0xe2   : > { %1361 = vmatpush.msra.mxu0 %v972_v33  ;;  %1381 = vmatpush.msra.mxu1 %v1004_v34  ;;  %v565_v32 = vld [vmem:[#allocation2 + $0x398] sm:$0xff]  ;;  %v898_v33 = vld [vmem:[#allocation2 + $0xe00] sm:$0xff] }
  0xe3   : > { %1314 = vmatpush.msra.mxu2 %v922_v35  ;;  %1334 = vmatpush.msra.mxu3 %v954_v39  ;;  %v930_v34 = vld [vmem:[#allocation2 + $0xf00] sm:$0xff]  ;;  %v3829_v35 = vpop.f32.mrf.mxu0  ;;  %v3831_v39 = vpop.f32.mrf.mxu1 }
  0xe4   : > { %1362 = vmatpush.msra.mxu0 %v970_v40  ;;  %1382 = vmatpush.msra.mxu1 %v1002_v41  ;;  %v531_v40 = vld [vmem:[#allocation2 + $0x288] sm:$0xff] }
  0xe5   : > { %1315 = vmatpush.msra.mxu2 %v920_v42  ;;  %1335 = vmatpush.msra.mxu3 %v952_v43  ;;  %v563_v41 = vld [vmem:[#allocation2 + $0x388] sm:$0xff]  ;;  %v513_v42 = vld [vmem:[#allocation2 + $0x1f8] sm:$0xff] }
  0xe6   : > { %1363 = vmatpush.msra.mxu0 %v968_v44  ;;  %1383 = vmatpush.msra.mxu1 %v1000_v45  ;;  %v481_v43 = vld [vmem:[#allocation2 + $0xf8] sm:$0xff] }
  0xe7   : > { %1287 = vmatmul.f32.vlgmr.msrb.gmra.mxu0 %v3823_v46  ;;  %1316 = vmatpush.msra.mxu2 %v918_v47  ;;  %v529_v44 = vld [vmem:[#allocation2 + $0x278] sm:$0xff]  ;;  %v479_v47 = vld [vmem:[#allocation2 + $0xe8] sm:$0xff] }
  0xe8   : > { %1336 = vmatpush.msra.mxu3 %v950_v48  ;;  %1364 = vmatpush.msra.mxu0 %v966_v49  ;;  %v561_v45 = vld [vmem:[#allocation2 + $0x378] sm:$0xff]  ;;  %v511_v48 = vld [vmem:[#allocation2 + $0x1e8] sm:$0xff] }
  0xe9   : > { %1384 = vmatpush.msra.mxu1 %v998_v50  ;;  %1317 = vmatpush.msra.mxu2 %v916_v51  ;;  %v527_v49 = vld [vmem:[#allocation2 + $0x268] sm:$0xff]  ;;  %v477_v51 = vld [vmem:[#allocation2 + $0xd8] sm:$0xff] }
  0xea   : > { %1307 = vmatmul.f32.vlgmr.msrb.gmra.mxu1 %v3826_v52  ;;  %1337 = vmatpush.msra.mxu3 %v948_v53  ;;  %v559_v50 = vld [vmem:[#allocation2 + $0x368] sm:$0xff]  ;;  %v509_v53 = vld [vmem:[#allocation2 + $0x1d8] sm:$0xff] }
  0xeb   : > { %1365 = vmatpush.msra.mxu0 %v964_v54  ;;  %1385 = vmatpush.msra.mxu1 %v996_v55  ;;  %v525_v54 = vld [vmem:[#allocation2 + $0x258] sm:$0xff] }
  0xec   : > { %1318 = vmatpush.msra.mxu2 %v914_v56  ;;  %1338 = vmatpush.msra.mxu3 %v946_v57  ;;  %v557_v55 = vld [vmem:[#allocation2 + $0x358] sm:$0xff]  ;;  %v475_v56 = vld [vmem:[#allocation2 + $0xc8] sm:$0xff] }
  0xed   : > { %1366 = vmatpush.msra.mxu0 %v962_v58  ;;  %1386 = vmatpush.msra.mxu1 %v994_v59  ;;  %v507_v57 = vld [vmem:[#allocation2 + $0x1c8] sm:$0xff] }
  0xee   : > { %1319 = vmatpush.msra.mxu2 %v912_v60  ;;  %1339 = vmatpush.msra.mxu3 %v944_v61  ;;  %v523_v58 = vld [vmem:[#allocation2 + $0x248] sm:$0xff]  ;;  %v3835_v60 = vpop.f32.mrf.mxu0  ;;  %v3837_v61 = vpop.f32.mrf.mxu1 }
  0xef   : > { %1431 = vmatpush.msrb.mxu0 %v545_v62  ;;  %1451 = vmatpush.msrb.mxu1 %v577_v63  ;;  %v555_v59 = vld [vmem:[#allocation2 + $0x348] sm:$0xff]  ;;  %v473_v62 = vld [vmem:[#allocation2 + $0xb8] sm:$0xff] }
  0xf0   : > { %1320 = vmatpush.msra.mxu2 %v910_v0  ;;  %1340 = vmatpush.msra.mxu3 %v942_v1  ;;  %v505_v63 = vld [vmem:[#allocation2 + $0x1b8] sm:$0xff] }
  0xf1   : > { %1432 = vmatpush.msrb.mxu0 %v543_v2  ;;  %1452 = vmatpush.msrb.mxu1 %v575_v3  ;;  %v521_v0 = vld [vmem:[#allocation2 + $0x238] sm:$0xff]  ;;  %v471_v2 = vld [vmem:[#allocation2 + $0xa8] sm:$0xff] }
  0xf2   : > { %1321 = vmatpush.msra.mxu2 %v908_v5  ;;  %1341 = vmatpush.msra.mxu3 %v940_v6  ;;  %v553_v1 = vld [vmem:[#allocation2 + $0x338] sm:$0xff]  ;;  %v503_v3 = vld [vmem:[#allocation2 + $0x1a8] sm:$0xff] }
  0xf3   : > { %1433 = vmatpush.msrb.mxu0 %v541_v7  ;;  %1453 = vmatpush.msrb.mxu1 %v573_v9  ;;  %v519_v5 = vld [vmem:[#allocation2 + $0x228] sm:$0xff]  ;;  %v469_v7 = vld [vmem:[#allocation2 + $0x98] sm:$0xff] }
  0xf4   : > { %1322 = vmatpush.msra.mxu2 %v906_v10  ;;  %1342 = vmatpush.msra.mxu3 %v938_v11  ;;  %v551_v6 = vld [vmem:[#allocation2 + $0x328] sm:$0xff]  ;;  %v501_v9 = vld [vmem:[#allocation2 + $0x198] sm:$0xff] }
  0xf5   : > { %1434 = vmatpush.msrb.mxu0 %v539_v12  ;;  %1454 = vmatpush.msrb.mxu1 %v571_v13  ;;  %v517_v10 = vld [vmem:[#allocation2 + $0x218] sm:$0xff]  ;;  %v467_v12 = vld [vmem:[#allocation2 + $0x88] sm:$0xff] }
  0xf6   : > { %1323 = vmatpush.msra.mxu2 %v904_v14  ;;  %1343 = vmatpush.msra.mxu3 %v936_v15  ;;  %v549_v11 = vld [vmem:[#allocation2 + $0x318] sm:$0xff]  ;;  %v499_v13 = vld [vmem:[#allocation2 + $0x188] sm:$0xff] }
  0xf7   : > { %1435 = vmatpush.msrb.mxu0 %v537_v19  ;;  %1455 = vmatpush.msrb.mxu1 %v569_v20  ;;  %v515_v14 = vld [vmem:[#allocation2 + $0x208] sm:$0xff]  ;;  %v465_v19 = vld [vmem:[#allocation2 + $0x78] sm:$0xff] }
  0xf8   : > { %1324 = vmatpush.msra.mxu2 %v902_v21  ;;  %1344 = vmatpush.msra.mxu3 %v934_v23  ;;  %v547_v15 = vld [vmem:[#allocation2 + $0x308] sm:$0xff]  ;;  %v497_v20 = vld [vmem:[#allocation2 + $0x178] sm:$0xff] }
  0xf9   : > { %1436 = vmatpush.msrb.mxu0 %v535_v24  ;;  %1456 = vmatpush.msrb.mxu1 %v567_v25  ;;  %v673_v21 = vld [vmem:[#allocation2 + $0x6f8] sm:$0xff]  ;;  %v463_v24 = vld [vmem:[#allocation2 + $0x68] sm:$0xff] }
  0xfa   : > { %1325 = vmatpush.msra.mxu2 %v900_v28  ;;  %1345 = vmatpush.msra.mxu3 %v932_v29  ;;  %v705_v23 = vld [vmem:[#allocation2 + $0x7f8] sm:$0xff]  ;;  %v495_v25 = vld [vmem:[#allocation2 + $0x168] sm:$0xff] }
  0xfb   : > { %1437 = vmatpush.msrb.mxu0 %v533_v31  ;;  %1457 = vmatpush.msrb.mxu1 %v565_v32  ;;  %v671_v28 = vld [vmem:[#allocation2 + $0x6e8] sm:$0xff]  ;;  %v461_v31 = vld [vmem:[#allocation2 + $0x58] sm:$0xff] }
  0xfc   : > { %1326 = vmatpush.msra.mxu2 %v898_v33  ;;  %1346 = vmatpush.msra.mxu3 %v930_v34  ;;  %v703_v29 = vld [vmem:[#allocation2 + $0x7e8] sm:$0xff]  ;;  %v493_v32 = vld [vmem:[#allocation2 + $0x158] sm:$0xff] }
  0xfd   : > { %1438 = vmatpush.msrb.mxu0 %v531_v40  ;;  %1458 = vmatpush.msrb.mxu1 %v563_v41  ;;  %v669_v33 = vld [vmem:[#allocation2 + $0x6d8] sm:$0xff]  ;;  %v459_v40 = vld [vmem:[#allocation2 + $0x48] sm:$0xff] }
  0xfe   : > { %1327 = vmatmul.f32.vlgmr.msra.gmra.mxu2 %v3829_v35  ;;  %1411 = vmatpush.msrb.mxu3 %v513_v42  ;;  %v701_v34 = vld [vmem:[#allocation2 + $0x7d8] sm:$0xff]  ;;  %v491_v41 = vld [vmem:[#allocation2 + $0x148] sm:$0xff] }
  0xff   : > { %1391 = vmatpush.msrb.mxu2 %v481_v43  ;;  %1439 = vmatpush.msrb.mxu0 %v529_v44  ;;  %v667_v42 = vld [vmem:[#allocation2 + $0x6c8] sm:$0xff]  ;;  %v489_v43 = vld [vmem:[#allocation2 + $0x138] sm:$0xff] }
 0x100   : > { %1459 = vmatpush.msrb.mxu1 %v561_v45  ;;  %1347 = vmatmul.f32.vlgmr.msra.gmra.mxu3 %v3831_v39  ;;  %v665_v44 = vld [vmem:[#allocation2 + $0x6b8] sm:$0xff] }
 0x101   : > { %1392 = vmatpush.msrb.mxu2 %v479_v47  ;;  %1412 = vmatpush.msrb.mxu3 %v511_v48  ;;  %v697_v45 = vld [vmem:[#allocation2 + $0x7b8] sm:$0xff]  ;;  %v455_v47 = vld [vmem:[#allocation2 + $0x28] sm:$0xff] }
 0x102   : > { %1440 = vmatpush.msrb.mxu0 %v527_v49  ;;  %1460 = vmatpush.msrb.mxu1 %v559_v50  ;;  %v487_v48 = vld [vmem:[#allocation2 + $0x128] sm:$0xff] }
 0x103   : > { %1393 = vmatpush.msrb.mxu2 %v477_v51  ;;  %1413 = vmatpush.msrb.mxu3 %v509_v53  ;;  %v663_v49 = vld [vmem:[#allocation2 + $0x6a8] sm:$0xff]  ;;  %v453_v51 = vld [vmem:[#allocation2 + $0x18] sm:$0xff] }
 0x104   : > { %1441 = vmatpush.msrb.mxu0 %v525_v54  ;;  %1461 = vmatpush.msrb.mxu1 %v557_v55  ;;  %v695_v50 = vld [vmem:[#allocation2 + $0x7a8] sm:$0xff]  ;;  %v485_v53 = vld [vmem:[#allocation2 + $0x118] sm:$0xff] }
 0x105   : > { %1394 = vmatpush.msrb.mxu2 %v475_v56  ;;  %1414 = vmatpush.msrb.mxu3 %v507_v57  ;;  %v661_v54 = vld [vmem:[#allocation2 + $0x698] sm:$0xff]  ;;  %v451_v56 = vld [vmem:[#allocation2 + $0x8] sm:$0xff] }
 0x106   : > { %1442 = vmatpush.msrb.mxu0 %v523_v58  ;;  %1462 = vmatpush.msrb.mxu1 %v555_v59  ;;  %v693_v55 = vld [vmem:[#allocation2 + $0x798] sm:$0xff]  ;;  %v483_v57 = vld [vmem:[#allocation2 + $0x108] sm:$0xff] }
 0x107   : > { %1367 = vmatmul.f32.vlgmr.msra.gmra.mxu0 %v3835_v60  ;;  %1387 = vmatmul.f32.vlgmr.msra.gmra.mxu1 %v3837_v61  ;;  %v659_v58 = vld [vmem:[#allocation2 + $0x688] sm:$0xff] }
 0x108   : > { %1395 = vmatpush.msrb.mxu2 %v473_v62  ;;  %1415 = vmatpush.msrb.mxu3 %v505_v63  ;;  %v691_v59 = vld [vmem:[#allocation2 + $0x788] sm:$0xff]  ;;  %v609_v62 = vld [vmem:[#allocation2 + $0x4f8] sm:$0xff] }
 0x109   : > { %1443 = vmatpush.msrb.mxu0 %v521_v0  ;;  %1463 = vmatpush.msrb.mxu1 %v553_v1  ;;  %v641_v63 = vld [vmem:[#allocation2 + $0x5f8] sm:$0xff] }
 0x10a   : > { %1396 = vmatpush.msrb.mxu2 %v471_v2  ;;  %1416 = vmatpush.msrb.mxu3 %v503_v3  ;;  %v657_v0 = vld [vmem:[#allocation2 + $0x678] sm:$0xff]  ;;  %v607_v2 = vld [vmem:[#allocation2 + $0x4e8] sm:$0xff] }
 0x10b   : > { %1444 = vmatpush.msrb.mxu0 %v519_v5  ;;  %1464 = vmatpush.msrb.mxu1 %v551_v6  ;;  %v689_v1 = vld [vmem:[#allocation2 + $0x778] sm:$0xff]  ;;  %v639_v3 = vld [vmem:[#allocation2 + $0x5e8] sm:$0xff] }
 0x10c   : > { %1397 = vmatpush.msrb.mxu2 %v469_v7  ;;  %1417 = vmatpush.msrb.mxu3 %v501_v9  ;;  %v655_v5 = vld [vmem:[#allocation2 + $0x668] sm:$0xff]  ;;  %v605_v7 = vld [vmem:[#allocation2 + $0x4d8] sm:$0xff] }
 0x10d   : > { %1445 = vmatpush.msrb.mxu0 %v517_v10  ;;  %1465 = vmatpush.msrb.mxu1 %v549_v11  ;;  %v687_v6 = vld [vmem:[#allocation2 + $0x768] sm:$0xff]  ;;  %v637_v9 = vld [vmem:[#allocation2 + $0x5d8] sm:$0xff] }
 0x10e   : > { %1398 = vmatpush.msrb.mxu2 %v467_v12  ;;  %1418 = vmatpush.msrb.mxu3 %v499_v13  ;;  %v653_v10 = vld [vmem:[#allocation2 + $0x658] sm:$0xff]  ;;  %v603_v12 = vld [vmem:[#allocation2 + $0x4c8] sm:$0xff] }
 0x10f   : > { %1446 = vmatpush.msrb.mxu0 %v515_v14  ;;  %1466 = vmatpush.msrb.mxu1 %v547_v15  ;;  %v685_v11 = vld [vmem:[#allocation2 + $0x758] sm:$0xff]  ;;  %v683_v13 = vld [vmem:[#allocation2 + $0x748] sm:$0xff] }
 0x110   : > { %1399 = vmatpush.msrb.mxu2 %v465_v19  ;;  %1419 = vmatpush.msrb.mxu3 %v497_v20  ;;  %v601_v14 = vld [vmem:[#allocation2 + $0x4b8] sm:$0xff] }
 0x111   : > { %1447 = vmatmul.f32.vlgmr.msrb.gmra.mxu0 %v3793_v26  ;;  %1467 = vmatmul.f32.vlgmr.msrb.gmra.mxu1 %v3795_v27  ;;  %v699_v26 = vld [vmem:[#allocation2 + $0x7c8] sm:$0xff]  ;;  %v457_v27 = vld [vmem:[#allocation2 + $0x38] sm:$0xff] }
 0x112   : > { %1511 = vmatpush.msra.mxu0 %v673_v21  ;;  %1531 = vmatpush.msra.mxu1 %v705_v23  ;;  %v633_v15 = vld [vmem:[#allocation2 + $0x5b8] sm:$0xff]  ;;  %v599_v21 = vld [vmem:[#allocation2 + $0x4a8] sm:$0xff] }
 0x113   : > { %1400 = vmatpush.msrb.mxu2 %v463_v24  ;;  %1420 = vmatpush.msrb.mxu3 %v495_v25  ;;  %v649_v19 = vld [vmem:[#allocation2 + $0x638] sm:$0xff]  ;;  %v631_v23 = vld [vmem:[#allocation2 + $0x5a8] sm:$0xff] }
 0x114   : > { %1512 = vmatpush.msra.mxu0 %v671_v28  ;;  %1532 = vmatpush.msra.mxu1 %v703_v29  ;;  %v681_v20 = vld [vmem:[#allocation2 + $0x738] sm:$0xff]  ;;  %v647_v24 = vld [vmem:[#allocation2 + $0x628] sm:$0xff] }
 0x115   : > { %1401 = vmatpush.msrb.mxu2 %v461_v31  ;;  %1421 = vmatpush.msrb.mxu3 %v493_v32  ;;  %v679_v25 = vld [vmem:[#allocation2 + $0x728] sm:$0xff]  ;;  %v597_v28 = vld [vmem:[#allocation2 + $0x498] sm:$0xff] }
 0x116   : > { %1513 = vmatpush.msra.mxu0 %v669_v33  ;;  %1533 = vmatpush.msra.mxu1 %v701_v34  ;;  %v629_v29 = vld [vmem:[#allocation2 + $0x598] sm:$0xff]  ;;  %v595_v33 = vld [vmem:[#allocation2 + $0x488] sm:$0xff] }
 0x117   : > { %1402 = vmatpush.msrb.mxu2 %v459_v40  ;;  %1422 = vmatpush.msrb.mxu3 %v491_v41  ;;  %v645_v31 = vld [vmem:[#allocation2 + $0x618] sm:$0xff]  ;;  %v627_v34 = vld [vmem:[#allocation2 + $0x588] sm:$0xff] }
 0x118   : > { %1514 = vmatpush.msra.mxu0 %v667_v42  ;;  %1534 = vmatpush.msra.mxu1 %v699_v26  ;;  %v677_v32 = vld [vmem:[#allocation2 + $0x718] sm:$0xff]  ;;  %v643_v40 = vld [vmem:[#allocation2 + $0x608] sm:$0xff] }
 0x119   : > { %1403 = vmatpush.msrb.mxu2 %v457_v27  ;;  %1423 = vmatpush.msrb.mxu3 %v489_v43  ;;  %v675_v41 = vld [vmem:[#allocation2 + $0x708] sm:$0xff]  ;;  %v593_v42 = vld [vmem:[#allocation2 + $0x478] sm:$0xff] }
 0x11a   : > { %1515 = vmatpush.msra.mxu0 %v665_v44  ;;  %1535 = vmatpush.msra.mxu1 %v697_v45  ;;  %v625_v26 = vld [vmem:[#allocation2 + $0x578] sm:$0xff]  ;;  %v591_v44 = vld [vmem:[#allocation2 + $0x468] sm:$0xff] }
 0x11b   : > { %1404 = vmatpush.msrb.mxu2 %v455_v47  ;;  %1424 = vmatpush.msrb.mxu3 %v487_v48  ;;  %v801_v27 = vld [vmem:[#allocation2 + $0xaf8] sm:$0xff]  ;;  %v623_v45 = vld [vmem:[#allocation2 + $0x568] sm:$0xff] }
 0x11c   : > { %1516 = vmatpush.msra.mxu0 %v663_v49  ;;  %1536 = vmatpush.msra.mxu1 %v695_v50  ;;  %v833_v43 = vld [vmem:[#allocation2 + $0xbf8] sm:$0xff]  ;;  %v799_v47 = vld [vmem:[#allocation2 + $0xae8] sm:$0xff] }
 0x11d   : > { %1405 = vmatpush.msrb.mxu2 %v453_v51  ;;  %1425 = vmatpush.msrb.mxu3 %v485_v53  ;;  %v831_v48 = vld [vmem:[#allocation2 + $0xbe8] sm:$0xff]  ;;  %v589_v49 = vld [vmem:[#allocation2 + $0x458] sm:$0xff] }
 0x11e   : > { %1517 = vmatpush.msra.mxu0 %v661_v54  ;;  %1537 = vmatpush.msra.mxu1 %v693_v55  ;;  %v621_v50 = vld [vmem:[#allocation2 + $0x558] sm:$0xff]  ;;  %v587_v54 = vld [vmem:[#allocation2 + $0x448] sm:$0xff] }
 0x11f   : > { %1406 = vmatpush.msrb.mxu2 %v451_v56  ;;  %1426 = vmatpush.msrb.mxu3 %v483_v57  ;;  %v797_v51 = vld [vmem:[#allocation2 + $0xad8] sm:$0xff]  ;;  %v619_v55 = vld [vmem:[#allocation2 + $0x548] sm:$0xff] }
 0x120   : > { %1518 = vmatpush.msra.mxu0 %v659_v58  ;;  %1538 = vmatpush.msra.mxu1 %v691_v59  ;;  %v829_v53 = vld [vmem:[#allocation2 + $0xbd8] sm:$0xff]  ;;  %v795_v56 = vld [vmem:[#allocation2 + $0xac8] sm:$0xff] }
 0x121   : > { %1407 = vmatmul.f32.vlgmr.msrb.gmra.mxu2 %v3787_v16  ;;  %1427 = vmatmul.f32.vlgmr.msrb.gmra.mxu3 %v3789_v17  ;;  %v635_v16 = vld [vmem:[#allocation2 + $0x5c8] sm:$0xff]  ;;  %v617_v57 = vld [vmem:[#allocation2 + $0x538] sm:$0xff] }
 0x122   : > { %1471 = vmatpush.msra.mxu2 %v609_v62  ;;  %1491 = vmatpush.msra.mxu3 %v641_v63  ;;  %v651_v17 = vld [vmem:[#allocation2 + $0x648] sm:$0xff]  ;;  %v793_v58 = vld [vmem:[#allocation2 + $0xab8] sm:$0xff] }
 0x123   : > { %1519 = vmatpush.msra.mxu0 %v657_v0  ;;  %1539 = vmatpush.msra.mxu1 %v689_v1  ;;  %v825_v59 = vld [vmem:[#allocation2 + $0xbb8] sm:$0xff]  ;;  %v583_v62 = vld [vmem:[#allocation2 + $0x428] sm:$0xff] }
 0x124   : > { %1472 = vmatpush.msra.mxu2 %v607_v2  ;;  %1492 = vmatpush.msra.mxu3 %v639_v3  ;;  %v615_v63 = vld [vmem:[#allocation2 + $0x528] sm:$0xff]  ;;  %v581_v2 = vld [vmem:[#allocation2 + $0x418] sm:$0xff] }
 0x125   : > { %1520 = vmatpush.msra.mxu0 %v655_v5  ;;  %1540 = vmatpush.msra.mxu1 %v687_v6  ;;  %v791_v0 = vld [vmem:[#allocation2 + $0xaa8] sm:$0xff]  ;;  %v613_v3 = vld [vmem:[#allocation2 + $0x518] sm:$0xff] }
 0x126   : > { %1473 = vmatpush.msra.mxu2 %v605_v7  ;;  %1493 = vmatpush.msra.mxu3 %v637_v9  ;;  %v823_v1 = vld [vmem:[#allocation2 + $0xba8] sm:$0xff]  ;;  %v789_v5 = vld [vmem:[#allocation2 + $0xa98] sm:$0xff] }
 0x127   : > { %1521 = vmatpush.msra.mxu0 %v653_v10  ;;  %1541 = vmatpush.msra.mxu1 %v685_v11  ;;  %v821_v6 = vld [vmem:[#allocation2 + $0xb98] sm:$0xff]  ;;  %v579_v7 = vld [vmem:[#allocation2 + $0x408] sm:$0xff] }
 0x128   : > { %1474 = vmatpush.msra.mxu2 %v603_v12  ;;  %1494 = vmatpush.msra.mxu3 %v635_v16  ;;  %v611_v9 = vld [vmem:[#allocation2 + $0x508] sm:$0xff]  ;;  %v737_v12 = vld [vmem:[#allocation2 + $0x8f8] sm:$0xff] }
 0x129   : > { %1522 = vmatpush.msra.mxu0 %v651_v17  ;;  %1542 = vmatpush.msra.mxu1 %v683_v13  ;;  %v787_v10 = vld [vmem:[#allocation2 + $0xa88] sm:$0xff]  ;;  %v769_v16 = vld [vmem:[#allocation2 + $0x9f8] sm:$0xff] }
 0x12a   : > { %1475 = vmatpush.msra.mxu2 %v601_v14  ;;  %1495 = vmatpush.msra.mxu3 %v633_v15  ;;  %v819_v11 = vld [vmem:[#allocation2 + $0xb88] sm:$0xff]  ;;  %v785_v17 = vld [vmem:[#allocation2 + $0xa78] sm:$0xff] }
 0x12b   : > { %1523 = vmatpush.msra.mxu0 %v649_v19  ;;  %1543 = vmatpush.msra.mxu1 %v681_v20  ;;  %v817_v13 = vld [vmem:[#allocation2 + $0xb78] sm:$0xff]  ;;  %v735_v14 = vld [vmem:[#allocation2 + $0x8e8] sm:$0xff] }
 0x12c   : > { %1476 = vmatpush.msra.mxu2 %v599_v21  ;;  %1496 = vmatpush.msra.mxu3 %v631_v23  ;;  %v767_v15 = vld [vmem:[#allocation2 + $0x9e8] sm:$0xff]  ;;  %v733_v21 = vld [vmem:[#allocation2 + $0x8d8] sm:$0xff] }
 0x12d   : > { %1524 = vmatpush.msra.mxu0 %v647_v24  ;;  %1544 = vmatpush.msra.mxu1 %v679_v25  ;;  %v783_v19 = vld [vmem:[#allocation2 + $0xa68] sm:$0xff]  ;;  %v765_v23 = vld [vmem:[#allocation2 + $0x9d8] sm:$0xff] }
 0x12e   : > { %1477 = vmatpush.msra.mxu2 %v597_v28  ;;  %1497 = vmatpush.msra.mxu3 %v629_v29  ;;  %v815_v20 = vld [vmem:[#allocation2 + $0xb68] sm:$0xff]  ;;  %v781_v24 = vld [vmem:[#allocation2 + $0xa58] sm:$0xff] }
 0x12f   : > { %1525 = vmatpush.msra.mxu0 %v645_v31  ;;  %1545 = vmatpush.msra.mxu1 %v677_v32  ;;  %v813_v25 = vld [vmem:[#allocation2 + $0xb58] sm:$0xff]  ;;  %v731_v28 = vld [vmem:[#allocation2 + $0x8c8] sm:$0xff] }
 0x130   : > { %1478 = vmatpush.msra.mxu2 %v595_v33  ;;  %1498 = vmatpush.msra.mxu3 %v627_v34  ;;  %v811_v29 = vld [vmem:[#allocation2 + $0xb48] sm:$0xff]  ;;  %v729_v31 = vld [vmem:[#allocation2 + $0x8b8] sm:$0xff] }
 0x131   : > { %1526 = vmatpush.msra.mxu0 %v643_v40  ;;  %1546 = vmatpush.msra.mxu1 %v675_v41  ;;  %v761_v32 = vld [vmem:[#allocation2 + $0x9b8] sm:$0xff]  ;;  %v727_v40 = vld [vmem:[#allocation2 + $0x8a8] sm:$0xff] }
 0x132   : > { %1479 = vmatpush.msra.mxu2 %v593_v42  ;;  %1499 = vmatpush.msra.mxu3 %v625_v26  ;;  %v777_v33 = vld [vmem:[#allocation2 + $0xa38] sm:$0xff]  ;;  %v759_v41 = vld [vmem:[#allocation2 + $0x9a8] sm:$0xff] }
 0x133   : > { %1527 = vmatmul.f32.vlgmr.msra.gmra.mxu0 %v3805_v4  ;;  %1547 = vmatmul.f32.vlgmr.msra.gmra.mxu1 %v3807_v8  ;;  %v827_v4 = vld [vmem:[#allocation2 + $0xbc8] sm:$0xff]  ;;  %v585_v8 = vld [vmem:[#allocation2 + $0x438] sm:$0xff] }
 0x134   : > { %1591 = vmatpush.msrb.mxu0 %v801_v27  ;;  %1611 = vmatpush.msrb.mxu1 %v833_v43  ;;  %v809_v34 = vld [vmem:[#allocation2 + $0xb38] sm:$0xff]  ;;  %v775_v42 = vld [vmem:[#allocation2 + $0xa28] sm:$0xff] }
 0x135   : > { %1480 = vmatpush.msra.mxu2 %v591_v44  ;;  %1500 = vmatpush.msra.mxu3 %v623_v45  ;;  %v807_v26 = vld [vmem:[#allocation2 + $0xb28] sm:$0xff]  ;;  %v725_v27 = vld [vmem:[#allocation2 + $0x898] sm:$0xff] }
 0x136   : > { %1592 = vmatpush.msrb.mxu0 %v799_v47  ;;  %1612 = vmatpush.msrb.mxu1 %v831_v48  ;;  %v757_v43 = vld [vmem:[#allocation2 + $0x998] sm:$0xff]  ;;  %v723_v47 = vld [vmem:[#allocation2 + $0x888] sm:$0xff] }
 0x137   : > { %1481 = vmatpush.msra.mxu2 %v589_v49  ;;  %1501 = vmatpush.msra.mxu3 %v621_v50  ;;  %v773_v44 = vld [vmem:[#allocation2 + $0xa18] sm:$0xff]  ;;  %v755_v48 = vld [vmem:[#allocation2 + $0x988] sm:$0xff] }
 0x138   : > { %1593 = vmatpush.msrb.mxu0 %v797_v51  ;;  %1613 = vmatpush.msrb.mxu1 %v829_v53  ;;  %v805_v45 = vld [vmem:[#allocation2 + $0xb18] sm:$0xff]  ;;  %v771_v49 = vld [vmem:[#allocation2 + $0xa08] sm:$0xff] }
 0x139   : > { %1482 = vmatpush.msra.mxu2 %v587_v54  ;;  %1502 = vmatpush.msra.mxu3 %v619_v55  ;;  %v803_v50 = vld [vmem:[#allocation2 + $0xb08] sm:$0xff]  ;;  %v721_v51 = vld [vmem:[#allocation2 + $0x878] sm:$0xff] }
 0x13a   : > { %1594 = vmatpush.msrb.mxu0 %v795_v56  ;;  %1614 = vmatpush.msrb.mxu1 %v827_v4  ;;  %v753_v53 = vld [vmem:[#allocation2 + $0x978] sm:$0xff]  ;;  %v719_v56 = vld [vmem:[#allocation2 + $0x868] sm:$0xff] }
 0x13b   : > { %1483 = vmatpush.msra.mxu2 %v585_v8  ;;  %1503 = vmatpush.msra.mxu3 %v617_v57  ;;  %v929_v54 = vld [vmem:[#allocation2 + $0xef8] sm:$0xff]  ;;  %v751_v4 = vld [vmem:[#allocation2 + $0x968] sm:$0xff] }
 0x13c   : > { %1595 = vmatpush.msrb.mxu0 %v793_v58  ;;  %1615 = vmatpush.msrb.mxu1 %v825_v59  ;;  %v961_v55 = vld [vmem:[#allocation2 + $0xff8] sm:$0xff]  ;;  %v927_v8 = vld [vmem:[#allocation2 + $0xee8] sm:$0xff] }
 0x13d   : > { %1484 = vmatpush.msra.mxu2 %v583_v62  ;;  %1504 = vmatpush.msra.mxu3 %v615_v63  ;;  %v959_v57 = vld [vmem:[#allocation2 + $0xfe8] sm:$0xff]  ;;  %v717_v58 = vld [vmem:[#allocation2 + $0x858] sm:$0xff] }
 0x13e   : > { %1596 = vmatpush.msrb.mxu0 %v791_v0  ;;  %1616 = vmatpush.msrb.mxu1 %v823_v1  ;;  %v749_v59 = vld [vmem:[#allocation2 + $0x958] sm:$0xff]  ;;  %v715_v0 = vld [vmem:[#allocation2 + $0x848] sm:$0xff] }
 0x13f   : > { %1485 = vmatpush.msra.mxu2 %v581_v2  ;;  %1505 = vmatpush.msra.mxu3 %v613_v3  ;;  %v925_v62 = vld [vmem:[#allocation2 + $0xed8] sm:$0xff]  ;;  %v747_v1 = vld [vmem:[#allocation2 + $0x948] sm:$0xff] }
 0x140   : > { %1597 = vmatpush.msrb.mxu0 %v789_v5  ;;  %1617 = vmatpush.msrb.mxu1 %v821_v6  ;;  %v957_v63 = vld [vmem:[#allocation2 + $0xfd8] sm:$0xff]  ;;  %v923_v2 = vld [vmem:[#allocation2 + $0xec8] sm:$0xff] }
 0x141   : > { %1486 = vmatpush.msra.mxu2 %v579_v7  ;;  %1506 = vmatpush.msra.mxu3 %v611_v9  ;;  %v745_v3 = vld [vmem:[#allocation2 + $0x938] sm:$0xff]  ;;  %v711_v7 = vld [vmem:[#allocation2 + $0x828] sm:$0xff] }
 0x142   : > { %1598 = vmatpush.msrb.mxu0 %v787_v10  ;;  %1618 = vmatpush.msrb.mxu1 %v819_v11  ;;  %v921_v5 = vld [vmem:[#allocation2 + $0xeb8] sm:$0xff]  ;;  %v743_v9 = vld [vmem:[#allocation2 + $0x928] sm:$0xff] }
 0x143   : > { %1487 = vmatmul.f32.vlgmr.msra.gmra.mxu2 %v3799_v36  ;;  %1507 = vmatmul.f32.vlgmr.msra.gmra.mxu3 %v3801_v37  ;;  %v763_v36 = vld [vmem:[#allocation2 + $0x9c8] sm:$0xff]  ;;  %v953_v6 = vld [vmem:[#allocation2 + $0xfb8] sm:$0xff] }
 0x144   : > { %1551 = vmatpush.msrb.mxu2 %v737_v12  ;;  %1571 = vmatpush.msrb.mxu3 %v769_v16  ;;  %v779_v37 = vld [vmem:[#allocation2 + $0xa48] sm:$0xff]  ;;  %v709_v12 = vld [vmem:[#allocation2 + $0x818] sm:$0xff] }
 0x145   : > { %1599 = vmatpush.msrb.mxu0 %v785_v17  ;;  %1619 = vmatpush.msrb.mxu1 %v817_v13  ;;  %v919_v10 = vld [vmem:[#allocation2 + $0xea8] sm:$0xff]  ;;  %v741_v16 = vld [vmem:[#allocation2 + $0x918] sm:$0xff] }
 0x146   : > { %1552 = vmatpush.msrb.mxu2 %v735_v14  ;;  %1572 = vmatpush.msrb.mxu3 %v767_v15  ;;  %v951_v11 = vld [vmem:[#allocation2 + $0xfa8] sm:$0xff]  ;;  %v917_v17 = vld [vmem:[#allocation2 + $0xe98] sm:$0xff] }
 0x147   : > { %1600 = vmatpush.msrb.mxu0 %v783_v19  ;;  %1620 = vmatpush.msrb.mxu1 %v815_v20  ;;  %v949_v13 = vld [vmem:[#allocation2 + $0xf98] sm:$0xff]  ;;  %v707_v14 = vld [vmem:[#allocation2 + $0x808] sm:$0xff] }
 0x148   : > { %1553 = vmatpush.msrb.mxu2 %v733_v21  ;;  %1573 = vmatpush.msrb.mxu3 %v765_v23  ;;  %v739_v15 = vld [vmem:[#allocation2 + $0x908] sm:$0xff]  ;;  %v865_v21 = vld [vmem:[#allocation2 + $0xcf8] sm:$0xff] }
 0x149   : > { %1601 = vmatpush.msrb.mxu0 %v781_v24  ;;  %1621 = vmatpush.msrb.mxu1 %v813_v25  ;;  %v915_v19 = vld [vmem:[#allocation2 + $0xe88] sm:$0xff]  ;;  %v897_v23 = vld [vmem:[#allocation2 + $0xdf8] sm:$0xff] }
 0x14a   : > { %1554 = vmatpush.msrb.mxu2 %v731_v28  ;;  %1574 = vmatpush.msrb.mxu3 %v763_v36  ;;  %v947_v20 = vld [vmem:[#allocation2 + $0xf88] sm:$0xff]  ;;  %v913_v24 = vld [vmem:[#allocation2 + $0xe78] sm:$0xff] }
 0x14b   : > { %1602 = vmatpush.msrb.mxu0 %v779_v37  ;;  %1622 = vmatpush.msrb.mxu1 %v811_v29  ;;  %v945_v25 = vld [vmem:[#allocation2 + $0xf78] sm:$0xff]  ;;  %v863_v28 = vld [vmem:[#allocation2 + $0xce8] sm:$0xff] }
 0x14c   : > { %1555 = vmatpush.msrb.mxu2 %v729_v31  ;;  %1575 = vmatpush.msrb.mxu3 %v761_v32  ;;  %v895_v36 = vld [vmem:[#allocation2 + $0xde8] sm:$0xff]  ;;  %v861_v31 = vld [vmem:[#allocation2 + $0xcd8] sm:$0xff] }
 0x14d   : > { %1603 = vmatpush.msrb.mxu0 %v777_v33  ;;  %1623 = vmatpush.msrb.mxu1 %v809_v34  ;;  %v911_v37 = vld [vmem:[#allocation2 + $0xe68] sm:$0xff]  ;;  %v893_v32 = vld [vmem:[#allocation2 + $0xdd8] sm:$0xff] }
 0x14e   : > { %1556 = vmatpush.msrb.mxu2 %v727_v40  ;;  %1576 = vmatpush.msrb.mxu3 %v759_v41  ;;  %v943_v29 = vld [vmem:[#allocation2 + $0xf68] sm:$0xff]  ;;  %v909_v33 = vld [vmem:[#allocation2 + $0xe58] sm:$0xff] }
 0x14f   : > { %1604 = vmatpush.msrb.mxu0 %v775_v42  ;;  %1624 = vmatpush.msrb.mxu1 %v807_v26  ;;  %v941_v34 = vld [vmem:[#allocation2 + $0xf58] sm:$0xff]  ;;  %v859_v40 = vld [vmem:[#allocation2 + $0xcc8] sm:$0xff] }
 0x150   : > { %1557 = vmatpush.msrb.mxu2 %v725_v27  ;;  %1577 = vmatpush.msrb.mxu3 %v757_v43  ;;  %v939_v41 = vld [vmem:[#allocation2 + $0xf48] sm:$0xff]  ;;  %v857_v42 = vld [vmem:[#allocation2 + $0xcb8] sm:$0xff] }
 0x151   : > { %1605 = vmatpush.msrb.mxu0 %v773_v44  ;;  %1625 = vmatpush.msrb.mxu1 %v805_v45  ;;  %v889_v26 = vld [vmem:[#allocation2 + $0xdb8] sm:$0xff]  ;;  %v855_v44 = vld [vmem:[#allocation2 + $0xca8] sm:$0xff] }
 0x152   : > { %1558 = vmatpush.msrb.mxu2 %v723_v47  ;;  %1578 = vmatpush.msrb.mxu3 %v755_v48  ;;  %v905_v27 = vld [vmem:[#allocation2 + $0xe38] sm:$0xff]  ;;  %v887_v45 = vld [vmem:[#allocation2 + $0xda8] sm:$0xff] }
 0x153   : > { %1606 = vmatpush.msrb.mxu0 %v771_v49  ;;  %1626 = vmatpush.msrb.mxu1 %v803_v50  ;;  %v937_v43 = vld [vmem:[#allocation2 + $0xf38] sm:$0xff]  ;;  %v903_v47 = vld [vmem:[#allocation2 + $0xe28] sm:$0xff] }
 0x154   : > { %1559 = vmatpush.msrb.mxu2 %v721_v51  ;;  %1579 = vmatpush.msrb.mxu3 %v753_v53  ;;  %v935_v48 = vld [vmem:[#allocation2 + $0xf28] sm:$0xff]  ;;  %v853_v49 = vld [vmem:[#allocation2 + $0xc98] sm:$0xff] }
 0x155   : > { %1607 = vmatmul.f32.vlgmr.msrb.gmra.mxu0 %v3817_v18  ;;  %1627 = vmatmul.f32.vlgmr.msrb.gmra.mxu1 %v3819_v22  ;;  %v955_v18 = vld [vmem:[#allocation2 + $0xfc8] sm:$0xff]  ;;  %v713_v22 = vld [vmem:[#allocation2 + $0x838] sm:$0xff] }
 0x156   : > { %1671 = vmatpush.msra.mxu0 %v929_v54  ;;  %1691 = vmatpush.msra.mxu1 %v961_v55  ;;  %v885_v50 = vld [vmem:[#allocation2 + $0xd98] sm:$0xff]  ;;  %v851_v54 = vld [vmem:[#allocation2 + $0xc88] sm:$0xff] }
 0x157   : > { %1560 = vmatpush.msrb.mxu2 %v719_v56  ;;  %1580 = vmatpush.msrb.mxu3 %v751_v4  ;;  %v901_v51 = vld [vmem:[#allocation2 + $0xe18] sm:$0xff]  ;;  %v883_v55 = vld [vmem:[#allocation2 + $0xd88] sm:$0xff] }
 0x158   : > { %1672 = vmatpush.msra.mxu0 %v927_v8  ;;  %1692 = vmatpush.msra.mxu1 %v959_v57  ;;  %v933_v53 = vld [vmem:[#allocation2 + $0xf18] sm:$0xff]  ;;  %v899_v56 = vld [vmem:[#allocation2 + $0xe08] sm:$0xff] }
 0x159   : > { %1561 = vmatpush.msrb.mxu2 %v717_v58  ;;  %1581 = vmatpush.msrb.mxu3 %v749_v59  ;;  %v931_v4 = vld [vmem:[#allocation2 + $0xf08] sm:$0xff]  ;;  %v849_v8 = vld [vmem:[#allocation2 + $0xc78] sm:$0xff] }
 0x15a   : > { %1673 = vmatpush.msra.mxu0 %v925_v62  ;;  %1693 = vmatpush.msra.mxu1 %v957_v63  ;;  %v881_v57 = vld [vmem:[#allocation2 + $0xd78] sm:$0xff]  ;;  %v847_v58 = vld [vmem:[#allocation2 + $0xc68] sm:$0xff] }
 0x15b   : > { %1562 = vmatpush.msrb.mxu2 %v715_v0  ;;  %1582 = vmatpush.msrb.mxu3 %v747_v1  ;;  %v879_v59 = vld [vmem:[#allocation2 + $0xd68] sm:$0xff]  ;;  %v845_v62 = vld [vmem:[#allocation2 + $0xc58] sm:$0xff] }
 0x15c   : > { %1674 = vmatpush.msra.mxu0 %v923_v2  ;;  %1694 = vmatpush.msra.mxu1 %v955_v18  ;;  %v877_v63 = vld [vmem:[#allocation2 + $0xd58] sm:$0xff]  ;;  %v843_v0 = vld [vmem:[#allocation2 + $0xc48] sm:$0xff] }
 0x15d   : > { %1563 = vmatpush.msrb.mxu2 %v713_v22  ;;  %1583 = vmatpush.msrb.mxu3 %v745_v3  ;;  %v875_v1 = vld [vmem:[#allocation2 + $0xd48] sm:$0xff]  ;;  %v841_v2 = vld [vmem:[#allocation2 + $0xc38] sm:$0xff] }
 0x15e   : > { %1675 = vmatpush.msra.mxu0 %v921_v5  ;;  %1695 = vmatpush.msra.mxu1 %v953_v6  ;;  %v873_v18 = vld [vmem:[#allocation2 + $0xd38] sm:$0xff]  ;;  %v839_v22 = vld [vmem:[#allocation2 + $0xc28] sm:$0xff] }
 0x15f   : > { %1564 = vmatpush.msrb.mxu2 %v711_v7  ;;  %1584 = vmatpush.msrb.mxu3 %v743_v9  ;;  %v871_v3 = vld [vmem:[#allocation2 + $0xd28] sm:$0xff]  ;;  %v837_v5 = vld [vmem:[#allocation2 + $0xc18] sm:$0xff] }
 0x160   : > { %1676 = vmatpush.msra.mxu0 %v919_v10  ;;  %1696 = vmatpush.msra.mxu1 %v951_v11  ;;  %v867_v6 = vld [vmem:[#allocation2 + $0xd08] sm:$0xff]  ;;  %v993_v7 = vld [vmem:[#allocation2 + $0x10f8] sm:$0xff] }
 0x161   : > { %1565 = vmatpush.msrb.mxu2 %v709_v12  ;;  %1585 = vmatpush.msrb.mxu3 %v741_v16  ;;  %v1025_v9 = vld [vmem:[#allocation2 + $0x11f8] sm:$0xff]  ;;  %v991_v10 = vld [vmem:[#allocation2 + $0x10e8] sm:$0xff] }
 0x162   : > { %1677 = vmatpush.msra.mxu0 %v917_v17  ;;  %1697 = vmatpush.msra.mxu1 %v949_v13  ;;  %v1023_v11 = vld [vmem:[#allocation2 + $0x11e8] sm:$0xff]  ;;  %v989_v12 = vld [vmem:[#allocation2 + $0x10d8] sm:$0xff] }
 0x163   : > { %1566 = vmatpush.msrb.mxu2 %v707_v14  ;;  %1586 = vmatpush.msrb.mxu3 %v739_v15  ;;  %v1021_v16 = vld [vmem:[#allocation2 + $0x11d8] sm:$0xff]  ;;  %v987_v17 = vld [vmem:[#allocation2 + $0x10c8] sm:$0xff] }
 0x164   : > { %1678 = vmatpush.msra.mxu0 %v915_v19  ;;  %1698 = vmatpush.msra.mxu1 %v947_v20  ;;  %v1019_v13 = vld [vmem:[#allocation2 + $0x11c8] sm:$0xff]  ;;  %v985_v14 = vld [vmem:[#allocation2 + $0x10b8] sm:$0xff] }
 0x165   : > { %1567 = vmatmul.f32.vlgmr.msrb.gmra.mxu2 %v3811_v30  ;;  %1587 = vmatmul.f32.vlgmr.msrb.gmra.mxu3 %v3814_v38  ;;  %v891_v30 = vld [vmem:[#allocation2 + $0xdc8] sm:$0xff]  ;;  %v1017_v15 = vld [vmem:[#allocation2 + $0x11b8] sm:$0xff] }
 0x166   : > { %1631 = vmatpush.msra.mxu2 %v865_v21  ;;  %1651 = vmatpush.msra.mxu3 %v897_v23  ;;  %v907_v38 = vld [vmem:[#allocation2 + $0xe48] sm:$0xff]  ;;  %v1013_v20 = vld [vmem:[#allocation2 + $0x1198] sm:$0xff] }
 0x167   : > { %1679 = vmatpush.msra.mxu0 %v913_v24  ;;  %1699 = vmatpush.msra.mxu1 %v945_v25  ;;  %v983_v19 = vld [vmem:[#allocation2 + $0x10a8] sm:$0xff]  ;;  %v977_v24 = vld [vmem:[#allocation2 + $0x1078] sm:$0xff] }
 0x168   : > { %1632 = vmatpush.msra.mxu2 %v863_v28  ;;  %1652 = vmatpush.msra.mxu3 %v895_v36  ;;  %v979_v21 = vld [vmem:[#allocation2 + $0x1088] sm:$0xff]  ;;  %v1009_v25 = vld [vmem:[#allocation2 + $0x1178] sm:$0xff] }
 0x169   : > { %1680 = vmatpush.msra.mxu0 %v911_v37  ;;  %1700 = vmatpush.msra.mxu1 %v943_v29  ;;  %v1011_v23 = vld [vmem:[#allocation2 + $0x1188] sm:$0xff]  ;;  %v973_v37 = vld [vmem:[#allocation2 + $0x1058] sm:$0xff] }
 0x16a   : > { %1633 = vmatpush.msra.mxu2 %v861_v31  ;;  %1653 = vmatpush.msra.mxu3 %v893_v32  ;;  %v975_v28 = vld [vmem:[#allocation2 + $0x1068] sm:$0xff]  ;;  %v1005_v29 = vld [vmem:[#allocation2 + $0x1158] sm:$0xff] }
 0x16b   : > { %1681 = vmatpush.msra.mxu0 %v909_v33  ;;  %1701 = vmatpush.msra.mxu1 %v941_v34  ;;  %v1007_v36 = vld [vmem:[#allocation2 + $0x1168] sm:$0xff]  ;;  %v969_v33 = vld [vmem:[#allocation2 + $0x1038] sm:$0xff] }
 0x16c   : > { %1634 = vmatpush.msra.mxu2 %v859_v40  ;;  %1654 = vmatpush.msra.mxu3 %v891_v30  ;;  %v971_v31 = vld [vmem:[#allocation2 + $0x1048] sm:$0xff]  ;;  %v1001_v34 = vld [vmem:[#allocation2 + $0x1138] sm:$0xff] }
 0x16d   : > { %1682 = vmatpush.msra.mxu0 %v907_v38  ;;  %1702 = vmatpush.msra.mxu1 %v939_v41  ;;  %v1003_v32 = vld [vmem:[#allocation2 + $0x1148] sm:$0xff]  ;;  %v965_v38 = vld [vmem:[#allocation2 + $0x1018] sm:$0xff] }
 0x16e   : > { %1635 = vmatpush.msra.mxu2 %v857_v42  ;;  %1655 = vmatpush.msra.mxu3 %v889_v26  ;;  %v967_v40 = vld [vmem:[#allocation2 + $0x1028] sm:$0xff]  ;;  %v997_v41 = vld [vmem:[#allocation2 + $0x1118] sm:$0xff] }
 0x16f   : > { %1683 = vmatpush.msra.mxu0 %v905_v27  ;;  %1703 = vmatpush.msra.mxu1 %v937_v43  ;;  %v999_v30 = vld [vmem:[#allocation2 + $0x1128] sm:$0xff]  ;;  %v3058_v27 = vld [vmem:[#allocation2 + $0xf0] sm:$0xff] }
 0x170   : > { %1636 = vmatpush.msra.mxu2 %v855_v44  ;;  %1656 = vmatpush.msra.mxu3 %v887_v45  ;;  %v963_v42 = vld [vmem:[#allocation2 + $0x1008] sm:$0xff]  ;;  %v3059_v43 = vld [vmem:[#allocation2 + $0x1f0] sm:$0xff]  ;;  %v3060_v44 = vld [vmem:[#allocation2 + $0xe0] sm:$0xff] }
 0x171   : > { %1684 = vmatpush.msra.mxu0 %v903_v47  ;;  %1704 = vmatpush.msra.mxu1 %v935_v48  ;;  %v995_v26 = vld [vmem:[#allocation2 + $0x1108] sm:$0xff]  ;;  %v3061_v45 = vld [vmem:[#allocation2 + $0x1e0] sm:$0xff]  ;;  %v3062_v47 = vld [vmem:[#allocation2 + $0xd0] sm:$0xff] }
 0x172   : > { %1637 = vmatpush.msra.mxu2 %v853_v49  ;;  %1657 = vmatpush.msra.mxu3 %v885_v50  ;;  %v3063_v48 = vld [vmem:[#allocation2 + $0x1d0] sm:$0xff]  ;;  %v3064_v49 = vld [vmem:[#allocation2 + $0xc0] sm:$0xff] }
 0x173   : > { %1685 = vmatpush.msra.mxu0 %v901_v51  ;;  %1705 = vmatpush.msra.mxu1 %v933_v53  ;;  %v3065_v50 = vld [vmem:[#allocation2 + $0x1c0] sm:$0xff]  ;;  %v3066_v51 = vld [vmem:[#allocation2 + $0xb0] sm:$0xff] }
 0x174   : > { %1638 = vmatpush.msra.mxu2 %v851_v54  ;;  %1658 = vmatpush.msra.mxu3 %v883_v55  ;;  %v3069_v53 = vld [vmem:[#allocation2 + $0x1a0] sm:$0xff]  ;;  %v3070_v54 = vld [vmem:[#allocation2 + $0x90] sm:$0xff] }
 0x175   : > { %1686 = vmatpush.msra.mxu0 %v899_v56  ;;  %1706 = vmatpush.msra.mxu1 %v931_v4  ;;  %v3071_v55 = vld [vmem:[#allocation2 + $0x190] sm:$0xff]  ;;  %v3072_v56 = vld [vmem:[#allocation2 + $0x80] sm:$0xff] }
 0x176   : > { %1639 = vmatpush.msra.mxu2 %v849_v8  ;;  %1659 = vmatpush.msra.mxu3 %v881_v57  ;;  %v3073_v4 = vld [vmem:[#allocation2 + $0x180] sm:$0xff]  ;;  %v3074_v8 = vld [vmem:[#allocation2 + $0x70] sm:$0xff] }
 0x177   : > { %1687 = vmatmul.f32.vlgmr.msra.gmra.mxu0 %v3829_v35  ;;  %1707 = vmatmul.f32.vlgmr.msra.gmra.mxu1 %v3831_v39  ;;  %v869_v35 = vld [vmem:[#allocation2 + $0xd18] sm:$0xff]  ;;  %v835_v39 = vld [vmem:[#allocation2 + $0xc08] sm:$0xff]  ;;  %v3075_v57 = vld [vmem:[#allocation2 + $0x170] sm:$0xff] }
 0x178   : > { %1640 = vmatpush.msra.mxu2 %v847_v58  ;;  %1660 = vmatpush.msra.mxu3 %v879_v59  ;;  %v3076_v58 = vld [vmem:[#allocation2 + $0x60] sm:$0xff] }
 0x179   : > { %v3077_v59 = vld [vmem:[#allocation2 + $0x160] sm:$0xff] }
 0x17a   : > { %1641 = vmatpush.msra.mxu2 %v845_v62  ;;  %1661 = vmatpush.msra.mxu3 %v877_v63  ;;  %v3078_v62 = vld [vmem:[#allocation2 + $0x50] sm:$0xff] }
 0x17b   : > { %v3079_v63 = vld [vmem:[#allocation2 + $0x150] sm:$0xff] }
 0x17c   : > { %1642 = vmatpush.msra.mxu2 %v843_v0  ;;  %1662 = vmatpush.msra.mxu3 %v875_v1  ;;  %v3080_v0 = vld [vmem:[#allocation2 + $0x40] sm:$0xff] }
 0x17d   : > { %v3081_v1 = vld [vmem:[#allocation2 + $0x140] sm:$0xff] }
 0x17e   : > { %1643 = vmatpush.msra.mxu2 %v841_v2  ;;  %1663 = vmatpush.msra.mxu3 %v873_v18  ;;  %v3082_v2 = vld [vmem:[#allocation2 + $0x30] sm:$0xff] }
 0x17f   : > { %v3083_v18 = vld [vmem:[#allocation2 + $0x130] sm:$0xff] }
 0x180   : > { %1644 = vmatpush.msra.mxu2 %v839_v22  ;;  %1664 = vmatpush.msra.mxu3 %v871_v3  ;;  %v3084_v22 = vld [vmem:[#allocation2 + $0x20] sm:$0xff] }
 0x181   : > { %v3085_v3 = vld [vmem:[#allocation2 + $0x120] sm:$0xff] }
 0x182   : > { %1645 = vmatpush.msra.mxu2 %v837_v5  ;;  %1665 = vmatpush.msra.mxu3 %v869_v35  ;;  %v3086_v5 = vld [vmem:[#allocation2 + $0x10] sm:$0xff] }
 0x183   : > { %v3087_v35 = vld [vmem:[#allocation2 + $0x110] sm:$0xff] }
 0x184   : > { %1646 = vmatpush.msra.mxu2 %v835_v39  ;;  %1666 = vmatpush.msra.mxu3 %v867_v6  ;;  %v3859_v39 = vpop.f32.mrf.mxu2  ;;  %v3088_v6 = vld [vmem:[#allocation2] sm:$0xff] }
 0x185   : > { %1647 = vmatmul.f32.vlgmr.msra.gmra.mxu2 %v3823_v46  ;;  %1667 = vmatmul.f32.vlgmr.msra.gmra.mxu3 %v3826_v52  ;;  %v1015_v46 = vld [vmem:[#allocation2 + $0x11a8] sm:$0xff]  ;;  %v981_v52 = vld [vmem:[#allocation2 + $0x1098] sm:$0xff] }
 0x186   : > { %1711 = vmatpush.msrb.mxu2 %v993_v7  ;;  %1731 = vmatpush.msrb.mxu3 %v1025_v9  ;;  %v3089_v7 = vld [vmem:[#allocation2 + $0x100] sm:$0xff]  ;;  %v3090_v9 = vld [vmem:[#allocation2 + $0x4f0] sm:$0xff] }
 0x188   : > { %1712 = vmatpush.msrb.mxu2 %v991_v10  ;;  %1732 = vmatpush.msrb.mxu3 %v1023_v11  ;;  %v3091_v10 = vld [vmem:[#allocation2 + $0x5f0] sm:$0xff]  ;;  %v3092_v11 = vld [vmem:[#allocation2 + $0x4e0] sm:$0xff] }
 0x18a   : > { %1713 = vmatpush.msrb.mxu2 %v989_v12  ;;  %1733 = vmatpush.msrb.mxu3 %v1021_v16  ;;  %v3093_v12 = vld [vmem:[#allocation2 + $0x5e0] sm:$0xff]  ;;  %v3094_v16 = vld [vmem:[#allocation2 + $0x4d0] sm:$0xff] }
 0x18c   : > { %1714 = vmatpush.msrb.mxu2 %v987_v17  ;;  %1734 = vmatpush.msrb.mxu3 %v1019_v13  ;;  %v3095_v17 = vld [vmem:[#allocation2 + $0x5d0] sm:$0xff]  ;;  %v3861_v13 = vpop.f32.mrf.mxu3 }
 0x18e   : > { %1715 = vmatpush.msrb.mxu2 %v985_v14  ;;  %1735 = vmatpush.msrb.mxu3 %v1017_v15  ;;  %v3096_v14 = vld [vmem:[#allocation2 + $0x4c0] sm:$0xff] }
 0x18f   : > { %v3097_v15 = vld [vmem:[#allocation2 + $0x5c0] sm:$0xff] }
 0x190   : > { %1716 = vmatpush.msrb.mxu2 %v983_v19  ;;  %1736 = vmatpush.msrb.mxu3 %v1015_v46  ;;  %v3098_v19 = vld [vmem:[#allocation2 + $0x4b0] sm:$0xff] }
 0x191   : > { %v3099_v46 = vld [vmem:[#allocation2 + $0x5b0] sm:$0xff] }
 0x192   : > { %1717 = vmatpush.msrb.mxu2 %v981_v52  ;;  %1737 = vmatpush.msrb.mxu3 %v1013_v20  ;;  %v3863_v52 = vpop.f32.mrf.mxu2  ;;  %v3100_v20 = vld [vmem:[#allocation2 + $0x4a0] sm:$0xff] }
 0x194   : > { %1718 = vmatpush.msrb.mxu2 %v979_v21  ;;  %1738 = vmatpush.msrb.mxu3 %v1011_v23  ;;  %v3101_v21 = vld [vmem:[#allocation2 + $0x5a0] sm:$0xff]  ;;  %v3102_v23 = vld [vmem:[#allocation2 + $0x490] sm:$0xff] }
 0x196   : > { %1719 = vmatpush.msrb.mxu2 %v977_v24  ;;  %1739 = vmatpush.msrb.mxu3 %v1009_v25  ;;  %v3103_v24 = vld [vmem:[#allocation2 + $0x590] sm:$0xff]  ;;  %v3104_v25 = vld [vmem:[#allocation2 + $0x480] sm:$0xff] }
 0x198   : > { %1720 = vmatpush.msrb.mxu2 %v975_v28  ;;  %1740 = vmatpush.msrb.mxu3 %v1007_v36  ;;  %v3105_v28 = vld [vmem:[#allocation2 + $0x580] sm:$0xff]  ;;  %v1108_v36 = vpop.f32.mrf.mxu3 }
 0x19a   : > { %1721 = vmatpush.msrb.mxu2 %v973_v37  ;;  %1741 = vmatpush.msrb.mxu3 %v1005_v29  ;;  %v3106_v37 = vld [vmem:[#allocation2 + $0x470] sm:$0xff] }
 0x19b   : > { %v3107_v29 = vld [vmem:[#allocation2 + $0x570] sm:$0xff] }
 0x19c   : > { %1722 = vmatpush.msrb.mxu2 %v971_v31  ;;  %1742 = vmatpush.msrb.mxu3 %v1003_v32  ;;  %v1128_v31 = vpop.f32.mrf.mxu0  ;;  %v1168_v32 = vpop.f32.mrf.mxu2 }
 0x19e   : > { %1723 = vmatpush.msrb.mxu2 %v969_v33  ;;  %1743 = vmatpush.msrb.mxu3 %v1001_v34  ;;  %v3108_v33 = vld [vmem:[#allocation2 + $0x460] sm:$0xff] }
 0x19f   : > { %v3109_v34 = vld [vmem:[#allocation2 + $0x560] sm:$0xff] }
 0x1a0   : > { %1724 = vmatpush.msrb.mxu2 %v967_v40  ;;  %1744 = vmatpush.msrb.mxu3 %v999_v30  ;;  %v3110_v40 = vld [vmem:[#allocation2 + $0x450] sm:$0xff] }
 0x1a1   : > { %v3111_v30 = vld [vmem:[#allocation2 + $0x550] sm:$0xff] }
 0x1a2   : > { %1725 = vmatpush.msrb.mxu2 %v965_v38  ;;  %1745 = vmatpush.msrb.mxu3 %v997_v41  ;;  %v1148_v38 = vpop.f32.mrf.mxu1  ;;  %v3112_v41 = vld [vmem:[#allocation2 + $0x440] sm:$0xff] }
 0x1a4   : > { %1726 = vmatpush.msrb.mxu2 %v963_v42  ;;  %1746 = vmatpush.msrb.mxu3 %v995_v26  ;;  %v3113_v42 = vld [vmem:[#allocation2 + $0x540] sm:$0xff]  ;;  %v1188_v26 = vpop.f32.mrf.mxu3 }
 0x1a5   : > { %1727 = vmatmul.f32.vlgmr.msrb.gmra.mxu2 %v3835_v60  ;;  %1747 = vmatmul.f32.vlgmr.msrb.gmra.mxu3 %v3837_v61  ;;  %v3067_v60 = vld [vmem:[#allocation2 + $0x1b0] sm:$0xff]  ;;  %v3068_v61 = vld [vmem:[#allocation2 + $0xa0] sm:$0xff] }
 0x1a6   : > { %1927 = vmatpush.msra.mxu2 %v3058_v27  ;;  %1947 = vmatpush.msra.mxu3 %v3059_v43  ;;  %v3114_v27 = vld [vmem:[#allocation2 + $0x430] sm:$0xff] }
 0x1a7   : > { %v3115_v43 = vld [vmem:[#allocation2 + $0x530] sm:$0xff] }
 0x1a8   : > { %1928 = vmatpush.msra.mxu2 %v3060_v44  ;;  %1948 = vmatpush.msra.mxu3 %v3061_v45  ;;  %v1208_v44 = vpop.f32.mrf.mxu0  ;;  %v1248_v45 = vpop.f32.mrf.mxu2 }
 0x1aa   : > { %1929 = vmatpush.msra.mxu2 %v3062_v47  ;;  %1949 = vmatpush.msra.mxu3 %v3063_v48  ;;  %v3116_v47 = vld [vmem:[#allocation2 + $0x420] sm:$0xff] }
 0x1ab   : > { %v3117_v48 = vld [vmem:[#allocation2 + $0x520] sm:$0xff] }
 0x1ac   : > { %1930 = vmatpush.msra.mxu2 %v3064_v49  ;;  %1950 = vmatpush.msra.mxu3 %v3065_v50  ;;  %v3118_v49 = vld [vmem:[#allocation2 + $0x410] sm:$0xff] }
 0x1ad   : > { %v3119_v50 = vld [vmem:[#allocation2 + $0x510] sm:$0xff] }
 0x1ae   : > { %1931 = vmatpush.msra.mxu2 %v3066_v51  ;;  %1951 = vmatpush.msra.mxu3 %v3067_v60  ;;  %v1228_v51 = vpop.f32.mrf.mxu1  ;;  %v3120_v60 = vld [vmem:[#allocation2 + $0x400] sm:$0xff] }
 0x1b0   : > { %1932 = vmatpush.msra.mxu2 %v3068_v61  ;;  %1952 = vmatpush.msra.mxu3 %v3069_v53  ;;  %v3121_v61 = vld [vmem:[#allocation2 + $0x500] sm:$0xff]  ;;  %v1268_v53 = vpop.f32.mrf.mxu3 }
 0x1b2   : > { %1933 = vmatpush.msra.mxu2 %v3070_v54  ;;  %1953 = vmatpush.msra.mxu3 %v3071_v55  ;;  %v1288_v54 = vpop.f32.mrf.mxu0  ;;  %v1328_v55 = vpop.f32.mrf.mxu2 }
 0x1b4   : > { %1934 = vmatpush.msra.mxu2 %v3072_v56  ;;  %1954 = vmatpush.msra.mxu3 %v3073_v4  ;;  %v1029_v56 = vpop.permute.xlu0 %1028 }
 0x1b6   : > { %1935 = vmatpush.msra.mxu2 %v3074_v8  ;;  %1955 = vmatpush.msra.mxu3 %v3075_v57  ;;  %v1308_v4 = vpop.f32.mrf.mxu1  ;;  %v1049_v57 = vadd.f32 %v3859_v39, %v1029_v56 }
 0x1b8   : > { %1936 = vmatpush.msra.mxu2 %v3076_v58  ;;  %1956 = vmatpush.msra.mxu3 %v3077_v59  ;;  %v1348_v8 = vpop.f32.mrf.mxu3 }
 0x1ba   : > { %1937 = vmatpush.msra.mxu2 %v3078_v62  ;;  %1957 = vmatpush.msra.mxu3 %v3079_v63  ;;  %v1368_v58 = vpop.f32.mrf.mxu0  ;;  %v1408_v59 = vpop.f32.mrf.mxu2  ;;  %v1069_v62 = vadd.f32 %v3861_v13, %v1049_v57 }
 0x1bb   : > { %v1409_v63 = vadd.f32 %v1408_v59, %v1029_v56  ;;  %v2962_v59 = vld [vmem:[%s4063_s6 + $0x18] sm:$0xff] }
 0x1bc   : > { %1938 = vmatpush.msra.mxu2 %v3080_v0  ;;  %1958 = vmatpush.msra.mxu3 %v3081_v1  ;;  %v1089_v1 = vadd.f32 %v3863_v52, %v1069_v62 }
 0x1be   : > { %1939 = vmatpush.msra.mxu2 %v3082_v2  ;;  %1959 = vmatpush.msra.mxu3 %v3083_v18  ;;  %v1388_v0 = vpop.f32.mrf.mxu1 }
 0x1c0   : > { %1940 = vmatpush.msra.mxu2 %v3084_v22  ;;  %1960 = vmatpush.msra.mxu3 %v3085_v3  ;;  %v1428_v2 = vpop.f32.mrf.mxu3  ;;  %v1109_v22 = vadd.f32 %v1108_v36, %v1089_v1 }
 0x1c1   : > { %v1429_v18 = vadd.f32 %v1428_v2, %v1409_v63 }
 0x1c2   : > { %1941 = vmatpush.msra.mxu2 %v3086_v5  ;;  %1961 = vmatpush.msra.mxu3 %v3087_v35  ;;  %v1448_v3 = vpop.f32.mrf.mxu0  ;;  %v1129_v35 = vadd.f32 %v1128_v31, %v1109_v22 }
 0x1c3   : > { %v1449_v5 = vadd.f32 %v1448_v3, %v1429_v18  ;;  %v2960_v3 = vld [vmem:[%s4063_s6 + $0x8] sm:$0xff] }
 0x1c4   : > { %1942 = vmatpush.msra.mxu2 %v3088_v6  ;;  %1962 = vmatpush.msra.mxu3 %v3089_v7 }
 0x1c6   : > { %2007 = vmatpush.msrb.mxu2 %v3090_v9  ;;  %2027 = vmatpush.msrb.mxu3 %v3091_v10  ;;  %v1468_v6 = vpop.f32.mrf.mxu1  ;;  %v1488_v7 = vpop.f32.mrf.mxu2  ;;  %v1149_v10 = vadd.f32 %v1148_v38, %v1129_v35 }
 0x1c7   : > { %v1469_v9 = vadd.f32 %v1468_v6, %v1449_v5 }
 0x1c8   : > { %2008 = vmatpush.msrb.mxu2 %v3092_v11  ;;  %2028 = vmatpush.msrb.mxu3 %v3093_v12  ;;  %v1169_v39 = vadd.f32 %v1168_v32, %v1149_v10  ;;  %v1508_v12 = vpop.f32.mrf.mxu3 }
 0x1c9   : > { %v1489_v11 = vadd.f32 %v1488_v7, %v1469_v9 }
 0x1ca   : > { %2009 = vmatpush.msrb.mxu2 %v3094_v16  ;;  %2029 = vmatpush.msrb.mxu3 %v3095_v17  ;;  %v1189_v17 = vadd.f32 %v1188_v26, %v1169_v39  ;;  %v1528_v13 = vpop.f32.mrf.mxu0 }
 0x1cb   : > { %v1509_v16 = vadd.f32 %v1508_v12, %v1489_v11 }
 0x1cc   : > { %2010 = vmatpush.msrb.mxu2 %v3096_v14  ;;  %2030 = vmatpush.msrb.mxu3 %v3097_v15  ;;  %v1209_v15 = vadd.f32 %v1208_v44, %v1189_v17 }
 0x1cd   : > { %v1529_v14 = vadd.f32 %v1528_v13, %v1509_v16 }
 0x1ce   : > { %2011 = vmatpush.msrb.mxu2 %v3098_v19  ;;  %2031 = vmatpush.msrb.mxu3 %v3099_v46  ;;  %v1548_v19 = vpop.f32.mrf.mxu1 }
 0x1cf   : > { %v1549_v52 = vadd.f32 %v1548_v19, %v1529_v14 }
 0x1d0   : > { %2012 = vmatpush.msrb.mxu2 %v3100_v20  ;;  %2032 = vmatpush.msrb.mxu3 %v3101_v21  ;;  %v1229_v20 = vadd.f32 %v1228_v51, %v1209_v15  ;;  %v1797_v15 = vld [vmem:[%s4059_s2] sm:$0xff] }
 0x1d2   : > { %2013 = vmatpush.msrb.mxu2 %v3102_v23  ;;  %2033 = vmatpush.msrb.mxu3 %v3103_v24  ;;  %v1249_v23 = vadd.f32 %v1248_v45, %v1229_v20  ;;  %v1608_v36 = vpop.f32.mrf.mxu0  ;;  %v3123_v20 = vld [vmem:[#allocation2 + $0x3f0] sm:$0xff] }
 0x1d4   : > { %2014 = vmatpush.msrb.mxu2 %v3104_v25  ;;  %2034 = vmatpush.msrb.mxu3 %v3105_v28  ;;  %v1269_v28 = vadd.f32 %v1268_v53, %v1249_v23  ;;  %v3125_v23 = vld [vmem:[#allocation2 + $0x3e0] sm:$0xff] }
 0x1d6   : > { %2015 = vmatpush.msrb.mxu2 %v3106_v37  ;;  %2035 = vmatpush.msrb.mxu3 %v3107_v29  ;;  %v1289_v29 = vadd.f32 %v1288_v54, %v1269_v28  ;;  %v1628_v31 = vpop.f32.mrf.mxu1  ;;  %v3127_v28 = vld [vmem:[#allocation2 + $0x3d0] sm:$0xff] }
 0x1d8   : > { %2016 = vmatpush.msrb.mxu2 %v3108_v33  ;;  %2036 = vmatpush.msrb.mxu3 %v3109_v34  ;;  %v1309_v34 = vadd.f32 %v1308_v4, %v1289_v29  ;;  %v3130_v29 = vld [vmem:[#allocation2 + $0x2b0] sm:$0xff] }
 0x1da   : > { %2017 = vmatpush.msrb.mxu2 %v3110_v40  ;;  %2037 = vmatpush.msrb.mxu3 %v3111_v30  ;;  %v1329_v30 = vadd.f32 %v1328_v55, %v1309_v34  ;;  %v2961_v55 = vld [vmem:[%s4063_s6 + $0x10] sm:$0xff] }
 0x1db   : > { %1786 = vperm.xlu2 %3043, %v2961_v55   ;;  %v1799_v34 = vld [vmem:[%s4059_s2 + $0x10] sm:$0xff]  ;;  %v3151_v55 = vld [vmem:[#allocation2 + $0x310] sm:$0xff] }
 0x1dc   : > { %2018 = vmatpush.msrb.mxu2 %v3112_v41  ;;  %2038 = vmatpush.msrb.mxu3 %v3113_v42  ;;  %v1349_v42 = vadd.f32 %v1348_v8, %v1329_v30  ;;  %v3135_v30 = vld [vmem:[#allocation2 + $0x390] sm:$0xff] }
 0x1de   : > { %2019 = vmatpush.msrb.mxu2 %v3114_v27  ;;  %2039 = vmatpush.msrb.mxu3 %v3115_v43  ;;  %v1369_v43 = vadd.f32 %v1368_v58, %v1349_v42  ;;  %v3138_v42 = vld [vmem:[#allocation2 + $0x270] sm:$0xff] }
 0x1e0   : > { %2020 = vmatpush.msrb.mxu2 %v3116_v47  ;;  %2040 = vmatpush.msrb.mxu3 %v3117_v48  ;;  %v1389_v48 = vadd.f32 %v1388_v0, %v1369_v43  ;;  %v3141_v43 = vld [vmem:[#allocation2 + $0x360] sm:$0xff] }
 0x1e2   : > { %2021 = vmatpush.msrb.mxu2 %v3118_v49  ;;  %2041 = vmatpush.msrb.mxu3 %v3119_v50 }
 0x1e3   : > { %1924 = vperm.xlu2 %3043, %v2962_v59   ;;  %v3157_v59 = vld [vmem:[#allocation2 + $0x7e0] sm:$0xff] }
 0x1e4   : > { %2022 = vmatpush.msrb.mxu2 %v3120_v60  ;;  %2042 = vmatpush.msrb.mxu3 %v3121_v61  ;;  %v1754_v61 = vmul.f32 %v1389_v48, %v1389_v48 }
 0x1e8   : > { %v1568_v46 = vpop.f32.mrf.mxu2  ;;  %v1588_v24 = vpop.f32.mrf.mxu3 }
 0x1e9   : > { %v1569_v21 = vadd.f32 %v1568_v46, %v1549_v52  ;;  %v3122_v52 = vld [vmem:[#allocation2 + $0x2f0] sm:$0xff] }
 0x1eb   : > { %v1589_v25 = vadd.f32 %v1588_v24, %v1569_v21  ;;  %v3124_v21 = vld [vmem:[#allocation2 + $0x2e0] sm:$0xff] }
 0x1ec   : > { %v1798_v24 = vld [vmem:[%s4059_s2 + $0x8] sm:$0xff] }
 0x1ed   : > { %v1609_v37 = vadd.f32 %v1608_v36, %v1589_v25  ;;  %v3126_v25 = vld [vmem:[#allocation2 + $0x2d0] sm:$0xff]  ;;  %v3128_v36 = vld [vmem:[#allocation2 + $0x2c0] sm:$0xff] }
 0x1ef   : > { %v1629_v33 = vadd.f32 %v1628_v31, %v1609_v37  ;;  %v3129_v37 = vld [vmem:[#allocation2 + $0x3c0] sm:$0xff]  ;;  %v3131_v31 = vld [vmem:[#allocation2 + $0x3b0] sm:$0xff] }
 0x1f4   : > { %v1688_v26 = vpop.f32.mrf.mxu0  ;;  %v1708_v44 = vpop.f32.mrf.mxu1 }
 0x208   : > { %v1648_v32 = vpop.f32.mrf.mxu2  ;;  %v1668_v38 = vpop.f32.mrf.mxu3 }
 0x209   : > { %v1649_v40 = vadd.f32 %v1648_v32, %v1629_v33  ;;  %v3132_v32 = vld [vmem:[#allocation2 + $0x2a0] sm:$0xff] }
 0x20a   : > { %v3133_v33 = vld [vmem:[#allocation2 + $0x3a0] sm:$0xff] }
 0x20b   : > { %v1669_v41 = vadd.f32 %v1668_v38, %v1649_v40  ;;  %v3134_v40 = vld [vmem:[#allocation2 + $0x290] sm:$0xff]  ;;  %v3136_v38 = vld [vmem:[#allocation2 + $0x280] sm:$0xff] }
 0x20d   : > { %v1689_v27 = vadd.f32 %v1688_v26, %v1669_v41  ;;  %v3137_v41 = vld [vmem:[#allocation2 + $0x380] sm:$0xff]  ;;  %v3139_v26 = vld [vmem:[#allocation2 + $0x370] sm:$0xff] }
 0x20f   : > { %v1709_v45 = vadd.f32 %v1708_v44, %v1689_v27  ;;  %v3140_v27 = vld [vmem:[#allocation2 + $0x260] sm:$0xff]  ;;  %v1800_v44 = vld [vmem:[%s4059_s2 + $0x18] sm:$0xff] }
 0x228   : > { %v1728_v47 = vpop.f32.mrf.mxu2  ;;  %v1748_v50 = vpop.f32.mrf.mxu3 }
 0x229   : > { %v1729_v49 = vadd.f32 %v1728_v47, %v1709_v45  ;;  %v3142_v45 = vld [vmem:[#allocation2 + $0x250] sm:$0xff] }
 0x22a   : > { %v3143_v47 = vld [vmem:[#allocation2 + $0x350] sm:$0xff] }
 0x22b   : > { %v1749_v51 = vadd.f32 %v1748_v50, %v1729_v49  ;;  %v3145_v49 = vld [vmem:[#allocation2 + $0x340] sm:$0xff]  ;;  %v3146_v50 = vld [vmem:[#allocation2 + $0x230] sm:$0xff] }
 0x22d   : > { %v1751_v60 = vadd.f32 %v1749_v51, %v1389_v48  ;;  %v1755_v53 = vmul.f32 %v1749_v51, %v1749_v51 }
 0x22f   : > { %1752 = vadd.xlane.f32.xlu0 %v1751_v60  ;;  %v1756_v54 = vadd.f32 %v1755_v53, %v1754_v61  ;;  %v3148_v60 = vld [vmem:[#allocation2 + $0x220] sm:$0xff]  ;;  %v1801_v53 = vld [vmem:[%s4059_s2 + $0x20] sm:$0xff] }
 0x230   : > { %v3149_v61 = vld [vmem:[#allocation2 + $0x320] sm:$0xff] }
 0x231   : > { %1757 = vadd.xlane.f32.xlu1 %v1756_v54  ;;  %v3150_v54 = vld [vmem:[#allocation2 + $0x210] sm:$0xff] }
 0x235   : > { %v1787_v12 = vpop.permute.xlu2 %1786 }
 0x2a2   : > { %v1753_v56 = vpop.xlane.xlu0 %1752 }
 0x2a3   : > { %v1759_v4 = vmul.f32 0.00390625, %v1753_v56  ;;  %v3152_v56 = vld [vmem:[#allocation2 + $0x200] sm:$0xff] }
 0x2a4   : > { %v1758_v8 = vpop.xlane.xlu1 %1757 }
 0x2a5   : > { %v1760_v57 = vmul.f32 0.00390625, %v1758_v8  ;;  %v1761_v58 = vmul.f32 %v1759_v4, %v1759_v4  ;;  %v1763_v7 = vsub.f32 %v1389_v48, %v1759_v4  ;;  %v1764_v9 = vsub.f32 %v1749_v51, %v1759_v4  ;;  %v3144_v48 = vld [vmem:[#allocation2 + $0x240] sm:$0xff]  ;;  %v3147_v51 = vld [vmem:[#allocation2 + $0x330] sm:$0xff] }
 0x2a6   : > { %v3153_v4 = vld [vmem:[#allocation2 + $0x300] sm:$0xff]  ;;  %v3154_v8 = vld [vmem:[#allocation2 + $0x6f0] sm:$0xff] }
 0x2a7   : > { %v1762_v62 = vsub.f32 %v1760_v57, %v1761_v58  ;;  %v3155_v57 = vld [vmem:[#allocation2 + $0x7f0] sm:$0xff]  ;;  %v3156_v58 = vld [vmem:[#allocation2 + $0x6e0] sm:$0xff] }
 0x2a9   : > { %v1765_v63 = vadd.f32 1e-05, %v1762_v62  ;;  %v1802_v62 = vld [vmem:[%s4059_s2 + $0x28] sm:$0xff] }
 0x2ab   : > { %3044 = vrsqrt.f32 %v1765_v63  ;;  %vm1772_vm3 = vweird.f32 %v1765_v63 }
 0x2b1   : > { %v3045_v0 = vpop.eup %3044 }
 0x2b2   : > { %v1767_v1 = vmul.f32 %v3045_v0, %v1765_v63  ;;  %vm1773_vm2 = vweird.f32 %v3045_v0  ;;  %v3158_v63 = vld [vmem:[#allocation2 + $0x6d0] sm:$0xff] }
 0x2b3   : > { %vm1774_vm4 = vmor %vm1772_vm3, %vm1773_vm2 }
 0x2b4   : > { %v1768_v2 = vmul.f32 %v3045_v0, %v1767_v1  ;;  %v3160_v1 = vld [vmem:[#allocation2 + $0x6c0] sm:$0xff] }
 0x2b6   : > { %v1769_v18 = vmul.f32 0.5, %v1768_v2  ;;  %v3161_v2 = vld [vmem:[#allocation2 + $0x7c0] sm:$0xff] }
 0x2b8   : > { %v1770_v22 = vsub.f32 1.5, %v1769_v18  ;;  %v3162_v18 = vld [vmem:[#allocation2 + $0x6b0] sm:$0xff] }
 0x2ba   : > { %v1771_v5 = vmul.f32 %v3045_v0, %v1770_v22  ;;  %v3163_v22 = vld [vmem:[#allocation2 + $0x7b0] sm:$0xff] }
 0x2bc   : > { %v1775_v35 = vsel %vm1774_vm4, %v3045_v0, %v1771_v5  ;;  %v3159_v0 = vld [vmem:[#allocation2 + $0x7d0] sm:$0xff]  ;;  %v3165_v5 = vld [vmem:[#allocation2 + $0x7a0] sm:$0xff] }
 0x2bd   : > { %v1776_v6 = vmul.f32 %v2960_v3, %v1775_v35  ;;  %v3164_v3 = vld [vmem:[#allocation2 + $0x6a0] sm:$0xff]  ;;  %v1803_v35 = vld [vmem:[%s4059_s2 + $0x30] sm:$0xff] }
 0x2bf   : > { %1779 = vperm.xlu1 %3042, %v1776_v6   ;;  %v3166_v6 = vld [vmem:[#allocation2 + $0x690] sm:$0xff] }
 0x331   : > { %v1780_v10 = vpop.permute.xlu1 %1779 }
 0x332   : > { %v1782_v11 = vmul.f32 %v1780_v10, %v1763_v7  ;;  %v1783_v39 = vmul.f32 %v1780_v10, %v1764_v9  ;;  %v3167_v7 = vld [vmem:[#allocation2 + $0x790] sm:$0xff]  ;;  %v3168_v9 = vld [vmem:[#allocation2 + $0x680] sm:$0xff] }
 0x333   : > { %v3169_v10 = vld [vmem:[#allocation2 + $0x780] sm:$0xff] }
 0x334   : > { %v1789_v16 = vadd.f32 %v1787_v12, %v1782_v11  ;;  %v1790_v17 = vadd.f32 %v1787_v12, %v1783_v39  ;;  %v3170_v11 = vld [vmem:[#allocation2 + $0x670] sm:$0xff]  ;;  %v3172_v12 = vld [vmem:[#allocation2 + $0x660] sm:$0xff] }
 0x335   : > { %v3171_v39 = vld [vmem:[#allocation2 + $0x770] sm:$0xff] }
 0x336   : > { %vm1791_vm5 = vcmp.ge.f32.partialorder %v1789_v16, 0.0  ;;  %v1793_v13 = vmul.f32 0.01, %v1789_v16  ;;  %vm1792_vm6 = vcmp.ge.f32.partialorder %v1790_v17, 0.0  ;;  %v1794_v14 = vmul.f32 0.01, %v1790_v17 }
 0x338   : > { %v1795_v19 = vsel %vm1791_vm5, %v1789_v16, %v1793_v13  ;;  %v1796_v46 = vsel %vm1792_vm6, %v1790_v17, %v1794_v14  ;;  %v3173_v16 = vld [vmem:[#allocation2 + $0x760] sm:$0xff]  ;;  %v1804_v17 = vld [vmem:[%s4059_s2 + $0x38] sm:$0xff] }
 0x339   : > { %1849 = vmatpush.msrb.mxu0 %v1795_v19  ;;  %1893 = vmatpush.msrb.mxu1 %v1796_v46  ;;  %v3174_v13 = vld [vmem:[#allocation2 + $0x650] sm:$0xff]  ;;  %v3177_v19 = vld [vmem:[#allocation2 + $0x740] sm:$0xff] }
 0x33a   : > { %2989 = vmatmul.msk.f32.vlgmr.msrb.gmra.mxu0 %vm1806_vm7, %v1797_v15  ;;  %2998 = vmatmul.msk.f32.vlgmr.msrb.gmra.mxu1 %vm1806_vm7, %v1797_v15  ;;  %v3175_v14 = vld [vmem:[#allocation2 + $0x750] sm:$0xff]  ;;  %v3176_v15 = vld [vmem:[#allocation2 + $0x640] sm:$0xff] }
 0x33b   : > { %1967 = vmatpush.msra.mxu0 %v3122_v52  ;;  %1987 = vmatpush.msra.mxu1 %v3123_v20  ;;  %v3178_v46 = vld [vmem:[#allocation2 + $0x630] sm:$0xff]  ;;  %v3180_v20 = vld [vmem:[#allocation2 + $0x620] sm:$0xff] }
 0x33c   : > { %v3179_v52 = vld [vmem:[#allocation2 + $0x730] sm:$0xff] }
 0x33d   : > { %1968 = vmatpush.msra.mxu0 %v3124_v21  ;;  %1988 = vmatpush.msra.mxu1 %v3125_v23  ;;  %v3181_v21 = vld [vmem:[#allocation2 + $0x720] sm:$0xff]  ;;  %v1805_v23 = vld [vmem:[%s4059_s2 + $0x40] sm:$0xff] }
 0x33f   : > { %1969 = vmatpush.msra.mxu0 %v3126_v25  ;;  %1989 = vmatpush.msra.mxu1 %v3127_v28  ;;  %v3183_v25 = vld [vmem:[#allocation2 + $0x710] sm:$0xff]  ;;  %v3184_v28 = vld [vmem:[#allocation2 + $0x600] sm:$0xff] }
 0x341   : > { %1970 = vmatpush.msra.mxu0 %v3128_v36  ;;  %1990 = vmatpush.msra.mxu1 %v3129_v37  ;;  %v3185_v36 = vld [vmem:[#allocation2 + $0x700] sm:$0xff] }
 0x342   : > { %2990 = vmatmul.msk.f32.gmra.mxu0 %vm1806_vm7, %v1798_v24  ;;  %2999 = vmatmul.msk.f32.gmra.mxu1 %vm1806_vm7, %v1798_v24  ;;  %v3182_v24 = vld [vmem:[#allocation2 + $0x610] sm:$0xff] }
 0x343   : > { %1971 = vmatpush.msra.mxu0 %v3130_v29  ;;  %1991 = vmatpush.msra.mxu1 %v3131_v31  ;;  %v3186_v31 = vld [vmem:[#allocation2 + $0x8f0] sm:$0xff] }
 0x345   : > { %1972 = vmatpush.msra.mxu0 %v3132_v32  ;;  %1992 = vmatpush.msra.mxu1 %v3133_v33  ;;  %v3187_v32 = vld [vmem:[#allocation2 + $0x9f0] sm:$0xff]  ;;  %v3188_v33 = vld [vmem:[#allocation2 + $0x8e0] sm:$0xff] }
 0x347   : > { %1973 = vmatpush.msra.mxu0 %v3134_v40  ;;  %1993 = vmatpush.msra.mxu1 %v3135_v30  ;;  %v3190_v40 = vld [vmem:[#allocation2 + $0x8d0] sm:$0xff] }
 0x348   : > { %v3191_v30 = vld [vmem:[#allocation2 + $0x9d0] sm:$0xff] }
 0x349   : > { %1974 = vmatpush.msra.mxu0 %v3136_v38  ;;  %1994 = vmatpush.msra.mxu1 %v3137_v41  ;;  %v3192_v38 = vld [vmem:[#allocation2 + $0x8c0] sm:$0xff] }
 0x34a   : > { %2991 = vmatmul.msk.f32.gmra.mxu0 %vm1806_vm7, %v1799_v34  ;;  %3000 = vmatmul.msk.f32.gmra.mxu1 %vm1806_vm7, %v1799_v34  ;;  %v3189_v34 = vld [vmem:[#allocation2 + $0x9e0] sm:$0xff] }
 0x34b   : > { %1975 = vmatpush.msra.mxu0 %v3138_v42  ;;  %1995 = vmatpush.msra.mxu1 %v3139_v26  ;;  %v3193_v41 = vld [vmem:[#allocation2 + $0x9c0] sm:$0xff] }
 0x34d   : > { %1976 = vmatpush.msra.mxu0 %v3140_v27  ;;  %1996 = vmatpush.msra.mxu1 %v3141_v43  ;;  %v3194_v27 = vld [vmem:[#allocation2 + $0x8b0] sm:$0xff] }
 0x34e   : > { %v3195_v43 = vld [vmem:[#allocation2 + $0x9b0] sm:$0xff] }
 0x34f   : > { %1977 = vmatpush.msra.mxu0 %v3142_v45  ;;  %1997 = vmatpush.msra.mxu1 %v3143_v47  ;;  %v3197_v45 = vld [vmem:[#allocation2 + $0xbf0] sm:$0xff]  ;;  %v3198_v47 = vld [vmem:[#allocation2 + $0x8a0] sm:$0xff] }
 0x351   : > { %1978 = vmatpush.msra.mxu0 %v3144_v48  ;;  %1998 = vmatpush.msra.mxu1 %v3145_v49  ;;  %v3199_v48 = vld [vmem:[#allocation2 + $0x9a0] sm:$0xff] }
 0x352   : > { %2992 = vmatmul.msk.f32.gmra.mxu0 %vm1806_vm7, %v1800_v44  ;;  %3001 = vmatmul.msk.f32.gmra.mxu1 %vm1806_vm7, %v1800_v44  ;;  %v3196_v44 = vld [vmem:[#allocation2 + $0xaf0] sm:$0xff]  ;;  %v3200_v49 = vld [vmem:[#allocation2 + $0xae0] sm:$0xff] }
 0x353   : > { %1979 = vmatpush.msra.mxu0 %v3146_v50  ;;  %1999 = vmatpush.msra.mxu1 %v3147_v51  ;;  %v3201_v50 = vld [vmem:[#allocation2 + $0xbe0] sm:$0xff]  ;;  %v3202_v51 = vld [vmem:[#allocation2 + $0x890] sm:$0xff] }
 0x355   : > { %1980 = vmatpush.msra.mxu0 %v3148_v60  ;;  %2000 = vmatpush.msra.mxu1 %v3149_v61  ;;  %v3203_v60 = vld [vmem:[#allocation2 + $0x990] sm:$0xff] }
 0x356   : > { %v3204_v61 = vld [vmem:[#allocation2 + $0xad0] sm:$0xff] }
 0x357   : > { %1981 = vmatpush.msra.mxu0 %v3150_v54  ;;  %2001 = vmatpush.msra.mxu1 %v3151_v55  ;;  %v3206_v54 = vld [vmem:[#allocation2 + $0x880] sm:$0xff] }
 0x358   : > { %v3207_v55 = vld [vmem:[#allocation2 + $0x980] sm:$0xff] }
 0x359   : > { %1982 = vmatpush.msra.mxu0 %v3152_v56  ;;  %2002 = vmatpush.msra.mxu1 %v3153_v4  ;;  %v3208_v4 = vld [vmem:[#allocation2 + $0xac0] sm:$0xff] }
 0x35a   : > { %2993 = vmatmul.msk.f32.gmra.mxu0 %vm1806_vm7, %v1801_v53  ;;  %3002 = vmatmul.msk.f32.gmra.mxu1 %vm1806_vm7, %v1801_v53  ;;  %v3205_v53 = vld [vmem:[#allocation2 + $0xbd0] sm:$0xff] }
 0x35b   : > { %2047 = vmatpush.msrb.mxu0 %v3154_v8  ;;  %2067 = vmatpush.msrb.mxu1 %v3155_v57  ;;  %v3209_v8 = vld [vmem:[#allocation2 + $0xbc0] sm:$0xff] }
 0x35d   : > { %2048 = vmatpush.msrb.mxu0 %v3156_v58  ;;  %2068 = vmatpush.msrb.mxu1 %v3157_v59  ;;  %v3210_v58 = vld [vmem:[#allocation2 + $0x970] sm:$0xff] }
 0x35e   : > { %v3211_v59 = vld [vmem:[#allocation2 + $0x870] sm:$0xff] }
 0x35f   : > { %2049 = vmatpush.msrb.mxu0 %v3158_v63  ;;  %2069 = vmatpush.msrb.mxu1 %v3159_v0  ;;  %v3213_v63 = vld [vmem:[#allocation2 + $0xbb0] sm:$0xff]  ;;  %v3214_v0 = vld [vmem:[#allocation2 + $0x860] sm:$0xff] }
 0x361   : > { %2050 = vmatpush.msrb.mxu0 %v3160_v1  ;;  %2070 = vmatpush.msrb.mxu1 %v3161_v2  ;;  %v3215_v1 = vld [vmem:[#allocation2 + $0x960] sm:$0xff] }
 0x362   : > { %2994 = vmatmul.msk.f32.gmra.mxu0 %vm1806_vm7, %v1802_v62  ;;  %3003 = vmatmul.msk.f32.gmra.mxu1 %vm1806_vm7, %v1802_v62  ;;  %v3212_v62 = vld [vmem:[#allocation2 + $0xab0] sm:$0xff]  ;;  %v3216_v2 = vld [vmem:[#allocation2 + $0xaa0] sm:$0xff] }
 0x363   : > { %2051 = vmatpush.msrb.mxu0 %v3162_v18  ;;  %2071 = vmatpush.msrb.mxu1 %v3163_v22  ;;  %v3217_v18 = vld [vmem:[#allocation2 + $0xba0] sm:$0xff]  ;;  %v3218_v22 = vld [vmem:[#allocation2 + $0x850] sm:$0xff] }
 0x365   : > { %2052 = vmatpush.msrb.mxu0 %v3164_v3  ;;  %2072 = vmatpush.msrb.mxu1 %v3165_v5  ;;  %v3219_v3 = vld [vmem:[#allocation2 + $0x950] sm:$0xff] }
 0x366   : > { %v3220_v5 = vld [vmem:[#allocation2 + $0xa90] sm:$0xff] }
 0x367   : > { %2053 = vmatpush.msrb.mxu0 %v3166_v6  ;;  %2073 = vmatpush.msrb.mxu1 %v3167_v7  ;;  %v3222_v7 = vld [vmem:[#allocation2 + $0x840] sm:$0xff] }
 0x369   : > { %2054 = vmatpush.msrb.mxu0 %v3168_v9  ;;  %2074 = vmatpush.msrb.mxu1 %v3169_v10  ;;  %v3223_v9 = vld [vmem:[#allocation2 + $0x940] sm:$0xff] }
 0x36a   : > { %2995 = vmatmul.msk.f32.gmra.mxu0 %vm1806_vm7, %v1803_v35  ;;  %3004 = vmatmul.msk.f32.gmra.mxu1 %vm1806_vm7, %v1803_v35  ;;  %v3221_v35 = vld [vmem:[#allocation2 + $0xb90] sm:$0xff]  ;;  %v3224_v10 = vld [vmem:[#allocation2 + $0xa80] sm:$0xff] }
 0x36b   : > { %2055 = vmatpush.msrb.mxu0 %v3170_v11  ;;  %2075 = vmatpush.msrb.mxu1 %v3171_v39  ;;  %v3225_v11 = vld [vmem:[#allocation2 + $0xb80] sm:$0xff]  ;;  %v3226_v39 = vld [vmem:[#allocation2 + $0x830] sm:$0xff] }
 0x36d   : > { %2056 = vmatpush.msrb.mxu0 %v3172_v12  ;;  %2076 = vmatpush.msrb.mxu1 %v3173_v16  ;;  %v3227_v12 = vld [vmem:[#allocation2 + $0x930] sm:$0xff] }
 0x36f   : > { %2057 = vmatpush.msrb.mxu0 %v3174_v13  ;;  %2077 = vmatpush.msrb.mxu1 %v3175_v14  ;;  %v3229_v13 = vld [vmem:[#allocation2 + $0xb70] sm:$0xff]  ;;  %v3230_v14 = vld [vmem:[#allocation2 + $0x820] sm:$0xff] }
 0x371   : > { %2058 = vmatpush.msrb.mxu0 %v3176_v15  ;;  %2078 = vmatpush.msrb.mxu1 %v3177_v19  ;;  %v3231_v15 = vld [vmem:[#allocation2 + $0x920] sm:$0xff] }
 0x372   : > { %2996 = vmatmul.msk.f32.gmra.mxu0 %vm1806_vm7, %v1804_v17  ;;  %3005 = vmatmul.msk.f32.gmra.mxu1 %vm1806_vm7, %v1804_v17  ;;  %v3228_v17 = vld [vmem:[#allocation2 + $0xa70] sm:$0xff]  ;;  %v3232_v19 = vld [vmem:[#allocation2 + $0xa60] sm:$0xff] }
 0x373   : > { %2059 = vmatpush.msrb.mxu0 %v3178_v46  ;;  %2079 = vmatpush.msrb.mxu1 %v3179_v52  ;;  %v3233_v46 = vld [vmem:[#allocation2 + $0xb60] sm:$0xff]  ;;  %v3234_v52 = vld [vmem:[#allocation2 + $0x810] sm:$0xff] }
 0x375   : > { %2060 = vmatpush.msrb.mxu0 %v3180_v20  ;;  %2080 = vmatpush.msrb.mxu1 %v3181_v21  ;;  %v3235_v20 = vld [vmem:[#allocation2 + $0x910] sm:$0xff] }
 0x376   : > { %v3236_v21 = vld [vmem:[#allocation2 + $0xa50] sm:$0xff] }
 0x377   : > { %2061 = vmatpush.msrb.mxu0 %v3182_v24  ;;  %2081 = vmatpush.msrb.mxu1 %v3183_v25  ;;  %v3238_v24 = vld [vmem:[#allocation2 + $0x800] sm:$0xff] }
 0x378   : > { %v3239_v25 = vld [vmem:[#allocation2 + $0x900] sm:$0xff] }
 0x379   : > { %2062 = vmatpush.msrb.mxu0 %v3184_v28  ;;  %2082 = vmatpush.msrb.mxu1 %v3185_v36  ;;  %v3240_v36 = vld [vmem:[#allocation2 + $0xa40] sm:$0xff] }
 0x37a   : > { %2997 = vmatmul.msk.f32.gmra.mxu0 %vm1806_vm7, %v1805_v23  ;;  %3006 = vmatmul.msk.f32.gmra.mxu1 %vm1806_vm7, %v1805_v23  ;;  %v3237_v23 = vld [vmem:[#allocation2 + $0xb50] sm:$0xff] }
 0x3b7   : > { %v3922_v37 = vpop.f32.mrf.mxu0  ;;  %v3924_v29 = vpop.f32.mrf.mxu1 }
 0x3b8   : > { %1943 = vmatmul.f32.vlgmr.msra.gmra.mxu2 %v3922_v37  ;;  %1963 = vmatmul.f32.vlgmr.msra.gmra.mxu3 %v3924_v29 }
 0x3b9   : > { %2087 = vmatpush.msra.mxu2 %v3186_v31  ;;  %2107 = vmatpush.msra.mxu3 %v3187_v32  ;;  %v3241_v31 = vld [vmem:[#allocation2 + $0xb40] sm:$0xff]  ;;  %v3242_v32 = vld [vmem:[#allocation2 + $0xcf0] sm:$0xff] }
 0x3bb   : > { %2088 = vmatpush.msra.mxu2 %v3188_v33  ;;  %2108 = vmatpush.msra.mxu3 %v3189_v34  ;;  %v3243_v33 = vld [vmem:[#allocation2 + $0xdf0] sm:$0xff] }
 0x3bc   : > { %v3244_v34 = vld [vmem:[#allocation2 + $0xa30] sm:$0xff] }
 0x3bd   : > { %2089 = vmatpush.msra.mxu2 %v3190_v40  ;;  %2109 = vmatpush.msra.mxu3 %v3191_v30  ;;  %v3245_v30 = vld [vmem:[#allocation2 + $0xb30] sm:$0xff] }
 0x3bf   : > { %2090 = vmatpush.msra.mxu2 %v3192_v38  ;;  %2110 = vmatpush.msra.mxu3 %v3193_v41  ;;  %v3928_v42 = vpop.f32.mrf.mxu0  ;;  %v3930_v26 = vpop.f32.mrf.mxu1  ;;  %v3246_v38 = vld [vmem:[#allocation2 + $0xce0] sm:$0xff] }
 0x3c0   : > { %1983 = vmatmul.f32.vlgmr.msra.gmra.mxu0 %v3928_v42  ;;  %2003 = vmatmul.f32.vlgmr.msra.gmra.mxu1 %v3930_v26  ;;  %v3247_v41 = vld [vmem:[#allocation2 + $0xde0] sm:$0xff] }
 0x3c1   : > { %2091 = vmatpush.msra.mxu2 %v3194_v27  ;;  %2111 = vmatpush.msra.mxu3 %v3195_v43  ;;  %v3248_v27 = vld [vmem:[#allocation2 + $0xa20] sm:$0xff] }
 0x3c2   : > { %2127 = vmatpush.msra.mxu0 %v3196_v44  ;;  %2147 = vmatpush.msra.mxu1 %v3197_v45  ;;  %v3249_v43 = vld [vmem:[#allocation2 + $0xb20] sm:$0xff]  ;;  %v3250_v44 = vld [vmem:[#allocation2 + $0xcd0] sm:$0xff] }
 0x3c3   : > { %2092 = vmatpush.msra.mxu2 %v3198_v47  ;;  %2112 = vmatpush.msra.mxu3 %v3199_v48  ;;  %v3251_v45 = vld [vmem:[#allocation2 + $0xdd0] sm:$0xff] }
 0x3c4   : > { %2128 = vmatpush.msra.mxu0 %v3200_v49  ;;  %2148 = vmatpush.msra.mxu1 %v3201_v50  ;;  %v3252_v47 = vld [vmem:[#allocation2 + $0xa10] sm:$0xff]  ;;  %v3254_v49 = vld [vmem:[#allocation2 + $0xcc0] sm:$0xff] }
 0x3c5   : > { %2093 = vmatpush.msra.mxu2 %v3202_v51  ;;  %2113 = vmatpush.msra.mxu3 %v3203_v60  ;;  %v3253_v48 = vld [vmem:[#allocation2 + $0xb10] sm:$0xff]  ;;  %v3255_v50 = vld [vmem:[#allocation2 + $0xdc0] sm:$0xff] }
 0x3c6   : > { %2129 = vmatpush.msra.mxu0 %v3204_v61  ;;  %2149 = vmatpush.msra.mxu1 %v3205_v53  ;;  %v3256_v51 = vld [vmem:[#allocation2 + $0xa00] sm:$0xff]  ;;  %v3258_v61 = vld [vmem:[#allocation2 + $0xcb0] sm:$0xff] }
 0x3c7   : > { %2094 = vmatpush.msra.mxu2 %v3206_v54  ;;  %2114 = vmatpush.msra.mxu3 %v3207_v55  ;;  %v3934_v56 = vpop.f32.mrf.mxu0  ;;  %v3936_v57 = vpop.f32.mrf.mxu1  ;;  %v3257_v60 = vld [vmem:[#allocation2 + $0xb00] sm:$0xff]  ;;  %v3259_v53 = vld [vmem:[#allocation2 + $0xdb0] sm:$0xff] }
 0x3c8   : > { %2130 = vmatpush.msra.mxu0 %v3208_v4  ;;  %2150 = vmatpush.msra.mxu1 %v3209_v8  ;;  %v3260_v54 = vld [vmem:[#allocation2 + $0xef0] sm:$0xff]  ;;  %v3262_v8 = vld [vmem:[#allocation2 + $0xca0] sm:$0xff] }
 0x3c9   : > { %2023 = vmatmul.f32.vlgmr.msrb.gmra.mxu2 %v3934_v56  ;;  %2115 = vmatpush.msra.mxu3 %v3210_v58  ;;  %v3261_v55 = vld [vmem:[#allocation2 + $0xff0] sm:$0xff]  ;;  %v3263_v58 = vld [vmem:[#allocation2 + $0xda0] sm:$0xff] }
 0x3ca   : > { %2095 = vmatpush.msra.mxu2 %v3211_v59  ;;  %2131 = vmatpush.msra.mxu0 %v3212_v62  ;;  %v3264_v59 = vld [vmem:[#allocation2 + $0xee0] sm:$0xff] }
 0x3cb   : > { %2151 = vmatpush.msra.mxu1 %v3213_v63  ;;  %2043 = vmatmul.f32.vlgmr.msrb.gmra.mxu3 %v3936_v57  ;;  %v3265_v62 = vld [vmem:[#allocation2 + $0xfe0] sm:$0xff] }
 0x3cc   : > { %2096 = vmatpush.msra.mxu2 %v3214_v0  ;;  %2116 = vmatpush.msra.mxu3 %v3215_v1  ;;  %v3266_v0 = vld [vmem:[#allocation2 + $0xc90] sm:$0xff] }
 0x3cd   : > { %2132 = vmatpush.msra.mxu0 %v3216_v2  ;;  %2152 = vmatpush.msra.mxu1 %v3217_v18  ;;  %v3267_v1 = vld [vmem:[#allocation2 + $0xd90] sm:$0xff] }
 0x3ce   : > { %2097 = vmatpush.msra.mxu2 %v3218_v22  ;;  %2117 = vmatpush.msra.mxu3 %v3219_v3  ;;  %v3268_v2 = vld [vmem:[#allocation2 + $0xed0] sm:$0xff]  ;;  %v3270_v22 = vld [vmem:[#allocation2 + $0xc80] sm:$0xff] }
 0x3cf   : > { %2133 = vmatpush.msra.mxu0 %v3220_v5  ;;  %2153 = vmatpush.msra.mxu1 %v3221_v35  ;;  %v3940_v6 = vpop.f32.mrf.mxu0  ;;  %v3942_v16 = vpop.f32.mrf.mxu1  ;;  %v3269_v18 = vld [vmem:[#allocation2 + $0xfd0] sm:$0xff]  ;;  %v3271_v3 = vld [vmem:[#allocation2 + $0xd80] sm:$0xff] }
 0x3d0   : > { %2098 = vmatpush.msra.mxu2 %v3222_v7  ;;  %2118 = vmatpush.msra.mxu3 %v3223_v9  ;;  %v3272_v5 = vld [vmem:[#allocation2 + $0xec0] sm:$0xff]  ;;  %v3274_v7 = vld [vmem:[#allocation2 + $0xc70] sm:$0xff] }
 0x3d1   : > { %2134 = vmatpush.msra.mxu0 %v3224_v10  ;;  %2154 = vmatpush.msra.mxu1 %v3225_v11  ;;  %v3273_v35 = vld [vmem:[#allocation2 + $0xfc0] sm:$0xff]  ;;  %v3275_v9 = vld [vmem:[#allocation2 + $0xd70] sm:$0xff] }
 0x3d2   : > { %2099 = vmatpush.msra.mxu2 %v3226_v39  ;;  %2119 = vmatpush.msra.mxu3 %v3227_v12  ;;  %v3276_v10 = vld [vmem:[#allocation2 + $0xeb0] sm:$0xff]  ;;  %v3278_v39 = vld [vmem:[#allocation2 + $0xc60] sm:$0xff] }
 0x3d3   : > { %2135 = vmatpush.msra.mxu0 %v3228_v17  ;;  %2155 = vmatpush.msra.mxu1 %v3229_v13  ;;  %v3277_v11 = vld [vmem:[#allocation2 + $0xfb0] sm:$0xff]  ;;  %v3279_v12 = vld [vmem:[#allocation2 + $0xd60] sm:$0xff] }
 0x3d4   : > { %2063 = vmatmul.f32.vlgmr.msrb.gmra.mxu0 %v3940_v6  ;;  %2100 = vmatpush.msra.mxu2 %v3230_v14  ;;  %v3280_v17 = vld [vmem:[#allocation2 + $0xea0] sm:$0xff]  ;;  %v3282_v14 = vld [vmem:[#allocation2 + $0xc50] sm:$0xff] }
 0x3d5   : > { %2120 = vmatpush.msra.mxu3 %v3231_v15  ;;  %2136 = vmatpush.msra.mxu0 %v3232_v19  ;;  %v3281_v13 = vld [vmem:[#allocation2 + $0xfa0] sm:$0xff]  ;;  %v3283_v15 = vld [vmem:[#allocation2 + $0xd50] sm:$0xff] }
 0x3d6   : > { %2156 = vmatpush.msra.mxu1 %v3233_v46  ;;  %2101 = vmatpush.msra.mxu2 %v3234_v52  ;;  %v3284_v19 = vld [vmem:[#allocation2 + $0xe90] sm:$0xff]  ;;  %v3286_v52 = vld [vmem:[#allocation2 + $0xc40] sm:$0xff] }
 0x3d7   : > { %2083 = vmatmul.f32.vlgmr.msrb.gmra.mxu1 %v3942_v16  ;;  %2121 = vmatpush.msra.mxu3 %v3235_v20  ;;  %v3946_v28 = vpop.f32.mrf.mxu0  ;;  %v3949_v40 = vpop.f32.mrf.mxu1  ;;  %v3285_v46 = vld [vmem:[#allocation2 + $0xf90] sm:$0xff]  ;;  %v3287_v20 = vld [vmem:[#allocation2 + $0xd40] sm:$0xff] }
 0x3d8   : > { %2137 = vmatpush.msra.mxu0 %v3236_v21  ;;  %2157 = vmatpush.msra.mxu1 %v3237_v23  ;;  %v3288_v21 = vld [vmem:[#allocation2 + $0xe80] sm:$0xff] }
 0x3d9   : > { %2102 = vmatpush.msra.mxu2 %v3238_v24  ;;  %2122 = vmatpush.msra.mxu3 %v3239_v25  ;;  %v3289_v23 = vld [vmem:[#allocation2 + $0xf80] sm:$0xff]  ;;  %v3290_v24 = vld [vmem:[#allocation2 + $0xc30] sm:$0xff] }
 0x3da   : > { %2138 = vmatpush.msra.mxu0 %v3240_v36  ;;  %2158 = vmatpush.msra.mxu1 %v3241_v31  ;;  %v3291_v25 = vld [vmem:[#allocation2 + $0xd30] sm:$0xff] }
 0x3db   : > { %2167 = vmatpush.msrb.mxu2 %v3242_v32  ;;  %2187 = vmatpush.msrb.mxu3 %v3243_v33  ;;  %v3292_v36 = vld [vmem:[#allocation2 + $0xe70] sm:$0xff]  ;;  %v3294_v32 = vld [vmem:[#allocation2 + $0xc20] sm:$0xff] }
 0x3dc   : > { %2103 = vmatmul.f32.vlgmr.msra.gmra.mxu2 %v3946_v28  ;;  %2139 = vmatpush.msra.mxu0 %v3244_v34  ;;  %v3293_v31 = vld [vmem:[#allocation2 + $0xf70] sm:$0xff]  ;;  %v3295_v33 = vld [vmem:[#allocation2 + $0xd20] sm:$0xff] }
 0x3dd   : > { %2159 = vmatpush.msra.mxu1 %v3245_v30  ;;  %2168 = vmatpush.msrb.mxu2 %v3246_v38  ;;  %v3296_v34 = vld [vmem:[#allocation2 + $0xe60] sm:$0xff]  ;;  %v3298_v38 = vld [vmem:[#allocation2 + $0xc10] sm:$0xff] }
 0x3de   : > { %2188 = vmatpush.msrb.mxu3 %v3247_v41  ;;  %2140 = vmatpush.msra.mxu0 %v3248_v27  ;;  %v3297_v30 = vld [vmem:[#allocation2 + $0xf60] sm:$0xff]  ;;  %v3299_v41 = vld [vmem:[#allocation2 + $0xd10] sm:$0xff] }
 0x3df   : > { %2123 = vmatmul.f32.vlgmr.msra.gmra.mxu3 %v3949_v40  ;;  %2160 = vmatpush.msra.mxu1 %v3249_v43  ;;  %v3952_v4 = vpop.f32.mrf.mxu0  ;;  %v3955_v63 = vpop.f32.mrf.mxu1  ;;  %v3300_v27 = vld [vmem:[#allocation2 + $0xe50] sm:$0xff] }
 0x3e0   : > { %2169 = vmatpush.msrb.mxu2 %v3250_v44  ;;  %2189 = vmatpush.msrb.mxu3 %v3251_v45  ;;  %v3301_v43 = vld [vmem:[#allocation2 + $0xf50] sm:$0xff]  ;;  %v3302_v45 = vld [vmem:[#allocation2 + $0xc00] sm:$0xff] }
 0x3e1   : > { %2141 = vmatpush.msra.mxu0 %v3252_v47  ;;  %2161 = vmatpush.msra.mxu1 %v3253_v48  ;;  %v3303_v47 = vld [vmem:[#allocation2 + $0xd00] sm:$0xff] }
 0x3e2   : > { %2170 = vmatpush.msrb.mxu2 %v3254_v49  ;;  %2190 = vmatpush.msrb.mxu3 %v3255_v50  ;;  %v3304_v48 = vld [vmem:[#allocation2 + $0xe40] sm:$0xff] }
 0x3e3   : > { %2142 = vmatpush.msra.mxu0 %v3256_v51  ;;  %2162 = vmatpush.msra.mxu1 %v3257_v60  ;;  %v3305_v49 = vld [vmem:[#allocation2 + $0xf40] sm:$0xff]  ;;  %v3306_v51 = vld [vmem:[#allocation2 + $0x11f0] sm:$0xff] }
 0x3e4   : > { %2171 = vmatpush.msrb.mxu2 %v3258_v61  ;;  %2191 = vmatpush.msrb.mxu3 %v3259_v53  ;;  %v3307_v60 = vld [vmem:[#allocation2 + $0x10f0] sm:$0xff] }
 0x3e5   : > { %2207 = vmatpush.msrb.mxu0 %v3260_v54  ;;  %2227 = vmatpush.msrb.mxu1 %v3261_v55  ;;  %v3308_v61 = vld [vmem:[#allocation2 + $0xe30] sm:$0xff]  ;;  %v3310_v54 = vld [vmem:[#allocation2 + $0x10e0] sm:$0xff] }
 0x3e6   : > { %2172 = vmatpush.msrb.mxu2 %v3262_v8  ;;  %2192 = vmatpush.msrb.mxu3 %v3263_v58  ;;  %v3309_v53 = vld [vmem:[#allocation2 + $0xf30] sm:$0xff]  ;;  %v3311_v55 = vld [vmem:[#allocation2 + $0x11e0] sm:$0xff] }
 0x3e7   : > { %2208 = vmatpush.msrb.mxu0 %v3264_v59  ;;  %2228 = vmatpush.msrb.mxu1 %v3265_v62  ;;  %v3958_v44 = vpop.f32.mrf.mxu0  ;;  %v3960_v50 = vpop.f32.mrf.mxu1  ;;  %v3312_v8 = vld [vmem:[#allocation2 + $0xe20] sm:$0xff]  ;;  %v3314_v59 = vld [vmem:[#allocation2 + $0x10d0] sm:$0xff] }
 0x3e8   : > { %2143 = vmatmul.f32.vlgmr.msra.gmra.mxu0 %v3952_v4  ;;  %2173 = vmatpush.msrb.mxu2 %v3266_v0  ;;  %v3313_v58 = vld [vmem:[#allocation2 + $0xf20] sm:$0xff]  ;;  %v3315_v62 = vld [vmem:[#allocation2 + $0x11d0] sm:$0xff] }
 0x3e9   : > { %2193 = vmatpush.msrb.mxu3 %v3267_v1  ;;  %2209 = vmatpush.msrb.mxu0 %v3268_v2  ;;  %v3316_v0 = vld [vmem:[#allocation2 + $0xe10] sm:$0xff]  ;;  %v3318_v2 = vld [vmem:[#allocation2 + $0x10c0] sm:$0xff] }
 0x3ea   : > { %2229 = vmatpush.msrb.mxu1 %v3269_v18  ;;  %2174 = vmatpush.msrb.mxu2 %v3270_v22  ;;  %v3317_v1 = vld [vmem:[#allocation2 + $0xf10] sm:$0xff]  ;;  %v3319_v18 = vld [vmem:[#allocation2 + $0x11c0] sm:$0xff] }
 0x3eb   : > { %2163 = vmatmul.f32.vlgmr.msra.gmra.mxu1 %v3955_v63  ;;  %2194 = vmatpush.msrb.mxu3 %v3271_v3  ;;  %v3320_v22 = vld [vmem:[#allocation2 + $0xe00] sm:$0xff] }
 0x3ec   : > { %2210 = vmatpush.msrb.mxu0 %v3272_v5  ;;  %2230 = vmatpush.msrb.mxu1 %v3273_v35  ;;  %v3321_v3 = vld [vmem:[#allocation2 + $0xf00] sm:$0xff]  ;;  %v3322_v35 = vld [vmem:[#allocation2 + $0x10b0] sm:$0xff] }
 0x3ed   : > { %2175 = vmatpush.msrb.mxu2 %v3274_v7  ;;  %2195 = vmatpush.msrb.mxu3 %v3275_v9  ;;  %v3323_v7 = vld [vmem:[#allocation2 + $0x11b0] sm:$0xff]  ;;  %v3324_v9 = vld [vmem:[#allocation2 + $0xf8] sm:$0xff] }
 0x3ee   : > { %2211 = vmatpush.msrb.mxu0 %v3276_v10  ;;  %2231 = vmatpush.msrb.mxu1 %v3277_v11  ;;  %v3325_v10 = vld [vmem:[#allocation2 + $0x1f8] sm:$0xff]  ;;  %v3326_v11 = vld [vmem:[#allocation2 + $0x10a0] sm:$0xff] }
 0x3ef   : > { %2176 = vmatpush.msrb.mxu2 %v3278_v39  ;;  %2196 = vmatpush.msrb.mxu3 %v3279_v12  ;;  %v3964_v5 = vpop.f32.mrf.mxu0  ;;  %v3967_v39 = vpop.f32.mrf.mxu1  ;;  %v3327_v12 = vld [vmem:[#allocation2 + $0x11a0] sm:$0xff] }
 0x3f0   : > { %2212 = vmatpush.msrb.mxu0 %v3280_v17  ;;  %2232 = vmatpush.msrb.mxu1 %v3281_v13  ;;  %v3328_v17 = vld [vmem:[#allocation2 + $0xe8] sm:$0xff] }
 0x3f1   : > { %2177 = vmatpush.msrb.mxu2 %v3282_v14  ;;  %2197 = vmatpush.msrb.mxu3 %v3283_v15  ;;  %v3329_v13 = vld [vmem:[#allocation2 + $0x1e8] sm:$0xff]  ;;  %v3330_v14 = vld [vmem:[#allocation2 + $0x1090] sm:$0xff] }
 0x3f2   : > { %2213 = vmatpush.msrb.mxu0 %v3284_v19  ;;  %2233 = vmatpush.msrb.mxu1 %v3285_v46  ;;  %v3331_v15 = vld [vmem:[#allocation2 + $0x1190] sm:$0xff]  ;;  %v3332_v19 = vld [vmem:[#allocation2 + $0xd8] sm:$0xff] }
 0x3f3   : > { %2178 = vmatpush.msrb.mxu2 %v3286_v52  ;;  %2198 = vmatpush.msrb.mxu3 %v3287_v20  ;;  %v3333_v46 = vld [vmem:[#allocation2 + $0x1d8] sm:$0xff]  ;;  %v3334_v52 = vld [vmem:[#allocation2 + $0x1080] sm:$0xff] }
 0x3f4   : > { %2214 = vmatpush.msrb.mxu0 %v3288_v21  ;;  %2234 = vmatpush.msrb.mxu1 %v3289_v23  ;;  %v3335_v20 = vld [vmem:[#allocation2 + $0x1180] sm:$0xff]  ;;  %v3336_v21 = vld [vmem:[#allocation2 + $0xc8] sm:$0xff] }
 0x3f5   : > { %2179 = vmatpush.msrb.mxu2 %v3290_v24  ;;  %2199 = vmatpush.msrb.mxu3 %v3291_v25  ;;  %v3337_v23 = vld [vmem:[#allocation2 + $0x1c8] sm:$0xff]  ;;  %v3338_v24 = vld [vmem:[#allocation2 + $0x1070] sm:$0xff] }
 0x3f6   : > { %2215 = vmatpush.msrb.mxu0 %v3292_v36  ;;  %2235 = vmatpush.msrb.mxu1 %v3293_v31  ;;  %v3339_v25 = vld [vmem:[#allocation2 + $0x1170] sm:$0xff]  ;;  %v3340_v36 = vld [vmem:[#allocation2 + $0xb8] sm:$0xff] }
 0x3f7   : > { %2180 = vmatpush.msrb.mxu2 %v3294_v32  ;;  %2200 = vmatpush.msrb.mxu3 %v3295_v33  ;;  %v3341_v31 = vld [vmem:[#allocation2 + $0x1b8] sm:$0xff]  ;;  %v3342_v32 = vld [vmem:[#allocation2 + $0x1060] sm:$0xff] }
 0x3f8   : > { %2216 = vmatpush.msrb.mxu0 %v3296_v34  ;;  %2236 = vmatpush.msrb.mxu1 %v3297_v30  ;;  %v3343_v33 = vld [vmem:[#allocation2 + $0x1160] sm:$0xff]  ;;  %v3344_v34 = vld [vmem:[#allocation2 + $0xa8] sm:$0xff] }
 0x3f9   : > { %2181 = vmatpush.msrb.mxu2 %v3298_v38  ;;  %2201 = vmatpush.msrb.mxu3 %v3299_v41  ;;  %v3345_v30 = vld [vmem:[#allocation2 + $0x1a8] sm:$0xff]  ;;  %v3346_v38 = vld [vmem:[#allocation2 + $0x1050] sm:$0xff] }
 0x3fa   : > { %2217 = vmatpush.msrb.mxu0 %v3300_v27  ;;  %2237 = vmatpush.msrb.mxu1 %v3301_v43  ;;  %v3347_v41 = vld [vmem:[#allocation2 + $0x1150] sm:$0xff]  ;;  %v3348_v27 = vld [vmem:[#allocation2 + $0x98] sm:$0xff] }
 0x3fb   : > { %2182 = vmatpush.msrb.mxu2 %v3302_v45  ;;  %2202 = vmatpush.msrb.mxu3 %v3303_v47  ;;  %v3349_v43 = vld [vmem:[#allocation2 + $0x198] sm:$0xff]  ;;  %v3350_v45 = vld [vmem:[#allocation2 + $0x1040] sm:$0xff] }
 0x3fc   : > { %2218 = vmatpush.msrb.mxu0 %v3304_v48  ;;  %2238 = vmatpush.msrb.mxu1 %v3305_v49  ;;  %v3351_v47 = vld [vmem:[#allocation2 + $0x1140] sm:$0xff]  ;;  %v3352_v48 = vld [vmem:[#allocation2 + $0x88] sm:$0xff] }
 0x3fd   : > { %2183 = vmatmul.f32.vlgmr.msrb.gmra.mxu2 %v3958_v44  ;;  %2267 = vmatpush.msra.mxu3 %v3306_v51  ;;  %v3353_v49 = vld [vmem:[#allocation2 + $0x188] sm:$0xff]  ;;  %v3354_v51 = vld [vmem:[#allocation2 + $0x1030] sm:$0xff] }
 0x3fe   : > { %2247 = vmatpush.msra.mxu2 %v3307_v60  ;;  %2219 = vmatpush.msrb.mxu0 %v3308_v61  ;;  %v3355_v60 = vld [vmem:[#allocation2 + $0x1130] sm:$0xff]  ;;  %v3356_v61 = vld [vmem:[#allocation2 + $0x78] sm:$0xff] }
 0x3ff   : > { %2239 = vmatpush.msrb.mxu1 %v3309_v53  ;;  %2203 = vmatmul.f32.vlgmr.msrb.gmra.mxu3 %v3960_v50  ;;  %v3357_v53 = vld [vmem:[#allocation2 + $0x178] sm:$0xff] }
 0x400   : > { %2248 = vmatpush.msra.mxu2 %v3310_v54  ;;  %2268 = vmatpush.msra.mxu3 %v3311_v55  ;;  %v3358_v54 = vld [vmem:[#allocation2 + $0x1020] sm:$0xff] }
 0x401   : > { %2220 = vmatpush.msrb.mxu0 %v3312_v8  ;;  %2240 = vmatpush.msrb.mxu1 %v3313_v58  ;;  %v3359_v55 = vld [vmem:[#allocation2 + $0x1120] sm:$0xff]  ;;  %v3360_v8 = vld [vmem:[#allocation2 + $0x68] sm:$0xff] }
 0x402   : > { %2249 = vmatpush.msra.mxu2 %v3314_v59  ;;  %2269 = vmatpush.msra.mxu3 %v3315_v62  ;;  %v3361_v58 = vld [vmem:[#allocation2 + $0x168] sm:$0xff]  ;;  %v3362_v59 = vld [vmem:[#allocation2 + $0x1010] sm:$0xff] }
 0x403   : > { %2221 = vmatpush.msrb.mxu0 %v3316_v0  ;;  %2241 = vmatpush.msrb.mxu1 %v3317_v1  ;;  %v3363_v62 = vld [vmem:[#allocation2 + $0x1110] sm:$0xff]  ;;  %v3364_v0 = vld [vmem:[#allocation2 + $0x58] sm:$0xff] }
 0x404   : > { %2250 = vmatpush.msra.mxu2 %v3318_v2  ;;  %2270 = vmatpush.msra.mxu3 %v3319_v18  ;;  %v3365_v1 = vld [vmem:[#allocation2 + $0x158] sm:$0xff]  ;;  %v3970_v2 = vpop.f32.mrf.mxu0  ;;  %v3366_v18 = vld [vmem:[#allocation2 + $0x1000] sm:$0xff] }
 0x405   : > { %2222 = vmatpush.msrb.mxu0 %v3320_v22  ;;  %2242 = vmatpush.msrb.mxu1 %v3321_v3  ;;  %v3367_v22 = vld [vmem:[#allocation2 + $0x1100] sm:$0xff]  ;;  %v3368_v3 = vld [vmem:[#allocation2 + $0x48] sm:$0xff] }
 0x406   : > { %2251 = vmatpush.msra.mxu2 %v3322_v35  ;;  %2271 = vmatpush.msra.mxu3 %v3323_v7  ;;  %v3369_v35 = vld [vmem:[#allocation2 + $0x148] sm:$0xff]  ;;  %v3972_v7 = vpop.f32.mrf.mxu1 }
 0x407   : > { %2287 = vmatpush.msra.mxu0 %v3324_v9  ;;  %2307 = vmatpush.msra.mxu1 %v3325_v10  ;;  %v3370_v9 = vld [vmem:[#allocation2 + $0x3f8] sm:$0xff] }
 0x408   : > { %2223 = vmatmul.f32.vlgmr.msrb.gmra.mxu0 %v3964_v5  ;;  %2252 = vmatpush.msra.mxu2 %v3326_v11  ;;  %v3371_v10 = vld [vmem:[#allocation2 + $0x2f8] sm:$0xff] }
 0x409   : > { %2272 = vmatpush.msra.mxu3 %v3327_v12  ;;  %2288 = vmatpush.msra.mxu0 %v3328_v17  ;;  %v3372_v11 = vld [vmem:[#allocation2 + $0x38] sm:$0xff]  ;;  %v3374_v17 = vld [vmem:[#allocation2 + $0x2e8] sm:$0xff] }
 0x40a   : > { %2308 = vmatpush.msra.mxu1 %v3329_v13  ;;  %2253 = vmatpush.msra.mxu2 %v3330_v14  ;;  %v3373_v12 = vld [vmem:[#allocation2 + $0x138] sm:$0xff]  ;;  %v3375_v13 = vld [vmem:[#allocation2 + $0x3e8] sm:$0xff] }
 0x40b   : > { %2243 = vmatmul.f32.vlgmr.msrb.gmra.mxu1 %v3967_v39  ;;  %2273 = vmatpush.msra.mxu3 %v3331_v15  ;;  %v3376_v14 = vld [vmem:[#allocation2 + $0x28] sm:$0xff] }
 0x40c   : > { %2289 = vmatpush.msra.mxu0 %v3332_v19  ;;  %2309 = vmatpush.msra.mxu1 %v3333_v46  ;;  %v3377_v15 = vld [vmem:[#allocation2 + $0x128] sm:$0xff]  ;;  %v3378_v19 = vld [vmem:[#allocation2 + $0x2d8] sm:$0xff] }
 0x40d   : > { %2254 = vmatpush.msra.mxu2 %v3334_v52  ;;  %2274 = vmatpush.msra.mxu3 %v3335_v20  ;;  %v3379_v46 = vld [vmem:[#allocation2 + $0x3d8] sm:$0xff] }
 0x40e   : > { %2290 = vmatpush.msra.mxu0 %v3336_v21  ;;  %2310 = vmatpush.msra.mxu1 %v3337_v23  ;;  %v3380_v52 = vld [vmem:[#allocation2 + $0x18] sm:$0xff]  ;;  %v3382_v21 = vld [vmem:[#allocation2 + $0x2c8] sm:$0xff] }
 0x40f   : > { %2255 = vmatpush.msra.mxu2 %v3338_v24  ;;  %2275 = vmatpush.msra.mxu3 %v3339_v25  ;;  %v3381_v20 = vld [vmem:[#allocation2 + $0x118] sm:$0xff]  ;;  %v3383_v23 = vld [vmem:[#allocation2 + $0x3c8] sm:$0xff] }
 0x410   : > { %2291 = vmatpush.msra.mxu0 %v3340_v36  ;;  %2311 = vmatpush.msra.mxu1 %v3341_v31  ;;  %v3384_v24 = vld [vmem:[#allocation2 + $0x8] sm:$0xff]  ;;  %v3386_v36 = vld [vmem:[#allocation2 + $0x2b8] sm:$0xff] }
 0x411   : > { %2256 = vmatpush.msra.mxu2 %v3342_v32  ;;  %2276 = vmatpush.msra.mxu3 %v3343_v33  ;;  %v3385_v25 = vld [vmem:[#allocation2 + $0x108] sm:$0xff]  ;;  %v3387_v31 = vld [vmem:[#allocation2 + $0x3b8] sm:$0xff] }
 0x412   : > { %2292 = vmatpush.msra.mxu0 %v3344_v34  ;;  %2312 = vmatpush.msra.mxu1 %v3345_v30  ;;  %v3388_v32 = vld [vmem:[#allocation2 + $0x4f8] sm:$0xff]  ;;  %v3390_v34 = vld [vmem:[#allocation2 + $0x2a8] sm:$0xff] }
 0x413   : > { %2257 = vmatpush.msra.mxu2 %v3346_v38  ;;  %2277 = vmatpush.msra.mxu3 %v3347_v41  ;;  %v3389_v33 = vld [vmem:[#allocation2 + $0x5f8] sm:$0xff]  ;;  %v3391_v30 = vld [vmem:[#allocation2 + $0x3a8] sm:$0xff] }
 0x414   : > { %2293 = vmatpush.msra.mxu0 %v3348_v27  ;;  %2313 = vmatpush.msra.mxu1 %v3349_v43  ;;  %v3392_v38 = vld [vmem:[#allocation2 + $0x4e8] sm:$0xff]  ;;  %v3394_v27 = vld [vmem:[#allocation2 + $0x298] sm:$0xff] }
 0x415   : > { %2258 = vmatpush.msra.mxu2 %v3350_v45  ;;  %2278 = vmatpush.msra.mxu3 %v3351_v47  ;;  %v3393_v41 = vld [vmem:[#allocation2 + $0x5e8] sm:$0xff]  ;;  %v3397_v43 = vld [vmem:[#allocation2 + $0x5d8] sm:$0xff] }
 0x416   : > { %2294 = vmatpush.msra.mxu0 %v3352_v48  ;;  %2314 = vmatpush.msra.mxu1 %v3353_v49  ;;  %v3398_v45 = vld [vmem:[#allocation2 + $0x288] sm:$0xff] }
 0x417   : > { %2259 = vmatpush.msra.mxu2 %v3354_v51  ;;  %2279 = vmatpush.msra.mxu3 %v3355_v60  ;;  %v3399_v47 = vld [vmem:[#allocation2 + $0x388] sm:$0xff]  ;;  %v3402_v51 = vld [vmem:[#allocation2 + $0x278] sm:$0xff] }
 0x418   : > { %2295 = vmatpush.msra.mxu0 %v3356_v61  ;;  %2315 = vmatpush.msra.mxu1 %v3357_v53  ;;  %v3400_v48 = vld [vmem:[#allocation2 + $0x4c8] sm:$0xff]  ;;  %v3403_v60 = vld [vmem:[#allocation2 + $0x378] sm:$0xff] }
 0x419   : > { %2260 = vmatpush.msra.mxu2 %v3358_v54  ;;  %2280 = vmatpush.msra.mxu3 %v3359_v55  ;;  %v3401_v49 = vld [vmem:[#allocation2 + $0x5c8] sm:$0xff]  ;;  %v3404_v61 = vld [vmem:[#allocation2 + $0x4b8] sm:$0xff] }
 0x41a   : > { %2296 = vmatpush.msra.mxu0 %v3360_v8  ;;  %2316 = vmatpush.msra.mxu1 %v3361_v58  ;;  %v3405_v53 = vld [vmem:[#allocation2 + $0x5b8] sm:$0xff]  ;;  %v3406_v54 = vld [vmem:[#allocation2 + $0x268] sm:$0xff] }
 0x41b   : > { %2261 = vmatpush.msra.mxu2 %v3362_v59  ;;  %2281 = vmatpush.msra.mxu3 %v3363_v62  ;;  %v3407_v55 = vld [vmem:[#allocation2 + $0x368] sm:$0xff]  ;;  %v3410_v59 = vld [vmem:[#allocation2 + $0x258] sm:$0xff] }
 0x41c   : > { %2297 = vmatpush.msra.mxu0 %v3364_v0  ;;  %2317 = vmatpush.msra.mxu1 %v3365_v1  ;;  %v3408_v8 = vld [vmem:[#allocation2 + $0x4a8] sm:$0xff]  ;;  %v3411_v62 = vld [vmem:[#allocation2 + $0x358] sm:$0xff] }
 0x41d   : > { %2262 = vmatpush.msra.mxu2 %v3366_v18  ;;  %2282 = vmatpush.msra.mxu3 %v3367_v22  ;;  %v3409_v58 = vld [vmem:[#allocation2 + $0x5a8] sm:$0xff]  ;;  %v3412_v0 = vld [vmem:[#allocation2 + $0x498] sm:$0xff] }
 0x41e   : > { %2298 = vmatpush.msra.mxu0 %v3368_v3  ;;  %2318 = vmatpush.msra.mxu1 %v3369_v35  ;;  %v3413_v1 = vld [vmem:[#allocation2 + $0x598] sm:$0xff]  ;;  %v3414_v18 = vld [vmem:[#allocation2 + $0x248] sm:$0xff] }
 0x41f   : > { %2263 = vmatmul.f32.vlgmr.msra.gmra.mxu2 %v3970_v2  ;;  %2347 = vmatpush.msrb.mxu3 %v3370_v9  ;;  %v3415_v22 = vld [vmem:[#allocation2 + $0x348] sm:$0xff]  ;;  %v3418_v9 = vld [vmem:[#allocation2 + $0x238] sm:$0xff] }
 0x420   : > { %2327 = vmatpush.msrb.mxu2 %v3371_v10  ;;  %2299 = vmatpush.msra.mxu0 %v3372_v11  ;;  %v3416_v3 = vld [vmem:[#allocation2 + $0x488] sm:$0xff]  ;;  %v3419_v10 = vld [vmem:[#allocation2 + $0x338] sm:$0xff] }
 0x421   : > { %2319 = vmatpush.msra.mxu1 %v3373_v12  ;;  %2283 = vmatmul.f32.vlgmr.msra.gmra.mxu3 %v3972_v7  ;;  %v3417_v35 = vld [vmem:[#allocation2 + $0x588] sm:$0xff]  ;;  %v3420_v11 = vld [vmem:[#allocation2 + $0x478] sm:$0xff] }
 0x422   : > { %2328 = vmatpush.msrb.mxu2 %v3374_v17  ;;  %2348 = vmatpush.msrb.mxu3 %v3375_v13  ;;  %v3421_v12 = vld [vmem:[#allocation2 + $0x578] sm:$0xff]  ;;  %v3422_v17 = vld [vmem:[#allocation2 + $0x228] sm:$0xff] }
 0x423   : > { %2300 = vmatpush.msra.mxu0 %v3376_v14  ;;  %2320 = vmatpush.msra.mxu1 %v3377_v15  ;;  %v3423_v13 = vld [vmem:[#allocation2 + $0x328] sm:$0xff] }
 0x424   : > { %2329 = vmatpush.msrb.mxu2 %v3378_v19  ;;  %2349 = vmatpush.msrb.mxu3 %v3379_v46  ;;  %v3424_v14 = vld [vmem:[#allocation2 + $0x468] sm:$0xff]  ;;  %v3426_v19 = vld [vmem:[#allocation2 + $0x218] sm:$0xff] }
 0x425   : > { %2301 = vmatpush.msra.mxu0 %v3380_v52  ;;  %2321 = vmatpush.msra.mxu1 %v3381_v20  ;;  %v3425_v15 = vld [vmem:[#allocation2 + $0x568] sm:$0xff]  ;;  %v3427_v46 = vld [vmem:[#allocation2 + $0x318] sm:$0xff] }
 0x426   : > { %2330 = vmatpush.msrb.mxu2 %v3382_v21  ;;  %2350 = vmatpush.msrb.mxu3 %v3383_v23  ;;  %v3428_v52 = vld [vmem:[#allocation2 + $0x458] sm:$0xff]  ;;  %v3430_v21 = vld [vmem:[#allocation2 + $0x208] sm:$0xff] }
 0x427   : > { %2302 = vmatpush.msra.mxu0 %v3384_v24  ;;  %2322 = vmatpush.msra.mxu1 %v3385_v25  ;;  %v3429_v20 = vld [vmem:[#allocation2 + $0x558] sm:$0xff]  ;;  %v3431_v23 = vld [vmem:[#allocation2 + $0x308] sm:$0xff] }
 0x428   : > { %2303 = vmatmul.f32.vlgmr.msra.gmra.mxu0 %v3922_v37  ;;  %2323 = vmatmul.f32.vlgmr.msra.gmra.mxu1 %v3924_v29  ;;  %v3395_v37 = vld [vmem:[#allocation2 + $0x398] sm:$0xff]  ;;  %v3432_v24 = vld [vmem:[#allocation2 + $0x448] sm:$0xff] }
 0x429   : > { %2331 = vmatpush.msrb.mxu2 %v3386_v36  ;;  %2351 = vmatpush.msrb.mxu3 %v3387_v31  ;;  %v3396_v29 = vld [vmem:[#allocation2 + $0x4d8] sm:$0xff]  ;;  %v3433_v25 = vld [vmem:[#allocation2 + $0x548] sm:$0xff] }
 0x42a   : > { %2367 = vmatpush.msrb.mxu0 %v3388_v32  ;;  %2387 = vmatpush.msrb.mxu1 %v3389_v33  ;;  %v3434_v36 = vld [vmem:[#allocation2 + $0x6f8] sm:$0xff] }
 0x42b   : > { %2332 = vmatpush.msrb.mxu2 %v3390_v34  ;;  %2352 = vmatpush.msrb.mxu3 %v3391_v30  ;;  %v3435_v31 = vld [vmem:[#allocation2 + $0x7f8] sm:$0xff]  ;;  %v3438_v34 = vld [vmem:[#allocation2 + $0x6e8] sm:$0xff] }
 0x42c   : > { %2368 = vmatpush.msrb.mxu0 %v3392_v38  ;;  %2388 = vmatpush.msrb.mxu1 %v3393_v41  ;;  %v3436_v32 = vld [vmem:[#allocation2 + $0x438] sm:$0xff]  ;;  %v3439_v30 = vld [vmem:[#allocation2 + $0x7e8] sm:$0xff] }
 0x42d   : > { %2333 = vmatpush.msrb.mxu2 %v3394_v27  ;;  %2353 = vmatpush.msrb.mxu3 %v3395_v37  ;;  %v3437_v33 = vld [vmem:[#allocation2 + $0x538] sm:$0xff]  ;;  %v3440_v38 = vld [vmem:[#allocation2 + $0x428] sm:$0xff] }
 0x42e   : > { %2369 = vmatpush.msrb.mxu0 %v3396_v29  ;;  %2389 = vmatpush.msrb.mxu1 %v3397_v43  ;;  %v3441_v41 = vld [vmem:[#allocation2 + $0x528] sm:$0xff]  ;;  %v3442_v27 = vld [vmem:[#allocation2 + $0x6d8] sm:$0xff] }
 0x42f   : > { %2334 = vmatpush.msrb.mxu2 %v3398_v45  ;;  %2354 = vmatpush.msrb.mxu3 %v3399_v47  ;;  %v3445_v37 = vld [vmem:[#allocation2 + $0x518] sm:$0xff]  ;;  %v3446_v29 = vld [vmem:[#allocation2 + $0x6c8] sm:$0xff] }
 0x430   : > { %2370 = vmatpush.msrb.mxu0 %v3400_v48  ;;  %2390 = vmatpush.msrb.mxu1 %v3401_v49  ;;  %v3447_v43 = vld [vmem:[#allocation2 + $0x7c8] sm:$0xff]  ;;  %v3450_v48 = vld [vmem:[#allocation2 + $0x6b8] sm:$0xff] }
 0x431   : > { %2335 = vmatpush.msrb.mxu2 %v3402_v51  ;;  %2355 = vmatpush.msrb.mxu3 %v3403_v60  ;;  %v3448_v45 = vld [vmem:[#allocation2 + $0x408] sm:$0xff]  ;;  %v3451_v49 = vld [vmem:[#allocation2 + $0x7b8] sm:$0xff] }
 0x432   : > { %2371 = vmatpush.msrb.mxu0 %v3404_v61  ;;  %2391 = vmatpush.msrb.mxu1 %v3405_v53  ;;  %v3449_v47 = vld [vmem:[#allocation2 + $0x508] sm:$0xff]  ;;  %v3452_v51 = vld [vmem:[#allocation2 + $0x8f8] sm:$0xff] }
 0x433   : > { %2336 = vmatpush.msrb.mxu2 %v3406_v54  ;;  %2356 = vmatpush.msrb.mxu3 %v3407_v55  ;;  %v3453_v60 = vld [vmem:[#allocation2 + $0x9f8] sm:$0xff]  ;;  %v3454_v61 = vld [vmem:[#allocation2 + $0x6a8] sm:$0xff] }
 0x434   : > { %2372 = vmatpush.msrb.mxu0 %v3408_v8  ;;  %2392 = vmatpush.msrb.mxu1 %v3409_v58  ;;  %v3455_v53 = vld [vmem:[#allocation2 + $0x7a8] sm:$0xff]  ;;  %v3458_v8 = vld [vmem:[#allocation2 + $0x698] sm:$0xff] }
 0x435   : > { %2337 = vmatpush.msrb.mxu2 %v3410_v59  ;;  %2357 = vmatpush.msrb.mxu3 %v3411_v62  ;;  %v3456_v54 = vld [vmem:[#allocation2 + $0x8e8] sm:$0xff]  ;;  %v3461_v58 = vld [vmem:[#allocation2 + $0x9d8] sm:$0xff] }
 0x436   : > { %2373 = vmatpush.msrb.mxu0 %v3412_v0  ;;  %2393 = vmatpush.msrb.mxu1 %v3413_v1  ;;  %v3457_v55 = vld [vmem:[#allocation2 + $0x9e8] sm:$0xff] }
 0x437   : > { %2338 = vmatpush.msrb.mxu2 %v3414_v18  ;;  %2358 = vmatpush.msrb.mxu3 %v3415_v22  ;;  %v3462_v59 = vld [vmem:[#allocation2 + $0x688] sm:$0xff]  ;;  %v3466_v18 = vld [vmem:[#allocation2 + $0x678] sm:$0xff] }
 0x438   : > { %2374 = vmatpush.msrb.mxu0 %v3416_v3  ;;  %2394 = vmatpush.msrb.mxu1 %v3417_v35  ;;  %v3463_v62 = vld [vmem:[#allocation2 + $0x788] sm:$0xff]  ;;  %v3467_v22 = vld [vmem:[#allocation2 + $0x778] sm:$0xff] }
 0x439   : > { %2339 = vmatpush.msrb.mxu2 %v3418_v9  ;;  %2359 = vmatpush.msrb.mxu3 %v3419_v10  ;;  %v3464_v0 = vld [vmem:[#allocation2 + $0x8c8] sm:$0xff]  ;;  %v3468_v3 = vld [vmem:[#allocation2 + $0x8b8] sm:$0xff] }
 0x43a   : > { %2375 = vmatpush.msrb.mxu0 %v3420_v11  ;;  %2395 = vmatpush.msrb.mxu1 %v3421_v12  ;;  %v3465_v1 = vld [vmem:[#allocation2 + $0x9c8] sm:$0xff]  ;;  %v3469_v35 = vld [vmem:[#allocation2 + $0x9b8] sm:$0xff] }
 0x43b   : > { %2340 = vmatpush.msrb.mxu2 %v3422_v17  ;;  %2360 = vmatpush.msrb.mxu3 %v3423_v13  ;;  %v3470_v9 = vld [vmem:[#allocation2 + $0x668] sm:$0xff]  ;;  %v3474_v17 = vld [vmem:[#allocation2 + $0x658] sm:$0xff] }
 0x43c   : > { %2376 = vmatpush.msrb.mxu0 %v3424_v14  ;;  %2396 = vmatpush.msrb.mxu1 %v3425_v15  ;;  %v3471_v10 = vld [vmem:[#allocation2 + $0x768] sm:$0xff]  ;;  %v3475_v13 = vld [vmem:[#allocation2 + $0x758] sm:$0xff] }
 0x43d   : > { %2341 = vmatpush.msrb.mxu2 %v3426_v19  ;;  %2361 = vmatpush.msrb.mxu3 %v3427_v46  ;;  %v3472_v11 = vld [vmem:[#allocation2 + $0x8a8] sm:$0xff]  ;;  %v3476_v14 = vld [vmem:[#allocation2 + $0x898] sm:$0xff] }
 0x43e   : > { %2377 = vmatpush.msrb.mxu0 %v3428_v52  ;;  %2397 = vmatpush.msrb.mxu1 %v3429_v20  ;;  %v3473_v12 = vld [vmem:[#allocation2 + $0x9a8] sm:$0xff]  ;;  %v3477_v15 = vld [vmem:[#allocation2 + $0x998] sm:$0xff] }
 0x43f   : > { %2342 = vmatpush.msrb.mxu2 %v3430_v21  ;;  %2362 = vmatpush.msrb.mxu3 %v3431_v23  ;;  %v3478_v19 = vld [vmem:[#allocation2 + $0x648] sm:$0xff]  ;;  %v3482_v21 = vld [vmem:[#allocation2 + $0x638] sm:$0xff] }
 0x440   : > { %2378 = vmatpush.msrb.mxu0 %v3432_v24  ;;  %2398 = vmatpush.msrb.mxu1 %v3433_v25  ;;  %v3479_v46 = vld [vmem:[#allocation2 + $0x748] sm:$0xff]  ;;  %v3483_v23 = vld [vmem:[#allocation2 + $0x738] sm:$0xff] }
 0x441   : > { %2343 = vmatmul.f32.vlgmr.msrb.gmra.mxu2 %v3928_v42  ;;  %2363 = vmatmul.f32.vlgmr.msrb.gmra.mxu3 %v3930_v26  ;;  %v3443_v42 = vld [vmem:[#allocation2 + $0x7d8] sm:$0xff]  ;;  %v3480_v52 = vld [vmem:[#allocation2 + $0x888] sm:$0xff] }
 0x442   : > { %2407 = vmatpush.msra.mxu2 %v3434_v36  ;;  %2427 = vmatpush.msra.mxu3 %v3435_v31  ;;  %v3444_v26 = vld [vmem:[#allocation2 + $0x418] sm:$0xff]  ;;  %v3481_v20 = vld [vmem:[#allocation2 + $0x988] sm:$0xff] }
 0x443   : > { %2379 = vmatpush.msrb.mxu0 %v3436_v32  ;;  %2399 = vmatpush.msrb.mxu1 %v3437_v33  ;;  %v3484_v24 = vld [vmem:[#allocation2 + $0x878] sm:$0xff]  ;;  %v3486_v36 = vld [vmem:[#allocation2 + $0x628] sm:$0xff] }
 0x444   : > { %2408 = vmatpush.msra.mxu2 %v3438_v34  ;;  %2428 = vmatpush.msra.mxu3 %v3439_v30  ;;  %v3485_v25 = vld [vmem:[#allocation2 + $0x978] sm:$0xff]  ;;  %v3487_v31 = vld [vmem:[#allocation2 + $0x728] sm:$0xff] }
 0x445   : > { %2380 = vmatpush.msrb.mxu0 %v3440_v38  ;;  %2400 = vmatpush.msrb.mxu1 %v3441_v41  ;;  %v3488_v32 = vld [vmem:[#allocation2 + $0x868] sm:$0xff]  ;;  %v3490_v34 = vld [vmem:[#allocation2 + $0x618] sm:$0xff] }
 0x446   : > { %2409 = vmatpush.msra.mxu2 %v3442_v27  ;;  %2429 = vmatpush.msra.mxu3 %v3443_v42  ;;  %v3489_v33 = vld [vmem:[#allocation2 + $0x968] sm:$0xff]  ;;  %v3491_v30 = vld [vmem:[#allocation2 + $0x718] sm:$0xff] }
 0x447   : > { %2381 = vmatpush.msrb.mxu0 %v3444_v26  ;;  %2401 = vmatpush.msrb.mxu1 %v3445_v37  ;;  %v3492_v38 = vld [vmem:[#allocation2 + $0x858] sm:$0xff]  ;;  %v3494_v27 = vld [vmem:[#allocation2 + $0x608] sm:$0xff] }
 0x448   : > { %2410 = vmatpush.msra.mxu2 %v3446_v29  ;;  %2430 = vmatpush.msra.mxu3 %v3447_v43  ;;  %v3493_v41 = vld [vmem:[#allocation2 + $0x958] sm:$0xff]  ;;  %v3495_v42 = vld [vmem:[#allocation2 + $0x708] sm:$0xff] }
 0x449   : > { %2382 = vmatpush.msrb.mxu0 %v3448_v45  ;;  %2402 = vmatpush.msrb.mxu1 %v3449_v47  ;;  %v3496_v26 = vld [vmem:[#allocation2 + $0x848] sm:$0xff]  ;;  %v3498_v29 = vld [vmem:[#allocation2 + $0xaf8] sm:$0xff] }
 0x44a   : > { %2383 = vmatmul.f32.vlgmr.msrb.gmra.mxu0 %v3934_v56  ;;  %2403 = vmatmul.f32.vlgmr.msrb.gmra.mxu1 %v3936_v57  ;;  %v3459_v56 = vld [vmem:[#allocation2 + $0x798] sm:$0xff]  ;;  %v3497_v37 = vld [vmem:[#allocation2 + $0x948] sm:$0xff] }
 0x44b   : > { %2411 = vmatpush.msra.mxu2 %v3450_v48  ;;  %2431 = vmatpush.msra.mxu3 %v3451_v49  ;;  %v3460_v57 = vld [vmem:[#allocation2 + $0x8d8] sm:$0xff]  ;;  %v3502_v48 = vld [vmem:[#allocation2 + $0xae8] sm:$0xff] }
 0x44c   : > { %2447 = vmatpush.msra.mxu0 %v3452_v51  ;;  %2467 = vmatpush.msra.mxu1 %v3453_v60  ;;  %v3499_v43 = vld [vmem:[#allocation2 + $0xbf8] sm:$0xff]  ;;  %v3503_v49 = vld [vmem:[#allocation2 + $0xbe8] sm:$0xff] }
 0x44d   : > { %2412 = vmatpush.msra.mxu2 %v3454_v61  ;;  %2432 = vmatpush.msra.mxu3 %v3455_v53  ;;  %v3500_v45 = vld [vmem:[#allocation2 + $0x838] sm:$0xff]  ;;  %v3504_v51 = vld [vmem:[#allocation2 + $0x828] sm:$0xff] }
 0x44e   : > { %2448 = vmatpush.msra.mxu0 %v3456_v54  ;;  %2468 = vmatpush.msra.mxu1 %v3457_v55  ;;  %v3501_v47 = vld [vmem:[#allocation2 + $0x938] sm:$0xff]  ;;  %v3505_v60 = vld [vmem:[#allocation2 + $0x928] sm:$0xff] }
 0x44f   : > { %2413 = vmatpush.msra.mxu2 %v3458_v8  ;;  %2433 = vmatpush.msra.mxu3 %v3459_v56  ;;  %v3506_v61 = vld [vmem:[#allocation2 + $0xad8] sm:$0xff]  ;;  %v3510_v54 = vld [vmem:[#allocation2 + $0xac8] sm:$0xff] }
 0x450   : > { %2449 = vmatpush.msra.mxu0 %v3460_v57  ;;  %2469 = vmatpush.msra.mxu1 %v3461_v58  ;;  %v3509_v53 = vld [vmem:[#allocation2 + $0x918] sm:$0xff]  ;;  %v3511_v55 = vld [vmem:[#allocation2 + $0xbc8] sm:$0xff] }
 0x451   : > { %2414 = vmatpush.msra.mxu2 %v3462_v59  ;;  %2434 = vmatpush.msra.mxu3 %v3463_v62  ;;  %v3512_v8 = vld [vmem:[#allocation2 + $0x808] sm:$0xff]  ;;  %v3514_v57 = vld [vmem:[#allocation2 + $0xab8] sm:$0xff] }
 0x452   : > { %2450 = vmatpush.msra.mxu0 %v3464_v0  ;;  %2470 = vmatpush.msra.mxu1 %v3465_v1  ;;  %v3513_v56 = vld [vmem:[#allocation2 + $0x908] sm:$0xff]  ;;  %v3515_v58 = vld [vmem:[#allocation2 + $0xbb8] sm:$0xff] }
 0x453   : > { %2415 = vmatpush.msra.mxu2 %v3466_v18  ;;  %2435 = vmatpush.msra.mxu3 %v3467_v22  ;;  %v3516_v59 = vld [vmem:[#allocation2 + $0xcf8] sm:$0xff]  ;;  %v3518_v0 = vld [vmem:[#allocation2 + $0xaa8] sm:$0xff] }
 0x454   : > { %2451 = vmatpush.msra.mxu0 %v3468_v3  ;;  %2471 = vmatpush.msra.mxu1 %v3469_v35  ;;  %v3517_v62 = vld [vmem:[#allocation2 + $0xdf8] sm:$0xff]  ;;  %v3519_v1 = vld [vmem:[#allocation2 + $0xba8] sm:$0xff] }
 0x455   : > { %2416 = vmatpush.msra.mxu2 %v3470_v9  ;;  %2436 = vmatpush.msra.mxu3 %v3471_v10  ;;  %v3520_v18 = vld [vmem:[#allocation2 + $0xce8] sm:$0xff]  ;;  %v3522_v3 = vld [vmem:[#allocation2 + $0xa98] sm:$0xff] }
 0x456   : > { %2452 = vmatpush.msra.mxu0 %v3472_v11  ;;  %2472 = vmatpush.msra.mxu1 %v3473_v12  ;;  %v3521_v22 = vld [vmem:[#allocation2 + $0xde8] sm:$0xff]  ;;  %v3525_v35 = vld [vmem:[#allocation2 + $0xdd8] sm:$0xff] }
 0x457   : > { %2417 = vmatpush.msra.mxu2 %v3474_v17  ;;  %2437 = vmatpush.msra.mxu3 %v3475_v13  ;;  %v3526_v9 = vld [vmem:[#allocation2 + $0xa88] sm:$0xff]  ;;  %v3530_v17 = vld [vmem:[#allocation2 + $0xa78] sm:$0xff] }
 0x458   : > { %2453 = vmatpush.msra.mxu0 %v3476_v14  ;;  %2473 = vmatpush.msra.mxu1 %v3477_v15  ;;  %v3527_v10 = vld [vmem:[#allocation2 + $0xb88] sm:$0xff]  ;;  %v3531_v13 = vld [vmem:[#allocation2 + $0xb78] sm:$0xff] }
 0x459   : > { %2418 = vmatpush.msra.mxu2 %v3478_v19  ;;  %2438 = vmatpush.msra.mxu3 %v3479_v46  ;;  %v3528_v11 = vld [vmem:[#allocation2 + $0xcc8] sm:$0xff]  ;;  %v3532_v14 = vld [vmem:[#allocation2 + $0xcb8] sm:$0xff] }
 0x45a   : > { %2454 = vmatpush.msra.mxu0 %v3480_v52  ;;  %2474 = vmatpush.msra.mxu1 %v3481_v20  ;;  %v3529_v12 = vld [vmem:[#allocation2 + $0xdc8] sm:$0xff]  ;;  %v3533_v15 = vld [vmem:[#allocation2 + $0xdb8] sm:$0xff] }
 0x45b   : > { %2419 = vmatpush.msra.mxu2 %v3482_v21  ;;  %2439 = vmatpush.msra.mxu3 %v3483_v23  ;;  %v3534_v19 = vld [vmem:[#allocation2 + $0xa68] sm:$0xff]  ;;  %v3538_v21 = vld [vmem:[#allocation2 + $0xa58] sm:$0xff] }
 0x45c   : > { %2455 = vmatpush.msra.mxu0 %v3484_v24  ;;  %2475 = vmatpush.msra.mxu1 %v3485_v25  ;;  %v3535_v46 = vld [vmem:[#allocation2 + $0xb68] sm:$0xff]  ;;  %v3539_v23 = vld [vmem:[#allocation2 + $0xb58] sm:$0xff] }
 0x45d   : > { %2420 = vmatpush.msra.mxu2 %v3486_v36  ;;  %2440 = vmatpush.msra.mxu3 %v3487_v31  ;;  %v3536_v52 = vld [vmem:[#allocation2 + $0xca8] sm:$0xff]  ;;  %v3540_v24 = vld [vmem:[#allocation2 + $0xc98] sm:$0xff] }
 0x45e   : > { %2456 = vmatpush.msra.mxu0 %v3488_v32  ;;  %2476 = vmatpush.msra.mxu1 %v3489_v33  ;;  %v3537_v20 = vld [vmem:[#allocation2 + $0xda8] sm:$0xff]  ;;  %v3541_v25 = vld [vmem:[#allocation2 + $0xd98] sm:$0xff] }
 0x45f   : > { %2421 = vmatpush.msra.mxu2 %v3490_v34  ;;  %2441 = vmatpush.msra.mxu3 %v3491_v30  ;;  %v3542_v36 = vld [vmem:[#allocation2 + $0xa48] sm:$0xff]  ;;  %v3546_v34 = vld [vmem:[#allocation2 + $0xa38] sm:$0xff] }
 0x460   : > { %2457 = vmatpush.msra.mxu0 %v3492_v38  ;;  %2477 = vmatpush.msra.mxu1 %v3493_v41  ;;  %v3543_v31 = vld [vmem:[#allocation2 + $0xb48] sm:$0xff]  ;;  %v3547_v30 = vld [vmem:[#allocation2 + $0xb38] sm:$0xff] }
 0x461   : > { %2422 = vmatpush.msra.mxu2 %v3494_v27  ;;  %2442 = vmatpush.msra.mxu3 %v3495_v42  ;;  %v3544_v32 = vld [vmem:[#allocation2 + $0xc88] sm:$0xff]  ;;  %v3548_v38 = vld [vmem:[#allocation2 + $0xc78] sm:$0xff] }
 0x462   : > { %2458 = vmatpush.msra.mxu0 %v3496_v26  ;;  %2478 = vmatpush.msra.mxu1 %v3497_v37  ;;  %v3545_v33 = vld [vmem:[#allocation2 + $0xd88] sm:$0xff]  ;;  %v3549_v41 = vld [vmem:[#allocation2 + $0xd78] sm:$0xff] }
 0x463   : > { %2423 = vmatmul.f32.vlgmr.msra.gmra.mxu2 %v3940_v6  ;;  %2443 = vmatmul.f32.vlgmr.msra.gmra.mxu3 %v3942_v16  ;;  %v3507_v6 = vld [vmem:[#allocation2 + $0xbd8] sm:$0xff]  ;;  %v3550_v27 = vld [vmem:[#allocation2 + $0xa28] sm:$0xff] }
 0x464   : > { %2487 = vmatpush.msrb.mxu2 %v3498_v29  ;;  %2507 = vmatpush.msrb.mxu3 %v3499_v43  ;;  %v3508_v16 = vld [vmem:[#allocation2 + $0x818] sm:$0xff]  ;;  %v3551_v42 = vld [vmem:[#allocation2 + $0xb28] sm:$0xff] }
 0x465   : > { %2459 = vmatpush.msra.mxu0 %v3500_v45  ;;  %2479 = vmatpush.msra.mxu1 %v3501_v47  ;;  %v3552_v26 = vld [vmem:[#allocation2 + $0xc68] sm:$0xff]  ;;  %v3554_v29 = vld [vmem:[#allocation2 + $0xa18] sm:$0xff] }
 0x466   : > { %2488 = vmatpush.msrb.mxu2 %v3502_v48  ;;  %2508 = vmatpush.msrb.mxu3 %v3503_v49  ;;  %v3553_v37 = vld [vmem:[#allocation2 + $0xd68] sm:$0xff]  ;;  %v3555_v43 = vld [vmem:[#allocation2 + $0xb18] sm:$0xff] }
 0x467   : > { %2460 = vmatpush.msra.mxu0 %v3504_v51  ;;  %2480 = vmatpush.msra.mxu1 %v3505_v60  ;;  %v3556_v45 = vld [vmem:[#allocation2 + $0xc58] sm:$0xff]  ;;  %v3558_v48 = vld [vmem:[#allocation2 + $0xa08] sm:$0xff] }
 0x468   : > { %2489 = vmatpush.msrb.mxu2 %v3506_v61  ;;  %2509 = vmatpush.msrb.mxu3 %v3507_v6  ;;  %v3557_v47 = vld [vmem:[#allocation2 + $0xd58] sm:$0xff]  ;;  %v3559_v49 = vld [vmem:[#allocation2 + $0xb08] sm:$0xff] }
 0x469   : > { %2461 = vmatpush.msra.mxu0 %v3508_v16  ;;  %2481 = vmatpush.msra.mxu1 %v3509_v53  ;;  %v3560_v51 = vld [vmem:[#allocation2 + $0xc48] sm:$0xff]  ;;  %v3562_v61 = vld [vmem:[#allocation2 + $0xef8] sm:$0xff] }
 0x46a   : > { %2490 = vmatpush.msrb.mxu2 %v3510_v54  ;;  %2510 = vmatpush.msrb.mxu3 %v3511_v55  ;;  %v3561_v60 = vld [vmem:[#allocation2 + $0xd48] sm:$0xff]  ;;  %v3563_v6 = vld [vmem:[#allocation2 + $0xff8] sm:$0xff] }
 0x46b   : > { %2462 = vmatpush.msra.mxu0 %v3512_v8  ;;  %2482 = vmatpush.msra.mxu1 %v3513_v56  ;;  %v3564_v16 = vld [vmem:[#allocation2 + $0xc38] sm:$0xff]  ;;  %v3566_v54 = vld [vmem:[#allocation2 + $0xee8] sm:$0xff] }
 0x46c   : > { %2463 = vmatmul.f32.vlgmr.msra.gmra.mxu0 %v3946_v28  ;;  %2483 = vmatmul.f32.vlgmr.msra.gmra.mxu1 %v3949_v40  ;;  %v3523_v28 = vld [vmem:[#allocation2 + $0xb98] sm:$0xff]  ;;  %v3567_v55 = vld [vmem:[#allocation2 + $0xfe8] sm:$0xff] }
 0x46d   : > { %2491 = vmatpush.msrb.mxu2 %v3514_v57  ;;  %2511 = vmatpush.msrb.mxu3 %v3515_v58  ;;  %v3524_v40 = vld [vmem:[#allocation2 + $0xcd8] sm:$0xff]  ;;  %v3568_v8 = vld [vmem:[#allocation2 + $0xc28] sm:$0xff] }
 0x46e   : > { %2527 = vmatpush.msrb.mxu0 %v3516_v59  ;;  %2547 = vmatpush.msrb.mxu1 %v3517_v62  ;;  %v3565_v53 = vld [vmem:[#allocation2 + $0xd38] sm:$0xff]  ;;  %v3569_v56 = vld [vmem:[#allocation2 + $0xd28] sm:$0xff] }
 0x46f   : > { %2492 = vmatpush.msrb.mxu2 %v3518_v0  ;;  %2512 = vmatpush.msrb.mxu3 %v3519_v1  ;;  %v3570_v57 = vld [vmem:[#allocation2 + $0xed8] sm:$0xff]  ;;  %v3574_v59 = vld [vmem:[#allocation2 + $0xec8] sm:$0xff] }
 0x470   : > { %2528 = vmatpush.msrb.mxu0 %v3520_v18  ;;  %2548 = vmatpush.msrb.mxu1 %v3521_v22  ;;  %v3573_v58 = vld [vmem:[#allocation2 + $0xd18] sm:$0xff]  ;;  %v3575_v62 = vld [vmem:[#allocation2 + $0xfc8] sm:$0xff] }
 0x471   : > { %2493 = vmatpush.msrb.mxu2 %v3522_v3  ;;  %2513 = vmatpush.msrb.mxu3 %v3523_v28  ;;  %v3576_v0 = vld [vmem:[#allocation2 + $0xc08] sm:$0xff]  ;;  %v3578_v18 = vld [vmem:[#allocation2 + $0xeb8] sm:$0xff] }
 0x472   : > { %2529 = vmatpush.msrb.mxu0 %v3524_v40  ;;  %2549 = vmatpush.msrb.mxu1 %v3525_v35  ;;  %v3577_v1 = vld [vmem:[#allocation2 + $0xd08] sm:$0xff]  ;;  %v3579_v22 = vld [vmem:[#allocation2 + $0xfb8] sm:$0xff] }
 0x473   : > { %2494 = vmatpush.msrb.mxu2 %v3526_v9  ;;  %2514 = vmatpush.msrb.mxu3 %v3527_v10  ;;  %v3580_v3 = vld [vmem:[#allocation2 + $0x10f8] sm:$0xff]  ;;  %v3582_v40 = vld [vmem:[#allocation2 + $0xea8] sm:$0xff] }
 0x474   : > { %2530 = vmatpush.msrb.mxu0 %v3528_v11  ;;  %2550 = vmatpush.msrb.mxu1 %v3529_v12  ;;  %v3581_v28 = vld [vmem:[#allocation2 + $0x11f8] sm:$0xff]  ;;  %v3583_v35 = vld [vmem:[#allocation2 + $0xfa8] sm:$0xff] }
 0x475   : > { %2495 = vmatpush.msrb.mxu2 %v3530_v17  ;;  %2515 = vmatpush.msrb.mxu3 %v3531_v13  ;;  %v3584_v9 = vld [vmem:[#allocation2 + $0x10e8] sm:$0xff]  ;;  %v3586_v11 = vld [vmem:[#allocation2 + $0xe98] sm:$0xff] }
 0x476   : > { %2531 = vmatpush.msrb.mxu0 %v3532_v14  ;;  %2551 = vmatpush.msrb.mxu1 %v3533_v15  ;;  %v3585_v10 = vld [vmem:[#allocation2 + $0x11e8] sm:$0xff]  ;;  %v3589_v12 = vld [vmem:[#allocation2 + $0x11d8] sm:$0xff] }
 0x477   : > { %2496 = vmatpush.msrb.mxu2 %v3534_v19  ;;  %2516 = vmatpush.msrb.mxu3 %v3535_v46  ;;  %v3590_v17 = vld [vmem:[#allocation2 + $0xe88] sm:$0xff]  ;;  %v3594_v19 = vld [vmem:[#allocation2 + $0xe78] sm:$0xff] }
 0x478   : > { %2532 = vmatpush.msrb.mxu0 %v3536_v52  ;;  %2552 = vmatpush.msrb.mxu1 %v3537_v20  ;;  %v3591_v13 = vld [vmem:[#allocation2 + $0xf88] sm:$0xff]  ;;  %v3595_v46 = vld [vmem:[#allocation2 + $0xf78] sm:$0xff] }
 0x479   : > { %2497 = vmatpush.msrb.mxu2 %v3538_v21  ;;  %2517 = vmatpush.msrb.mxu3 %v3539_v23  ;;  %v3592_v14 = vld [vmem:[#allocation2 + $0x10c8] sm:$0xff]  ;;  %v3596_v52 = vld [vmem:[#allocation2 + $0x10b8] sm:$0xff] }
 0x47a   : > { %2533 = vmatpush.msrb.mxu0 %v3540_v24  ;;  %2553 = vmatpush.msrb.mxu1 %v3541_v25  ;;  %v3593_v15 = vld [vmem:[#allocation2 + $0x11c8] sm:$0xff]  ;;  %v3597_v20 = vld [vmem:[#allocation2 + $0x11b8] sm:$0xff] }
 0x47b   : > { %2498 = vmatpush.msrb.mxu2 %v3542_v36  ;;  %2518 = vmatpush.msrb.mxu3 %v3543_v31  ;;  %v3598_v21 = vld [vmem:[#allocation2 + $0xe68] sm:$0xff]  ;;  %v3602_v36 = vld [vmem:[#allocation2 + $0xe58] sm:$0xff] }
 0x47c   : > { %2534 = vmatpush.msrb.mxu0 %v3544_v32  ;;  %2554 = vmatpush.msrb.mxu1 %v3545_v33  ;;  %v3599_v23 = vld [vmem:[#allocation2 + $0xf68] sm:$0xff]  ;;  %v3603_v31 = vld [vmem:[#allocation2 + $0xf58] sm:$0xff] }
 0x47d   : > { %2499 = vmatpush.msrb.mxu2 %v3546_v34  ;;  %2519 = vmatpush.msrb.mxu3 %v3547_v30  ;;  %v3600_v24 = vld [vmem:[#allocation2 + $0x10a8] sm:$0xff]  ;;  %v3604_v32 = vld [vmem:[#allocation2 + $0x1098] sm:$0xff] }
 0x47e   : > { %2535 = vmatpush.msrb.mxu0 %v3548_v38  ;;  %2555 = vmatpush.msrb.mxu1 %v3549_v41  ;;  %v3601_v25 = vld [vmem:[#allocation2 + $0x11a8] sm:$0xff]  ;;  %v3605_v33 = vld [vmem:[#allocation2 + $0x1198] sm:$0xff] }
 0x47f   : > { %2500 = vmatpush.msrb.mxu2 %v3550_v27  ;;  %2520 = vmatpush.msrb.mxu3 %v3551_v42  ;;  %v3606_v34 = vld [vmem:[#allocation2 + $0xe48] sm:$0xff]  ;;  %v3610_v27 = vld [vmem:[#allocation2 + $0xe38] sm:$0xff] }
 0x480   : > { %2536 = vmatpush.msrb.mxu0 %v3552_v26  ;;  %2556 = vmatpush.msrb.mxu1 %v3553_v37  ;;  %v3607_v30 = vld [vmem:[#allocation2 + $0xf48] sm:$0xff]  ;;  %v3611_v42 = vld [vmem:[#allocation2 + $0xf38] sm:$0xff] }
 0x481   : > { %2501 = vmatpush.msrb.mxu2 %v3554_v29  ;;  %2521 = vmatpush.msrb.mxu3 %v3555_v43  ;;  %v3608_v38 = vld [vmem:[#allocation2 + $0x1088] sm:$0xff]  ;;  %v3612_v26 = vld [vmem:[#allocation2 + $0x1078] sm:$0xff] }
 0x482   : > { %2537 = vmatpush.msrb.mxu0 %v3556_v45  ;;  %2557 = vmatpush.msrb.mxu1 %v3557_v47  ;;  %v3609_v41 = vld [vmem:[#allocation2 + $0x1188] sm:$0xff]  ;;  %v3613_v37 = vld [vmem:[#allocation2 + $0x1178] sm:$0xff] }
 0x483   : > { %2502 = vmatpush.msrb.mxu2 %v3558_v48  ;;  %2522 = vmatpush.msrb.mxu3 %v3559_v49  ;;  %v3614_v29 = vld [vmem:[#allocation2 + $0xe28] sm:$0xff]  ;;  %v3618_v48 = vld [vmem:[#allocation2 + $0xe18] sm:$0xff] }
 0x484   : > { %2538 = vmatpush.msrb.mxu0 %v3560_v51  ;;  %2558 = vmatpush.msrb.mxu1 %v3561_v60  ;;  %v3615_v43 = vld [vmem:[#allocation2 + $0xf28] sm:$0xff]  ;;  %v3619_v49 = vld [vmem:[#allocation2 + $0xf18] sm:$0xff] }
 0x485   : > { %2503 = vmatmul.f32.vlgmr.msrb.gmra.mxu2 %v3952_v4  ;;  %2523 = vmatmul.f32.vlgmr.msrb.gmra.mxu3 %v3955_v63  ;;  %v3571_v4 = vld [vmem:[#allocation2 + $0xfd8] sm:$0xff]  ;;  %v3616_v45 = vld [vmem:[#allocation2 + $0x1068] sm:$0xff] }
 0x486   : > { %2567 = vmatpush.msra.mxu2 %v3562_v61  ;;  %2587 = vmatpush.msra.mxu3 %v3563_v6  ;;  %v3572_v63 = vld [vmem:[#allocation2 + $0xc18] sm:$0xff]  ;;  %v3617_v47 = vld [vmem:[#allocation2 + $0x1168] sm:$0xff] }
 0x487   : > { %2539 = vmatpush.msrb.mxu0 %v3564_v16  ;;  %2559 = vmatpush.msrb.mxu1 %v3565_v53  ;;  %v3620_v51 = vld [vmem:[#allocation2 + $0x1058] sm:$0xff]  ;;  %v3622_v61 = vld [vmem:[#allocation2 + $0xe08] sm:$0xff] }
 0x488   : > { %2568 = vmatpush.msra.mxu2 %v3566_v54  ;;  %2588 = vmatpush.msra.mxu3 %v3567_v55  ;;  %v3621_v60 = vld [vmem:[#allocation2 + $0x1158] sm:$0xff]  ;;  %v3623_v6 = vld [vmem:[#allocation2 + $0xf08] sm:$0xff] }
 0x489   : > { %2540 = vmatpush.msrb.mxu0 %v3568_v8  ;;  %2560 = vmatpush.msrb.mxu1 %v3569_v56  ;;  %v3624_v16 = vld [vmem:[#allocation2 + $0x1048] sm:$0xff]  ;;  %v3626_v54 = vld [vmem:[#allocation2 + $0x1038] sm:$0xff] }
 0x48a   : > { %2569 = vmatpush.msra.mxu2 %v3570_v57  ;;  %2589 = vmatpush.msra.mxu3 %v3571_v4  ;;  %v3625_v53 = vld [vmem:[#allocation2 + $0x1148] sm:$0xff]  ;;  %v3627_v55 = vld [vmem:[#allocation2 + $0x1138] sm:$0xff] }
 0x48b   : > { %2541 = vmatpush.msrb.mxu0 %v3572_v63  ;;  %2561 = vmatpush.msrb.mxu1 %v3573_v58  ;;  %v3628_v8 = vld [vmem:[#allocation2 + $0x1028] sm:$0xff]  ;;  %v3630_v57 = vld [vmem:[#allocation2 + $0x1018] sm:$0xff] }
 0x48c   : > { %2570 = vmatpush.msra.mxu2 %v3574_v59  ;;  %2590 = vmatpush.msra.mxu3 %v3575_v62  ;;  %v3629_v56 = vld [vmem:[#allocation2 + $0x1128] sm:$0xff]  ;;  %v3631_v4 = vld [vmem:[#allocation2 + $0x1118] sm:$0xff]  ;;  %v1964_v59 = vpop.f32.mrf.mxu3  ;;  %v2004_v62 = vpop.f32.mrf.mxu1 }
 0x48d   : > { %2542 = vmatpush.msrb.mxu0 %v3576_v0  ;;  %2562 = vmatpush.msrb.mxu1 %v3577_v1  ;;  %v3632_v63 = vld [vmem:[#allocation2 + $0x1008] sm:$0xff] }
 0x48e   : > { %2543 = vmatmul.f32.vlgmr.msrb.gmra.mxu0 %v3958_v44  ;;  %2563 = vmatmul.f32.vlgmr.msrb.gmra.mxu1 %v3960_v50  ;;  %v3587_v44 = vld [vmem:[#allocation2 + $0xf98] sm:$0xff]  ;;  %v3633_v58 = vld [vmem:[#allocation2 + $0x1108] sm:$0xff] }
 0x48f   : > { %2571 = vmatpush.msra.mxu2 %v3578_v18  ;;  %2591 = vmatpush.msra.mxu3 %v3579_v22  ;;  %v3588_v50 = vld [vmem:[#allocation2 + $0x10d8] sm:$0xff] }
 0x490   : > { %2607 = vmatpush.msra.mxu0 %v3580_v3  ;;  %2627 = vmatpush.msra.mxu1 %v3581_v28 }
 0x491   : > { %2572 = vmatpush.msra.mxu2 %v3582_v40  ;;  %2592 = vmatpush.msra.mxu3 %v3583_v35 }
 0x492   : > { %2608 = vmatpush.msra.mxu0 %v3584_v9  ;;  %2628 = vmatpush.msra.mxu1 %v3585_v10 }
 0x493   : > { %2573 = vmatpush.msra.mxu2 %v3586_v11  ;;  %2593 = vmatpush.msra.mxu3 %v3587_v44  ;;  %v1925_v11 = vpop.permute.xlu2 %1924 }
 0x494   : > { %2609 = vmatpush.msra.mxu0 %v3588_v50  ;;  %2629 = vmatpush.msra.mxu1 %v3589_v12  ;;  %v2044_v18 = vpop.f32.mrf.mxu3  ;;  %v2084_v22 = vpop.f32.mrf.mxu1 }
 0x495   : > { %2574 = vmatpush.msra.mxu2 %v3590_v17  ;;  %2594 = vmatpush.msra.mxu3 %v3591_v13 }
 0x496   : > { %2610 = vmatpush.msra.mxu0 %v3592_v14  ;;  %2630 = vmatpush.msra.mxu1 %v3593_v15 }
 0x497   : > { %2575 = vmatpush.msra.mxu2 %v3594_v19  ;;  %2595 = vmatpush.msra.mxu3 %v3595_v46 }
 0x498   : > { %2611 = vmatpush.msra.mxu0 %v3596_v52  ;;  %2631 = vmatpush.msra.mxu1 %v3597_v20 }
 0x499   : > { %2576 = vmatpush.msra.mxu2 %v3598_v21  ;;  %2596 = vmatpush.msra.mxu3 %v3599_v23 }
 0x49a   : > { %2612 = vmatpush.msra.mxu0 %v3600_v24  ;;  %2632 = vmatpush.msra.mxu1 %v3601_v25 }
 0x49b   : > { %2577 = vmatpush.msra.mxu2 %v3602_v36  ;;  %2597 = vmatpush.msra.mxu3 %v3603_v31 }
 0x49c   : > { %2613 = vmatpush.msra.mxu0 %v3604_v32  ;;  %2633 = vmatpush.msra.mxu1 %v3605_v33  ;;  %v2124_v40 = vpop.f32.mrf.mxu3  ;;  %v2164_v35 = vpop.f32.mrf.mxu1 }
 0x49d   : > { %2578 = vmatpush.msra.mxu2 %v3606_v34  ;;  %2598 = vmatpush.msra.mxu3 %v3607_v30 }
 0x49e   : > { %2614 = vmatpush.msra.mxu0 %v3608_v38  ;;  %2634 = vmatpush.msra.mxu1 %v3609_v41 }
 0x49f   : > { %2579 = vmatpush.msra.mxu2 %v3610_v27  ;;  %2599 = vmatpush.msra.mxu3 %v3611_v42 }
 0x4a0   : > { %2615 = vmatpush.msra.mxu0 %v3612_v26  ;;  %2635 = vmatpush.msra.mxu1 %v3613_v37 }
 0x4a1   : > { %2580 = vmatpush.msra.mxu2 %v3614_v29  ;;  %2600 = vmatpush.msra.mxu3 %v3615_v43 }
 0x4a2   : > { %2616 = vmatpush.msra.mxu0 %v3616_v45  ;;  %2636 = vmatpush.msra.mxu1 %v3617_v47 }
 0x4a3   : > { %2581 = vmatpush.msra.mxu2 %v3618_v48  ;;  %2601 = vmatpush.msra.mxu3 %v3619_v49 }
 0x4a4   : > { %2617 = vmatpush.msra.mxu0 %v3620_v51  ;;  %2637 = vmatpush.msra.mxu1 %v3621_v60  ;;  %v2204_v50 = vpop.f32.mrf.mxu3 }
 0x4a5   : > { %2582 = vmatpush.msra.mxu2 %v3622_v61  ;;  %2602 = vmatpush.msra.mxu3 %v3623_v6 }
 0x4a6   : > { %2618 = vmatpush.msra.mxu0 %v3624_v16  ;;  %2638 = vmatpush.msra.mxu1 %v3625_v53 }
 0x4a7   : > { %2583 = vmatmul.f32.vlgmr.msra.gmra.mxu2 %v3964_v5  ;;  %2603 = vmatmul.f32.vlgmr.msra.gmra.mxu3 %v3967_v39  ;;  %v1944_v5 = vpop.f32.mrf.mxu2  ;;  %v1984_v39 = vpop.f32.mrf.mxu0 }
 0x4a8   : > { %2619 = vmatpush.msra.mxu0 %v3626_v54  ;;  %2639 = vmatpush.msra.mxu1 %v3627_v55  ;;  %v1945_v44 = vadd.f32 %v1944_v5, %v1925_v11 }
 0x4aa   : > { %2620 = vmatpush.msra.mxu0 %v3628_v8  ;;  %2640 = vmatpush.msra.mxu1 %v3629_v56 }
 0x4ac   : > { %2621 = vmatpush.msra.mxu0 %v3630_v57  ;;  %2641 = vmatpush.msra.mxu1 %v3631_v4  ;;  %v2284_v15 = vpop.f32.mrf.mxu3 }
 0x4ae   : > { %2622 = vmatpush.msra.mxu0 %v3632_v63  ;;  %2642 = vmatpush.msra.mxu1 %v3633_v58 }
 0x4af   : > { %2623 = vmatmul.f32.vlgmr.msra.gmra.mxu0 %v3970_v2  ;;  %2643 = vmatmul.f32.vlgmr.msra.gmra.mxu1 %v3972_v7  ;;  %v2024_v0 = vpop.f32.mrf.mxu2  ;;  %v2064_v1 = vpop.f32.mrf.mxu0  ;;  %v1965_v7 = vadd.f32 %v1964_v59, %v1945_v44  ;;  %v2967_v44 = vld [vmem:[%s4063_s6 + $0x40] sm:$0xff] }
 0x4b0   : > { %v2244_v2 = vpop.f32.mrf.mxu1 }
 0x4b1   : > { %v1985_v13 = vadd.f32 %v1984_v39, %v1965_v7 }
 0x4b3   : > { %v2005_v52 = vadd.f32 %v2004_v62, %v1985_v13 }
 0x4b5   : > { %v2025_v21 = vadd.f32 %v2024_v0, %v2005_v52 }
 0x4b7   : > { %v2104_v3 = vpop.f32.mrf.mxu2  ;;  %v2144_v28 = vpop.f32.mrf.mxu0  ;;  %v2045_v25 = vadd.f32 %v2044_v18, %v2025_v21 }
 0x4b8   : > { %v2324_v19 = vpop.f32.mrf.mxu1 }
 0x4b9   : > { %v2065_v32 = vadd.f32 %v2064_v1, %v2045_v25  ;;  %v2963_v25 = vld [vmem:[%s4063_s6 + $0x20] sm:$0xff] }
 0x4bb   : > { %v2085_v38 = vadd.f32 %v2084_v22, %v2065_v32 }
 0x4bd   : > { %v2105_v27 = vadd.f32 %v2104_v3, %v2085_v38 }
 0x4bf   : > { %v2184_v9 = vpop.f32.mrf.mxu2  ;;  %v2224_v10 = vpop.f32.mrf.mxu0  ;;  %v2125_v37 = vadd.f32 %v2124_v40, %v2105_v27 }
 0x4c1   : > { %v2145_v45 = vadd.f32 %v2144_v28, %v2125_v37 }
 0x4c3   : > { %v2165_v51 = vadd.f32 %v2164_v35, %v2145_v45 }
 0x4c4   : > { %v2364_v24 = vpop.f32.mrf.mxu3 }
 0x4c5   : > { %v2185_v61 = vadd.f32 %v2184_v9, %v2165_v51 }
 0x4c7   : > { %v2264_v12 = vpop.f32.mrf.mxu2  ;;  %v2304_v17 = vpop.f32.mrf.mxu0  ;;  %v2205_v53 = vadd.f32 %v2204_v50, %v2185_v61  ;;  %v2694_v50 = vld.sshfl [vmem:[#allocation1] sm:$0xff pattern:$0x75316420] }
 0x4c8   : > { %v2305_v14 = vadd.f32 %v2304_v17, %v1925_v11  ;;  %v2404_v34 = vpop.f32.mrf.mxu1  ;;  %v2968_v11 = vld [vmem:[%s4063_s6 + $0x48] sm:$0xff]  ;;  %3007 = vmatpush.msk.msrb.mxu2 %vm357_vm0, %v2694_v50 }
 0x4c9   : > { %v2225_v8 = vadd.f32 %v2224_v10, %v2205_v53  ;;  %v2964_v10 = vld [vmem:[%s4063_s6 + $0x28] sm:$0xff] }
 0x4ca   : > { %v2325_v20 = vadd.f32 %v2324_v19, %v2305_v14 }
 0x4cb   : > { %v2245_v4 = vadd.f32 %v2244_v2, %v2225_v8  ;;  %v2695_v2 = vld.sshfl [vmem:[#allocation1 + $0x8] sm:$0xff pattern:$0x75316420] }
 0x4cc   : > { %3009 = vmatpush.msk.msrb.mxu3 %vm357_vm0, %v2695_v2 }
 0x4cd   : > { %v2265_v5 = vadd.f32 %v2264_v12, %v2245_v4  ;;  %v2687_v12 = vld [vmem:[%s4060_s3] sm:$0xff] }
 0x4ce   : > { %3008 = vmatmul.msk.f32.vlgmr.msrb.gmra.mxu2 %vm329_vm1, %v2687_v12  ;;  %3010 = vmatmul.msk.f32.vlgmr.msrb.gmra.mxu3 %vm329_vm1, %v2687_v12 }
 0x4cf   : > { %v2344_v46 = vpop.f32.mrf.mxu2  ;;  %v2384_v31 = vpop.f32.mrf.mxu0  ;;  %v2285_v1 = vadd.f32 %v2284_v15, %v2265_v5 }
 0x4d0   : > { %v2345_v23 = vadd.f32 %v2344_v46, %v2325_v20 }
 0x4d1   : > { %v2650_v40 = vmul.f32 %v2285_v1, %v2285_v1 }
 0x4d2   : > { %v2365_v36 = vadd.f32 %v2364_v24, %v2345_v23 }
 0x4d4   : > { %v2385_v33 = vadd.f32 %v2384_v31, %v2365_v36 }
 0x4d6   : > { %v2405_v41 = vadd.f32 %v2404_v34, %v2385_v33  ;;  %v2965_v33 = vld [vmem:[%s4063_s6 + $0x30] sm:$0xff] }
 0x4e6   : > { %v2424_v30 = vpop.f32.mrf.mxu2  ;;  %v2444_v26 = vpop.f32.mrf.mxu3 }
 0x4e7   : > { %v2425_v42 = vadd.f32 %v2424_v30, %v2405_v41 }
 0x4e9   : > { %v2445_v29 = vadd.f32 %v2444_v26, %v2425_v42  ;;  %v2464_v43 = vpop.f32.mrf.mxu0  ;;  %v2484_v48 = vpop.f32.mrf.mxu1 }
 0x4eb   : > { %v2465_v47 = vadd.f32 %v2464_v43, %v2445_v29  ;;  %v2783_v29 = vld [vmem:[%s4061_s4] sm:$0xff] }
 0x4ed   : > { %v2485_v60 = vadd.f32 %v2484_v48, %v2465_v47 }
 0x508   : > { %v2504_v49 = vpop.f32.mrf.mxu2  ;;  %v2524_v16 = vpop.f32.mrf.mxu3 }
 0x509   : > { %v2505_v6 = vadd.f32 %v2504_v49, %v2485_v60 }
 0x50b   : > { %v2525_v54 = vadd.f32 %v2524_v16, %v2505_v6  ;;  %v2544_v55 = vpop.f32.mrf.mxu0  ;;  %v2564_v57 = vpop.f32.mrf.mxu1 }
 0x50d   : > { %v2545_v56 = vadd.f32 %v2544_v55, %v2525_v54 }
 0x50f   : > { %v2565_v63 = vadd.f32 %v2564_v57, %v2545_v56 }
 0x52a   : > { %v2584_v58 = vpop.f32.mrf.mxu2  ;;  %v2604_v59 = vpop.f32.mrf.mxu3 }
 0x52b   : > { %v2585_v39 = vadd.f32 %v2584_v58, %v2565_v63 }
 0x52c   : > { %v2624_v0 = vpop.f32.mrf.mxu0  ;;  %v2644_v22 = vpop.f32.mrf.mxu1 }
 0x52d   : > { %v2605_v62 = vadd.f32 %v2604_v59, %v2585_v39  ;;  %v2966_v59 = vld [vmem:[%s4063_s6 + $0x38] sm:$0xff] }
 0x52f   : > { %v2625_v18 = vadd.f32 %v2624_v0, %v2605_v62 }
 0x531   : > { %v2645_v3 = vadd.f32 %v2644_v22, %v2625_v18 }
 0x533   : > { %v2647_v28 = vadd.f32 %v2645_v3, %v2285_v1  ;;  %v2651_v35 = vmul.f32 %v2645_v3, %v2645_v3 }
 0x535   : > { %2648 = vadd.xlane.f32.xlu2 %v2647_v28  ;;  %v2652_v9 = vadd.f32 %v2651_v35, %v2650_v40 }
 0x537   : > { %2653 = vadd.xlane.f32.xlu1 %v2652_v9 }
 0x54d   : > { %2682 = vperm.xlu2 %3043, %v2964_v10  }
 0x551   : > { %v2720_v43 = vpop.f32.mrf.mxu2  ;;  %v2740_v45 = vpop.f32.mrf.mxu3 }
 0x555   : > { %2786 = vperm.xlu2 %3043, %v2968_v11  }
 0x55d   : > { %2778 = vperm.xlu2 %3043, %v2967_v44  }
 0x5a8   : > { %v2649_v7 = vpop.xlane.xlu2 %2648 }
 0x5a9   : > { %v2655_v17 = vmul.f32 0.00390625, %v2649_v7 }
 0x5aa   : > { %v2654_v13 = vpop.xlane.xlu1 %2653 }
 0x5ab   : > { %v2656_v14 = vmul.f32 0.00390625, %v2654_v13  ;;  %v2657_v15 = vmul.f32 %v2655_v17, %v2655_v17  ;;  %v2659_v34 = vsub.f32 %v2285_v1, %v2655_v17  ;;  %v2660_v30 = vsub.f32 %v2645_v3, %v2655_v17 }
 0x5ad   : > { %v2658_v19 = vsub.f32 %v2656_v14, %v2657_v15 }
 0x5af   : > { %v2661_v46 = vadd.f32 1e-05, %v2658_v19 }
 0x5b0   : > { %v2683_v42 = vpop.permute.xlu2 %2682 }
 0x5b1   : > { %3046 = vrsqrt.f32 %v2661_v46  ;;  %vm2668_vm9 = vweird.f32 %v2661_v46 }
 0x5b7   : > { %v3047_v52 = vpop.eup %3046 }
 0x5b8   : > { %v2663_v20 = vmul.f32 %v3047_v52, %v2661_v46  ;;  %vm2669_vm8 = vweird.f32 %v3047_v52  ;;  %v2787_v3 = vpop.permute.xlu2 %2786 }
 0x5b9   : > { %vm2670_vm10 = vmor %vm2668_vm9, %vm2669_vm8 }
 0x5ba   : > { %v2664_v21 = vmul.f32 %v3047_v52, %v2663_v20 }
 0x5bc   : > { %v2665_v23 = vmul.f32 0.5, %v2664_v21 }
 0x5be   : > { %v2666_v24 = vsub.f32 1.5, %v2665_v23 }
 0x5c0   : > { %v2667_v36 = vmul.f32 %v3047_v52, %v2666_v24 }
 0x5c2   : > { %v2671_v31 = vsel %vm2670_vm10, %v3047_v52, %v2667_v36 }
 0x5c3   : > { %v2672_v32 = vmul.f32 %v2963_v25, %v2671_v31 }
 0x5c5   : > { %2675 = vperm.xlu0 %3041, %v2672_v32  }
 0x5cd   : > { %2690 = vperm.xlu0 %3041, %v2965_v33  }
 0x637   : > { %v2676_v38 = vpop.permute.xlu0 %2675 }
 0x638   : > { %v2678_v41 = vmul.f32 %v2676_v38, %v2659_v34  ;;  %v2679_v27 = vmul.f32 %v2676_v38, %v2660_v30 }
 0x63a   : > { %v4016_v26 = vadd.f32 %v2683_v42, %v2678_v41  ;;  %v4018_v37 = vadd.f32 %v2683_v42, %v2679_v27 }
 0x63c   : > { %2807 = vmatpush.msra.mxu2 %v4016_v26  ;;  %2827 = vmatpush.msra.mxu3 %v4018_v37 }
 0x63d   : > { %3011 = vmatmul.msk.f32.vlgmr.msra.gmra.mxu2 %vm1806_vm7, %v2783_v29  ;;  %3012 = vmatmul.msk.f32.vlgmr.msra.gmra.mxu3 %vm1806_vm7, %v2783_v29  ;;  %v2779_v29 = vpop.permute.xlu2 %2778 }
 0x63f   : > { %v2691_v47 = vpop.permute.xlu0 %2690 }
 0x640   : > { %v4027_v48 = vadd.f32 %v2720_v43, %v2691_v47  ;;  %v4029_v49 = vadd.f32 %v2740_v45, %v2691_v47 }
 0x642   : > { %v2743_v51 = vadd.f32 %v4029_v49, %v4027_v48  ;;  %v2746_v60 = vmul.f32 %v4027_v48, %v4027_v48  ;;  %v2747_v61 = vmul.f32 %v4029_v49, %v4029_v49 }
 0x644   : > { %2744 = vadd.xlane.f32.xlu1 %v2743_v51  ;;  %v2748_v6 = vadd.f32 %v2747_v61, %v2746_v60 }
 0x646   : > { %2749 = vadd.xlane.f32.xlu0 %v2748_v6 }
 0x6b7   : > { %v2745_v16 = vpop.xlane.xlu1 %2744 }
 0x6b8   : > { %v4037_v53 = vmul.f32 0.00390625, %v2745_v16 }
 0x6b9   : > { %v2750_v54 = vpop.xlane.xlu0 %2749 }
 0x6ba   : > { %v2752_v55 = vmul.f32 0.00390625, %v2750_v54  ;;  %v2753_v8 = vmul.f32 %v4037_v53, %v4037_v53  ;;  %v2755_v33 = vsub.f32 %v4027_v48, %v4037_v53  ;;  %v2756_v34 = vsub.f32 %v4029_v49, %v4037_v53 }
 0x6bc   : > { %v2754_v56 = vsub.f32 %v2752_v55, %v2753_v8 }
 0x6be   : > { %v2757_v57 = vadd.f32 1e-05, %v2754_v56 }
 0x6c0   : > { %3048 = vrsqrt.f32 %v2757_v57  ;;  %vm2764_vm12 = vweird.f32 %v2757_v57  ;;  %v2809_v18 = vpop.f32.mrf.mxu2  ;;  %v2829_v22 = vpop.f32.mrf.mxu3 }
 0x6c1   : > { %v2810_v28 = vadd.f32 %v2809_v18, %v2787_v3  ;;  %v2830_v40 = vadd.f32 %v2829_v22, %v2787_v3 }
 0x6c3   : > { %v3013_v35 = vmul.f32 -1.442695, %v2810_v28  ;;  %v3014_v9 = vmul.f32 -1.442695, %v2830_v40 }
 0x6c5   : > { %3050 = vpow2.f32 %v3013_v35 }
 0x6c6   : > { %v3049_v4 = vpop.eup %3048  ;;  %3052 = vpow2.f32 %v3014_v9 }
 0x6c7   : > { %v2759_v63 = vmul.f32 %v3049_v4, %v2757_v57  ;;  %vm2765_vm11 = vweird.f32 %v3049_v4 }
 0x6c8   : > { %vm2766_vm13 = vmor %vm2764_vm12, %vm2765_vm11 }
 0x6c9   : > { %v2760_v58 = vmul.f32 %v3049_v4, %v2759_v63 }
 0x6cb   : > { %v2761_v5 = vmul.f32 0.5, %v2760_v58  ;;  %v3051_v10 = vpop.eup %3050 }
 0x6cc   : > { %v3053_v11 = vpop.eup %3052  ;;  %v2838_v44 = vadd.f32 1.0, %v3051_v10 }
 0x6cd   : > { %v2762_v39 = vsub.f32 1.5, %v2761_v5  ;;  %v2839_v50 = vadd.f32 1.0, %v3053_v11 }
 0x6ce   : > { %3054 = vrcp.f32 %v2838_v44  ;;  %vm2845_vm0 = vweird.f32 %v2838_v44  ;;  %v2851_v20 = vand.u32 2147483648, %v2838_v44  ;;  %v2849_v23 = vand.u32 2147483647, %v2838_v44 }
 0x6cf   : > { %v2763_v62 = vmul.f32 %v3049_v4, %v2762_v39  ;;  %3056 = vrcp.f32 %v2839_v50  ;;  %v2866_v21 = vand.u32 2147483648, %v2839_v50  ;;  %vm2860_vm2 = vweird.f32 %v2839_v50 }
 0x6d0   : > { %v2864_v24 = vand.u32 2147483647, %v2839_v50  ;;  %v2852_v31 = vor.u32 1.1754944e-38, %v2851_v20  ;;  %vm2850_vm4 = vcmp.eq.f32.partialorder %v2849_v23, 8.507059e+37 }
 0x6d1   : > { %v2767_v0 = vsel %vm2766_vm13, %v3049_v4, %v2763_v62  ;;  %v2867_v32 = vor.u32 1.1754944e-38, %v2866_v21 }
 0x6d2   : > { %v2768_v1 = vmul.f32 %v2966_v59, %v2767_v0  ;;  %vm2865_vm5 = vcmp.eq.f32.partialorder %v2864_v24, 8.507059e+37 }
 0x6d4   : > { %2771 = vperm.xlu1 %3042, %v2768_v1   ;;  %v3055_v2 = vpop.eup %3054 }
 0x6d5   : > { %v3057_v12 = vpop.eup %3056  ;;  %v2841_v7 = vmul.f32 %v3055_v2, %v2838_v44  ;;  %vm2846_vm14 = vweird.f32 %v3055_v2 }
 0x6d6   : > { %v2856_v17 = vmul.f32 %v3057_v12, %v2839_v50  ;;  %vm2861_vm15 = vweird.f32 %v3057_v12  ;;  %vm2847_vm1 = vmor %vm2845_vm0, %vm2846_vm14 }
 0x6d7   : > { %v2842_v13 = vsub.f32 1.0, %v2841_v7  ;;  %vm2862_vm3 = vmor %vm2860_vm2, %vm2861_vm15 }
 0x6d8   : > { %v2857_v14 = vsub.f32 1.0, %v2856_v17 }
 0x6d9   : > { %v2843_v15 = vmul.f32 %v3055_v2, %v2842_v13 }
 0x6da   : > { %v2858_v19 = vmul.f32 %v3057_v12, %v2857_v14 }
 0x6db   : > { %v2844_v46 = vadd.f32 %v3055_v2, %v2843_v15 }
 0x6dc   : > { %v2859_v52 = vadd.f32 %v3057_v12, %v2858_v19 }
 0x6dd   : > { %v2848_v25 = vsel %vm2847_vm1, %v3055_v2, %v2844_v46 }
 0x6de   : > { %v2863_v36 = vsel %vm2862_vm3, %v3057_v12, %v2859_v52  ;;  %v2853_v38 = vsel %vm2850_vm4, %v2852_v31, %v2848_v25 }
 0x6df   : > { %v2868_v41 = vsel %vm2865_vm5, %v2867_v32, %v2863_v36  ;;  %v2870_v47 = vmul.f32 %v2853_v38, %v4016_v26 }
 0x6e0   : > { %v2871_v51 = vmul.f32 %v2868_v41, %v4018_v37 }
 0x746   : > { %v2772_v30 = vpop.permute.xlu1 %2771 }
 0x747   : > { %v2774_v27 = vmul.f32 %v2772_v30, %v2755_v33  ;;  %v2775_v42 = vmul.f32 %v2772_v30, %v2756_v34 }
 0x749   : > { %v2781_v43 = vadd.f32 %v2779_v29, %v2774_v27  ;;  %v2782_v45 = vadd.f32 %v2779_v29, %v2775_v42 }
 0x74b   : > { %v2872_v60 = vadd.f32 %v2870_v47, %v2781_v43  ;;  %v2873_v48 = vadd.f32 %v2871_v51, %v2782_v45 }
 0x74d   : > { %vm2874_vm6 = vcmp.ge.f32.partialorder %v2872_v60, 0.0  ;;  %vm2875_vm7 = vcmp.ge.f32.partialorder %v2873_v48, 0.0  ;;  %v2876_v49 = vmul.f32 0.01, %v2872_v60  ;;  %v2877_v61 = vmul.f32 0.01, %v2873_v48 }
 0x74f   : > { %v2878_v6 = vsel %vm2874_vm6, %v2872_v60, %v2876_v49  ;;  %v2879_v16 = vsel %vm2875_vm7, %v2873_v48, %v2877_v61 }
 0x750   : > { %2880 = vst [vmem:[%s295_s14] sm:$0xff] %v2878_v6 }
 0x751   : > { %2881 = vst [vmem:[%s295_s14 + $0x8] sm:$0xff] %v2879_v16 }
 0x752 PF: > { %s18_s24 = sadd.s32 1, %s3674_s24  }
 0x753   : > { %p15_p7 = scmp.ge.s32.totalorder %s18_s24, 4  }
 0x755   :  { %17 = sbr.rel (!%p15_p7) target bundleno = 1 (0x1), region = 92 }
 0x75a   :  { %2903 = vsyncpa [#allocation3], 1 }
 0x75b   :  { %2905 = vsyncpa [#allocation3 + $0x1], 1 }

</bundles_post_ra>
